<compile_context>
chip_gen: v5e
topology: v5e:2x2
jax: 0.10.0
libtpu: 0.0.40
codegen_flags: <defaults>
</compile_context>

<pallas_src>
import jax
import jax.numpy as jnp
from jax import lax
from jax.experimental import pallas as pl
from jax.experimental.pallas import tpu as pltpu


def _make_kernel(c_in, k, hw):
    """Kernel factory.  k = channels packed per output row, hw = H*W."""
    L = k * hw

    def kernel(xse_ref, w_ref, b_ref, xm_ref, o_ref):
        r_tile = o_ref.shape[0]

        # ---- 1x1 conv for this channel tile: one dense MXU matmul ----------
        # w_ref:  [r_tile, k*c_in]  (native weight order, 4 channels per row)
        # xse_bd: [k*c_in, k]       block-diagonal replication of x_se so the
        #                           weight tile can stay in its dense layout.
        xse = xse_ref[...]                                        # [c_in, 1]
        xse_rep = jnp.concatenate([xse] * k, axis=0)              # [k*c_in, 1]
        sub_i = lax.broadcasted_iota(jnp.int32, (k * c_in, k), 0)
        col_i = lax.broadcasted_iota(jnp.int32, (k * c_in, k), 1)
        blockdiag = ((sub_i >= col_i * c_in) &
                     (sub_i < (col_i + 1) * c_in)).astype(jnp.float32)
        xse_bd = xse_rep * blockdiag                              # [k*c_in, k]

        logits = jnp.dot(w_ref[...], xse_bd,
                         preferred_element_type=jnp.float32)      # [r_tile, k]
        gate_rk = jax.nn.sigmoid(logits + b_ref[...])             # [r_tile, k]

        # ---- expand the k per-row gates to their 49-lane stripes -----------
        # Column j is extracted with (one-hot multiply + lane reduce) so no
        # lane-offset slicing is needed; a short where-chain then selects the
        # right gate for each lane (lane // hw == j).  Pure VPU/XLU work.
        lane = lax.broadcasted_iota(jnp.int32, (r_tile, L), 1)    # [r_tile, L]
        lane_k = lax.broadcasted_iota(jnp.int32, (1, k), 1)       # [1, k]

        def col(j):
            onehot = (lane_k == j).astype(jnp.float32)            # [1, k]
            return jnp.sum(gate_rk * onehot, axis=1, keepdims=True)  # [r_tile, 1]

        gate = col(k - 1)
        for j in range(k - 2, -1, -1):
            gate = jnp.where(lane < (j + 1) * hw, col(j), gate)   # [r_tile, L]

        # ---- channel-wise gate applied to the main activations (VPU) -------
        o_ref[...] = (xm_ref[...] * gate).astype(o_ref.dtype)

    return kernel


def conv2d_sigmoid_mul(x_se, x_main, weight, bias):
    """
    x_se:   [N, C_in, 1, 1]      (PyTorch NCHW)
    x_main: [N, C_out, H, W]     (PyTorch NCHW)
    weight: [C_out, C_in, 1, 1]
    bias:   [C_out]
    returns [N, C_out, H, W]
    """
    N, C_in = x_se.shape[0], x_se.shape[1]
    _, C_out, H, W = x_main.shape
    assert N == 1, "kernel written for N == 1 (matches the reference module)"
    HW = H * W

    # Channels packed per output row (lane density: 4*49 = 196 live lanes).
    k = 4 if C_out % 4 == 0 else 1
    R = C_out // k               # rows in the packed view
    L = k * HW                   # lanes per row

    # 2 grid steps: DMA double-buffering + an even megacore split on v7x.
    grid_c = 2 if R % 16 == 0 else 1
    R_tile = R // grid_c

    # All reshapes below are free (contiguous) views of the native buffers.
    xse2 = x_se.reshape(C_in, 1).astype(jnp.float32)            # [C_in, 1]
    w2 = weight.reshape(R, k * C_in).astype(jnp.float32)        # [R, k*C_in]
    b2 = bias.reshape(R, k).astype(jnp.float32)                 # [R, k]
    xm2 = x_main.reshape(R, L).astype(jnp.float32)              # [R, k*H*W]

    out = pl.pallas_call(
        _make_kernel(C_in, k, HW),
        out_shape=jax.ShapeDtypeStruct((R, L), jnp.float32),
        grid=(grid_c,),
        in_specs=[
            pl.BlockSpec((C_in, 1), lambda i: (0, 0)),            # x_se: resident
            pl.BlockSpec((R_tile, k * C_in), lambda i: (i, 0)),   # weight tile (dense)
            pl.BlockSpec((R_tile, k), lambda i: (i, 0)),          # bias tile
            pl.BlockSpec((R_tile, L), lambda i: (i, 0)),          # main activation tile
        ],
        out_specs=pl.BlockSpec((R_tile, L), lambda i: (i, 0)),
        compiler_params=pltpu.CompilerParams(
            # independent channel tiles -> megacore sharding on v7x,
            # harmless on single-core v5e/v6e.
            dimension_semantics=("parallel",)),
    )(xse2, w2, b2, xm2)

    # free reshape back to NCHW
    return out.reshape(N, C_out, H, W)


def reference(x_se, x_main, weight, bias):
    # pure-JAX reference of the PyTorch forward
    N, C_in = x_se.shape[0], x_se.shape[1]
    C_out = weight.shape[0]
    s = x_se.reshape(N, C_in) @ weight.reshape(C_out, C_in).T + bias[None, :]
    s = jax.nn.sigmoid(s).reshape(N, C_out, 1, 1)
    return s * x_main


if __name__ == "__main__":
    key = jax.random.PRNGKey(0)
    k1, k2, k3, k4 = jax.random.split(key, 4)

    # shapes implied by the module's forward
    N, C_in, C_out, H, W = 1, 96, 2304, 7, 7

    x760 = jax.random.normal(k1, (N, C_in, 1, 1), dtype=jnp.float32)     # SE input
    x757 = jax.random.normal(k2, (N, C_out, H, W), dtype=jnp.float32)    # main activations

    # deterministic synthetic parameters for Conv2d(96, 2304, 1)
    weight = (jax.random.normal(k3, (C_out, C_in, 1, 1), dtype=jnp.float32)
              * (1.0 / jnp.sqrt(C_in)))
    bias = jax.random.normal(k4, (C_out,), dtype=jnp.float32) * 0.01

    fn = jax.jit(conv2d_sigmoid_mul)
    out = jax.block_until_ready(fn(x760, x757, weight, bias))

    ref = reference(x760, x757, weight, bias)
    assert out.shape == (N, C_out, H, W)
    assert jnp.allclose(out, ref, atol=1e-4, rtol=1e-4), "mismatch vs reference"

    print("KERNEL_OK")
</pallas_src>

<mosaic_0001>
module attributes {stable_mosaic.version = 11 : i64} {
  func.func @kernel(%arg0: i32, %arg1: memref<96x1xf32, #tpu.memory_space<vmem>>, %arg2: memref<288x384xf32, #tpu.memory_space<vmem>>, %arg3: memref<288x4xf32, #tpu.memory_space<vmem>>, %arg4: memref<288x196xf32, #tpu.memory_space<vmem>>, %arg5: memref<288x196xf32, #tpu.memory_space<vmem>>) attributes {dimension_semantics = [#tpu.dimension_semantics<parallel>], iteration_bounds = array<i64: 2>, scalar_prefetch = 0 : i64, scratch_operands = 0 : i64, tpu.core_type = #tpu.core_type<tc>, window_params = [{pipeline_mode = #tpu.pipeline_mode<synchronous>, transform_indices = @transform_0, window_bounds = array<i64: 96, 1>}, {transform_indices = @transform_1, window_bounds = array<i64: 288, 384>}, {transform_indices = @transform_2, window_bounds = array<i64: 288, 4>}, {transform_indices = @transform_3, window_bounds = array<i64: 288, 196>}, {transform_indices = @transform_4, window_bounds = array<i64: 288, 196>}]} {
    %c0 = arith.constant 0 : index
    %c0_0 = arith.constant 0 : index
    %0 = vector.load %arg1[%c0, %c0_0] : memref<96x1xf32, #tpu.memory_space<vmem>>, vector<96x1xf32>
    %1 = tpu.concatenate %0, %0, %0, %0 in 0 : vector<96x1xf32>, vector<96x1xf32>, vector<96x1xf32>, vector<96x1xf32> -> vector<384x1xf32>
    %2 = tpu.iota {dimensions = array<i32: 0>} : vector<384x4xi32>
    %3 = tpu.iota {dimensions = array<i32: 1>} : vector<384x4xi32>
    %c96_i32 = arith.constant 96 : i32
    %4 = vector.broadcast %c96_i32 : i32 to vector<384x4xi32>
    %5 = arith.muli %3, %4 : vector<384x4xi32>
    %6 = arith.cmpi sge, %2, %5 : vector<384x4xi32>
    %c1_i32 = arith.constant 1 : i32
    %7 = vector.broadcast %c1_i32 : i32 to vector<384x4xi32>
    %8 = arith.addi %3, %7 : vector<384x4xi32>
    %c96_i32_1 = arith.constant 96 : i32
    %9 = vector.broadcast %c96_i32_1 : i32 to vector<384x4xi32>
    %10 = arith.muli %8, %9 : vector<384x4xi32>
    %11 = arith.cmpi slt, %2, %10 : vector<384x4xi32>
    %12 = arith.andi %6, %11 : vector<384x4xi1>
    %13 = arith.extui %12 : vector<384x4xi1> to vector<384x4xi32>
    %14 = arith.sitofp %13 : vector<384x4xi32> to vector<384x4xf32>
    %15 = vector.broadcast %1 : vector<384x1xf32> to vector<384x4xf32>
    %16 = arith.mulf %15, %14 : vector<384x4xf32>
    %c0_2 = arith.constant 0 : index
    %c0_3 = arith.constant 0 : index
    %17 = vector.load %arg2[%c0_2, %c0_3] : memref<288x384xf32, #tpu.memory_space<vmem>>, vector<288x384xf32>
    %cst = arith.constant dense<0.000000e+00> : vector<288x4xf32>
    %18 = tpu.matmul %17, %16, %cst {dimension_numbers = #tpu.dot_dimension_numbers<[1], [0], [0], [1], [0, 0, 1, 1], [], []>} : vector<288x384xf32>, vector<384x4xf32>, vector<288x4xf32> -> vector<288x4xf32>
    %c0_4 = arith.constant 0 : index
    %c0_5 = arith.constant 0 : index
    %19 = vector.load %arg3[%c0_4, %c0_5] : memref<288x4xf32, #tpu.memory_space<vmem>>, vector<288x4xf32>
    %20 = arith.addf %18, %19 : vector<288x4xf32>
    %21 = arith.negf %20 : vector<288x4xf32>
    %22 = math.exp %21 : vector<288x4xf32>
    %cst_6 = arith.constant 1.000000e+00 : f32
    %23 = vector.broadcast %cst_6 : f32 to vector<288x4xf32>
    %24 = arith.addf %23, %22 : vector<288x4xf32>
    %25 = arith.divf %23, %24 : vector<288x4xf32>
    %26 = tpu.iota {dimensions = array<i32: 1>} : vector<288x196xi32>
    %27 = tpu.iota {dimensions = array<i32: 1>} : vector<1x4xi32>
    %c3_i32 = arith.constant 3 : i32
    %28 = vector.broadcast %c3_i32 : i32 to vector<1x4xi32>
    %29 = arith.cmpi eq, %27, %28 : vector<1x4xi32>
    %30 = arith.extui %29 : vector<1x4xi1> to vector<1x4xi32>
    %31 = arith.sitofp %30 : vector<1x4xi32> to vector<1x4xf32>
    %32 = vector.broadcast %31 : vector<1x4xf32> to vector<288x4xf32>
    %33 = arith.mulf %25, %32 : vector<288x4xf32>
    %cst_7 = arith.constant dense<0.000000e+00> : vector<288xf32>
    %34 = vector.multi_reduction <add>, %33, %cst_7 [1] : vector<288x4xf32> to vector<288xf32>
    %35 = vector.shape_cast %34 : vector<288xf32> to vector<288x1xf32>
    %c147_i32 = arith.constant 147 : i32
    %36 = vector.broadcast %c147_i32 : i32 to vector<288x196xi32>
    %37 = arith.cmpi slt, %26, %36 : vector<288x196xi32>
    %c2_i32 = arith.constant 2 : i32
    %38 = vector.broadcast %c2_i32 : i32 to vector<1x4xi32>
    %39 = arith.cmpi eq, %27, %38 : vector<1x4xi32>
    %40 = arith.extui %39 : vector<1x4xi1> to vector<1x4xi32>
    %41 = arith.sitofp %40 : vector<1x4xi32> to vector<1x4xf32>
    %42 = vector.broadcast %41 : vector<1x4xf32> to vector<288x4xf32>
    %43 = arith.mulf %25, %42 : vector<288x4xf32>
    %cst_8 = arith.constant dense<0.000000e+00> : vector<288xf32>
    %44 = vector.multi_reduction <add>, %43, %cst_8 [1] : vector<288x4xf32> to vector<288xf32>
    %45 = vector.shape_cast %44 : vector<288xf32> to vector<288x1xf32>
    %46 = vector.shape_cast %45 : vector<288x1xf32> to vector<288x1xf32>
    %47 = vector.broadcast %46 : vector<288x1xf32> to vector<288x196xf32>
    %48 = vector.shape_cast %35 : vector<288x1xf32> to vector<288x1xf32>
    %49 = vector.broadcast %48 : vector<288x1xf32> to vector<288x196xf32>
    %50 = arith.select %37, %47, %49 : vector<288x196xi1>, vector<288x196xf32>
    %c98_i32 = arith.constant 98 : i32
    %51 = vector.broadcast %c98_i32 : i32 to vector<288x196xi32>
    %52 = arith.cmpi slt, %26, %51 : vector<288x196xi32>
    %c1_i32_9 = arith.constant 1 : i32
    %53 = vector.broadcast %c1_i32_9 : i32 to vector<1x4xi32>
    %54 = arith.cmpi eq, %27, %53 : vector<1x4xi32>
    %55 = arith.extui %54 : vector<1x4xi1> to vector<1x4xi32>
    %56 = arith.sitofp %55 : vector<1x4xi32> to vector<1x4xf32>
    %57 = vector.broadcast %56 : vector<1x4xf32> to vector<288x4xf32>
    %58 = arith.mulf %25, %57 : vector<288x4xf32>
    %cst_10 = arith.constant dense<0.000000e+00> : vector<288xf32>
    %59 = vector.multi_reduction <add>, %58, %cst_10 [1] : vector<288x4xf32> to vector<288xf32>
    %60 = vector.shape_cast %59 : vector<288xf32> to vector<288x1xf32>
    %61 = vector.shape_cast %60 : vector<288x1xf32> to vector<288x1xf32>
    %62 = vector.broadcast %61 : vector<288x1xf32> to vector<288x196xf32>
    %63 = arith.select %52, %62, %50 : vector<288x196xi1>, vector<288x196xf32>
    %c49_i32 = arith.constant 49 : i32
    %64 = vector.broadcast %c49_i32 : i32 to vector<288x196xi32>
    %65 = arith.cmpi slt, %26, %64 : vector<288x196xi32>
    %c0_i32 = arith.constant 0 : i32
    %66 = vector.broadcast %c0_i32 : i32 to vector<1x4xi32>
    %67 = arith.cmpi eq, %27, %66 : vector<1x4xi32>
    %68 = arith.extui %67 : vector<1x4xi1> to vector<1x4xi32>
    %69 = arith.sitofp %68 : vector<1x4xi32> to vector<1x4xf32>
    %70 = vector.broadcast %69 : vector<1x4xf32> to vector<288x4xf32>
    %71 = arith.mulf %25, %70 : vector<288x4xf32>
    %cst_11 = arith.constant dense<0.000000e+00> : vector<288xf32>
    %72 = vector.multi_reduction <add>, %71, %cst_11 [1] : vector<288x4xf32> to vector<288xf32>
    %73 = vector.shape_cast %72 : vector<288xf32> to vector<288x1xf32>
    %74 = vector.shape_cast %73 : vector<288x1xf32> to vector<288x1xf32>
    %75 = vector.broadcast %74 : vector<288x1xf32> to vector<288x196xf32>
    %76 = arith.select %65, %75, %63 : vector<288x196xi1>, vector<288x196xf32>
    %c0_12 = arith.constant 0 : index
    %c0_13 = arith.constant 0 : index
    %77 = vector.load %arg4[%c0_12, %c0_13] : memref<288x196xf32, #tpu.memory_space<vmem>>, vector<288x196xf32>
    %78 = arith.mulf %77, %76 : vector<288x196xf32>
    %c0_14 = arith.constant 0 : index
    %c0_15 = arith.constant 0 : index
    %79 = vector.load %arg5[%c0_14, %c0_15] : memref<288x196xf32, #tpu.memory_space<vmem>>, vector<288x196xf32>
    tpu.vector_store %arg5[%c0_14, %c0_15], %78 {strides = array<i32>} : memref<288x196xf32, #tpu.memory_space<vmem>>, vector<288x196xf32>,
    return
  }
  func.func @transform_0(%arg0: i32) -> (i32, i32) {
    %c0_i32 = arith.constant 0 : i32
    %c0_i32_0 = arith.constant 0 : i32
    %c0_i32_1 = arith.constant 0 : i32
    return %c0_i32, %c0_i32_0 : i32, i32
  }
  func.func @transform_1(%arg0: i32) -> (i32, i32) {
    %c0_i32 = arith.constant 0 : i32
    %c0_i32_0 = arith.constant 0 : i32
    return %arg0, %c0_i32 : i32, i32
  }
  func.func @transform_2(%arg0: i32) -> (i32, i32) {
    %c0_i32 = arith.constant 0 : i32
    %c0_i32_0 = arith.constant 0 : i32
    return %arg0, %c0_i32 : i32, i32
  }
  func.func @transform_3(%arg0: i32) -> (i32, i32) {
    %c0_i32 = arith.constant 0 : i32
    %c0_i32_0 = arith.constant 0 : i32
    return %arg0, %c0_i32 : i32, i32
  }
  func.func @transform_4(%arg0: i32) -> (i32, i32) {
    %c0_i32 = arith.constant 0 : i32
    %c0_i32_0 = arith.constant 0 : i32
    return %arg0, %c0_i32 : i32, i32
  }
}

</mosaic_0001>

<bundles_post_ra>
// kernel: conv2d_sigmoid_mul.1
= control target key start
LH: loop header
LB: loop body
LE: loop exit
PB: predicated region body
PF: predicated region fallthrough
CT: control target
= control target key end

     0   :  { %s3325_s15 = smov 0   ;;  %s6304_s0 = inlined_call_operand.vmem [shape: f32[96,1], index: 0, kind: input, shape index: {}]   ;;  %s6305_s1 = inlined_call_operand.vmem [shape: f32[576,384], index: 1, kind: input, shape index: {}]   ;;  %s6306_s2 = inlined_call_operand.vmem [shape: f32[576,4], index: 2, kind: input, shape index: {}]   ;;  %s6307_s3 = inlined_call_operand.vmem [shape: f32[576,196], index: 3, kind: input, shape index: {}]   ;;  %s6308_s4 = inlined_call_operand.vmem [shape: f32[576,196], index: 4, kind: output, shape index: {}]  }
   0x1 LB: > { %s2981_s16 = sadd.s32 4294967295, %s3296_s15   ;;  %p2985_p0 = scmp.ge.s32.totalorder %s3296_s15, 1  ;;  %s3296_s15 = sphi %s3325_s15, %s14_s15  }
   0x2   : > { %p187_p1 = scmp.lt.s32.totalorder %s3296_s15, 3 }
   0x4   : > { %p188_p2 = pnand %p2985_p0, %p187_p1 }
   0x5   : > { %s3857_s17 = smul.u32 (!%p188_p2), 36, %s2981_s16 }
   0x6   : > { %191 = sbr.rel (%p188_p2) target bundleno = 850 (0x352), region = 36 }
   0x7   : > { %p227_p3 = scmp.lt.s32.totalorder (!%p188_p2), %s3857_s17, 71 }
   0xb   : > { %v255_v0 = vld [vmem:[%s6304_s0 + $0x10] sm:$0xff]  ;;  %v253_v1 = vld [vmem:[%s6304_s0] sm:$0xff]  ;;  %v3298_v2 = vmov 0   ;;  %v256_v4 = vld [vmem:[%s6304_s0 + $0x18] sm:$0xff]  ;;  %v265_v13 = vlaneseq  ;;  %v3299_v21 = vmov 0.0   ;;  %s6470_s17 = smov (!%p227_p3, %s3857_s17), 71 }
   0xc   : > { %3144 = vset.pattern.permute.xlu1 %v3298_v2  ;;  %3143 = vset.pattern.permute.xlu0 %v3298_v2  ;;  %v257_v3 = vld [vmem:[%s6304_s0 + $0x20] sm:$0xff]  ;;  %v254_v5 = vld [vmem:[%s6304_s0 + $0x8] sm:$0xff]  ;;  %v264_v6 = vld [vmem:[%s6304_s0 + $0x58] sm:$0xff]  ;;  %s3132_s16 = smul.u32 24, %s6470_s17  ;;  %s2987_s21 = sshll.u32 %s6470_s17, 3 }
   0xd   : > { %571 = vperm.xlu1 %3144, %v255_v0   ;;  %561 = vperm.xlu0 %3143, %v253_v1   ;;  %v260_v7 = vld [vmem:[%s6304_s0 + $0x38] sm:$0xff]  ;;  %v263_v8 = vld [vmem:[%s6304_s0 + $0x50] sm:$0xff]  ;;  %v262_v9 = vld [vmem:[%s6304_s0 + $0x48] sm:$0xff]  ;;  %v3369_v14 = vand.u32 127, %v265_v13  ;;  %v3371_v15 = vshrl.u32 %v265_v13, 7  ;;  %s4290_s24 = scalar_lea.vmem %s6306_s2, %s2987_s21  ;;  %s3082_s25 = sshll.u32 %s6470_s17, 4 }
   0xe   : > { %3145 = vset.pattern.permute.xlu2 %v3298_v2  ;;  %v261_v10 = vld [vmem:[%s6304_s0 + $0x40] sm:$0xff]  ;;  %v259_v11 = vld [vmem:[%s6304_s0 + $0x30] sm:$0xff]  ;;  %v258_v12 = vld [vmem:[%s6304_s0 + $0x28] sm:$0xff]  ;;  %s4096_s20 = scalar_lea.vmem %s6305_s1, %s3132_s16  ;;  %s4818_s28 = scalar_lea.vmem %s6307_s3, %s3082_s25 }
   0xf   : > { %581 = vperm.xlu2 %3145, %v257_v3   ;;  %v365_v16 = vadd.s32 1, %v3369_v14  ;;  %v313_v17 = vadd.s32 376, %v3371_v15  ;;  %v3376_v18 = vmul.u32 96, %v3369_v14  ;;  %v280_v23 = vadd.s32 112, %v3371_v15  ;;  %s4861_s5 = scalar_lea.vmem %s6308_s4, %s3082_s25 }
  0x10   : > { %v278_v24 = vadd.s32 96, %v3371_v15  ;;  %v277_v26 = vadd.s32 88, %v3371_v15  ;;  %v311_v28 = vadd.s32 360, %v3371_v15  ;;  %v275_v29 = vadd.s32 72, %v3371_v15 }
  0x11   : > { %v3378_v19 = vmul.u32 96, %v365_v16  ;;  %vm364_vm0 = vcmp.ge.s32.totalorder %v313_v17, %v3376_v18  ;;  %vm331_vm3 = vcmp.ge.s32.totalorder %v280_v23, %v3376_v18  ;;  %v295_v30 = vadd.s32 232, %v3371_v15 }
  0x12   : > { %vm329_vm5 = vcmp.ge.s32.totalorder %v278_v24, %v3376_v18  ;;  %v281_v31 = vadd.s32 120, %v3371_v15  ;;  %vm328_vm7 = vcmp.ge.s32.totalorder %v277_v26, %v3376_v18  ;;  %vm362_vm10 = vcmp.ge.s32.totalorder %v311_v28, %v3376_v18 }
  0x13   : > { %vm414_vm1 = vcmp.lt.s32.totalorder %v313_v17, %v3378_v19  ;;  %vm381_vm4 = vcmp.lt.s32.totalorder %v280_v23, %v3378_v19  ;;  %vm379_vm6 = vcmp.lt.s32.totalorder %v278_v24, %v3378_v19  ;;  %vm378_vm8 = vcmp.lt.s32.totalorder %v277_v26, %v3378_v19 }
  0x14   : > { %vm462_vm2 = vmand %vm364_vm0, %vm414_vm1  ;;  %vm412_vm11 = vcmp.lt.s32.totalorder %v311_v28, %v3378_v19  ;;  %v294_v33 = vadd.s32 224, %v3371_v15  ;;  %v279_v34 = vadd.s32 104, %v3371_v15  ;;  %vm326_vm13 = vcmp.ge.s32.totalorder %v275_v29, %v3376_v18 }
  0x15   : > { %576 = vperm.xlu1 %3144, %v256_v4   ;;  %566 = vperm.xlu0 %3143, %v254_v5   ;;  %v3039_v22 = vsel %vm462_vm2, 1.0, %v3299_v21  ;;  %vm3404_vm9 = vmand %vm331_vm3, %vm381_vm4  ;;  %vm376_vm14 = vcmp.lt.s32.totalorder %v275_v29, %v3378_v19  ;;  %v3419_v36 = vadd.s32 208, %v3371_v15  ;;  %vm346_vm0 = vcmp.ge.s32.totalorder %v295_v30, %v3376_v18 }
  0x16   : > { %vm3412_vm12 = vmand %vm329_vm5, %vm379_vm6  ;;  %vm396_vm1 = vcmp.lt.s32.totalorder %v295_v30, %v3378_v19  ;;  %v271_v38 = vadd.s32 40, %v3371_v15  ;;  %v3429_v39 = vadd.s32 16, %v3371_v15  ;;  %vm332_vm2 = vcmp.ge.s32.totalorder %v281_v31, %v3376_v18 }
  0x17   : > { %616 = vperm.xlu2 %3145, %v264_v6   ;;  %vm3421_vm15 = vmand %vm328_vm7, %vm378_vm8  ;;  %vm382_vm3 = vcmp.lt.s32.totalorder %v281_v31, %v3378_v19  ;;  %v293_v41 = vadd.s32 216, %v3371_v15  ;;  %v3441_v42 = vadd.s32 192, %v3371_v15  ;;  %vm345_vm6 = vcmp.ge.s32.totalorder %v294_v33, %v3376_v18 }
  0x18   : > { %vm3435_vm4 = vmand %vm362_vm10, %vm412_vm11  ;;  %vm395_vm7 = vcmp.lt.s32.totalorder %v294_v33, %v3378_v19  ;;  %v270_v44 = vadd.s32 32, %v3371_v15  ;;  %v3451_v45 = vadd.s32 304, %v3371_v15  ;;  %v3456_v46 = vsel %vm3404_vm9, 1.0, %v3299_v21 }
  0x19   : > { %vm3443_vm5 = vmand %vm326_vm13, %vm376_vm14  ;;  %vm330_vm8 = vcmp.ge.s32.totalorder %v279_v34, %v3376_v18  ;;  %vm380_vm10 = vcmp.lt.s32.totalorder %v279_v34, %v3378_v19  ;;  %v307_v48 = vadd.s32 328, %v3371_v15  ;;  %v3478_v50 = vsel %vm3412_vm12, 1.0, %v3299_v21  ;;  %v754_v34 = vld [vmem:[%s4096_s20 + $0x2b8] sm:$0xff] }
  0x1a   : > { %vm3464_vm11 = vmand %vm346_vm0, %vm396_vm1  ;;  %v297_v51 = vadd.s32 248, %v3371_v15  ;;  %vm322_vm9 = vcmp.ge.s32.totalorder %v271_v38, %v3376_v18  ;;  %vm372_vm14 = vcmp.lt.s32.totalorder %v271_v38, %v3378_v19  ;;  %v3486_v52 = vsel %vm3421_vm15, 1.0, %v3299_v21 }
  0x1b   : > { %vm3471_vm13 = vmand %vm332_vm2, %vm382_vm3  ;;  %v312_v53 = vadd.s32 368, %v3371_v15  ;;  %vm344_vm12 = vcmp.ge.s32.totalorder %v293_v41, %v3376_v18  ;;  %vm394_vm1 = vcmp.lt.s32.totalorder %v293_v41, %v3378_v19  ;;  %v3506_v56 = vsel %vm3435_vm4, 1.0, %v3299_v21 }
  0x1c   : > { %vm3493_vm0 = vmand %vm345_vm6, %vm395_vm7  ;;  %v3511_v57 = vsel %vm3443_vm5, 1.0, %v3299_v21  ;;  %vm321_vm15 = vcmp.ge.s32.totalorder %v270_v44, %v3376_v18  ;;  %vm371_vm3 = vcmp.lt.s32.totalorder %v270_v44, %v3378_v19  ;;  %v3522_v60 = vsel %vm3464_vm11, 1.0, %v3299_v21 }
  0x1d   : > { %596 = vperm.xlu1 %3144, %v260_v7   ;;  %611 = vperm.xlu0 %3143, %v263_v8   ;;  %vm3499_vm2 = vmand %vm330_vm8, %vm380_vm10  ;;  %vm358_vm5 = vcmp.ge.s32.totalorder %v307_v48, %v3376_v18  ;;  %vm408_vm6 = vcmp.lt.s32.totalorder %v307_v48, %v3378_v19  ;;  %v306_v62 = vadd.s32 320, %v3371_v15  ;;  %vm348_vm7 = vcmp.ge.s32.totalorder %v297_v51, %v3376_v18 }
  0x1e   : > { %vm3526_vm4 = vmand %vm322_vm9, %vm372_vm14  ;;  %vm398_vm8 = vcmp.lt.s32.totalorder %v297_v51, %v3378_v19  ;;  %v276_v63 = vadd.s32 80, %v3371_v15  ;;  %v3020_v0 = vsel %vm3493_vm0, 1.0, %v3299_v21  ;;  %v3007_v1 = vsel %vm3471_vm13, 1.0, %v3299_v21 }
  0x1f   : > { %606 = vperm.xlu2 %3145, %v262_v9   ;;  %vm442_vm10 = vmand %vm344_vm12, %vm394_vm1  ;;  %vm363_vm11 = vcmp.ge.s32.totalorder %v312_v53, %v3376_v18  ;;  %vm413_vm9 = vcmp.lt.s32.totalorder %v312_v53, %v3378_v19  ;;  %v273_v2 = vadd.s32 56, %v3371_v15  ;;  %v3005_v3 = vsel %vm3499_vm2, 1.0, %v3299_v21 }
  0x20   : > { %vm419_vm14 = vmand %vm321_vm15, %vm371_vm3  ;;  %v309_v4 = vadd.s32 344, %v3371_v15  ;;  %vm343_vm0 = vcmp.ge.s32.totalorder %v3419_v36, %v3376_v18  ;;  %vm393_vm12 = vcmp.lt.s32.totalorder %v3419_v36, %v3378_v19  ;;  %v3579_v8 = vsel %vm3526_vm4, 1.0, %v3299_v21 }
  0x21   : > { %vm3559_vm13 = vmand %vm358_vm5, %vm408_vm6  ;;  %v3582_v9 = vsel %vm442_vm10, 1.0, %v3299_v21  ;;  %vm357_vm2 = vcmp.ge.s32.totalorder %v306_v62, %v3376_v18  ;;  %vm327_vm3 = vcmp.ge.s32.totalorder %v276_v63, %v3376_v18  ;;  %vm377_vm5 = vcmp.lt.s32.totalorder %v276_v63, %v3378_v19 }
  0x22   : > { %vm3569_vm1 = vmand %vm348_vm7, %vm398_vm8  ;;  %vm324_vm4 = vcmp.ge.s32.totalorder %v273_v2, %v3376_v18  ;;  %vm374_vm6 = vcmp.lt.s32.totalorder %v273_v2, %v3378_v19  ;;  %vm407_vm7 = vcmp.lt.s32.totalorder %v306_v62, %v3378_v19  ;;  %v291_v13 = vadd.s32 200, %v3371_v15 }
  0x23   : > { %vm3585_vm15 = vmand %vm363_vm11, %vm413_vm9  ;;  %v274_v16 = vadd.s32 64, %v3371_v15  ;;  %vm360_vm8 = vcmp.ge.s32.totalorder %v309_v4, %v3376_v18  ;;  %vm410_vm10 = vcmp.lt.s32.totalorder %v309_v4, %v3378_v19  ;;  %v3603_v17 = vsel %vm3559_vm13, 1.0, %v3299_v21 }
  0x24   : > { %vm441_vm11 = vmand %vm343_vm0, %vm393_vm12  ;;  %v3023_v24 = vsel %vm3569_vm1, 1.0, %v3299_v21  ;;  %v3038_v26 = vsel %vm3585_vm15, 1.0, %v3299_v21  ;;  %v296_v29 = vadd.s32 240, %v3371_v15  ;;  %v310_v32 = vadd.s32 352, %v3371_v15 }
  0x25   : > { %601 = vperm.xlu1 %3144, %v261_v10   ;;  %591 = vperm.xlu0 %3143, %v259_v11   ;;  %v2996_v11 = vsel %vm419_vm14, 1.0, %v3299_v21  ;;  %vm3625_vm9 = vmand %vm327_vm3, %vm377_vm5  ;;  %v272_v35 = vadd.s32 48, %v3371_v15  ;;  %v3655_v36 = vsel %vm441_vm11, 1.0, %v3299_v21  ;;  %vm342_vm1 = vcmp.ge.s32.totalorder %v291_v13, %v3376_v18 }
  0x26   : > { %vm3639_vm14 = vmand %vm324_vm4, %vm374_vm6  ;;  %vm392_vm15 = vcmp.lt.s32.totalorder %v291_v13, %v3378_v19  ;;  %vm325_vm3 = vcmp.ge.s32.totalorder %v274_v16, %v3376_v18  ;;  %vm375_vm5 = vcmp.lt.s32.totalorder %v274_v16, %v3378_v19  ;;  %v308_v38 = vadd.s32 336, %v3371_v15 }
  0x27   : > { %586 = vperm.xlu2 %3145, %v258_v12   ;;  %v269_v12 = vadd.s32 24, %v3371_v15  ;;  %vm3649_vm12 = vmand %vm360_vm8, %vm410_vm10  ;;  %v3002_v43 = vsel %vm3625_vm9, 1.0, %v3299_v21  ;;  %vm347_vm6 = vcmp.ge.s32.totalorder %v296_v29, %v3376_v18  ;;  %vm397_vm8 = vcmp.lt.s32.totalorder %v296_v29, %v3378_v19 }
  0x28   : > { %vm3668_vm4 = vmand %vm357_vm2, %vm407_vm7  ;;  %vm361_vm2 = vcmp.ge.s32.totalorder %v310_v32, %v3376_v18  ;;  %vm411_vm7 = vcmp.lt.s32.totalorder %v310_v32, %v3378_v19  ;;  %v3699_v48 = vadd.s32 312, %v3371_v15  ;;  %v284_v51 = vadd.s32 144, %v3371_v15 }
  0x29   : > { %vm320_vm13 = vcmp.ge.s32.totalorder %v269_v12, %v3376_v18  ;;  %vm370_vm0 = vcmp.lt.s32.totalorder %v269_v12, %v3378_v19  ;;  %vm3694_vm11 = vmand %vm342_vm1, %vm392_vm15  ;;  %v3032_v61 = vsel %vm3668_vm4, 1.0, %v3299_v21  ;;  %v282_v5 = vadd.s32 128, %v3371_v15  ;;  %v751_v12 = vld [vmem:[%s4096_s20 + $0x2a0] sm:$0xff] }
  0x2a   : > { %vm3683_vm10 = vmand %vm320_vm13, %vm370_vm0  ;;  %vm323_vm13 = vcmp.ge.s32.totalorder %v272_v35, %v3376_v18  ;;  %vm373_vm0 = vcmp.lt.s32.totalorder %v272_v35, %v3378_v19  ;;  %v3834_v32 = vsel %vm3694_vm11, 1.0, %v3299_v21  ;;  %v267_v33 = vadd.s32 8, %v3371_v15 }
  0x2b   : > { %vm3705_vm9 = vmand %vm325_vm3, %vm375_vm5  ;;  %vm409_vm3 = vcmp.lt.s32.totalorder %v308_v38, %v3378_v19  ;;  %v3801_v16 = vsel %vm3683_vm10, 1.0, %v3299_v21  ;;  %vm391_vm10 = vcmp.lt.s32.totalorder %v3441_v42, %v3378_v19 }
  0x2c   : > { %vm3721_vm1 = vmand %vm347_vm6, %vm397_vm8  ;;  %vm335_vm6 = vcmp.ge.s32.totalorder %v284_v51, %v3376_v18  ;;  %vm385_vm8 = vcmp.lt.s32.totalorder %v284_v51, %v3378_v19 }
  0x2d   : > { %vm3738_vm5 = vmand %vm361_vm2, %vm411_vm7  ;;  %vm6357_vm7 = vcmp.ge.s32.totalorder %v308_v38, %v3376_v18  ;;  %v3022_v29 = vsel %vm3721_vm1, 1.0, %v3299_v21  ;;  %vm356_vm1 = vcmp.ge.s32.totalorder %v3699_v48, %v3376_v18 }
  0x2e   : > { %vm3759_vm4 = vmand %vm323_vm13, %vm373_vm0  ;;  %vm369_vm0 = vcmp.lt.s32.totalorder %v3429_v39, %v3378_v19 }
  0x2f   : > { %vm3777_vm2 = vmand %vm335_vm6, %vm385_vm8  ;;  %v2998_v35 = vsel %vm3759_vm4, 1.0, %v3299_v21  ;;  %vm6366_vm4 = vcmp.ge.s32.totalorder %v3441_v42, %v3376_v18 }
  0x30   : > { %vm3789_vm13 = vmand %vm6357_vm7, %vm409_vm3 }
  0x69   : > { %v3380_v20 = vpop.permute.xlu2 %581 }
  0x6a   : > { %v3574_v7 = vmul.f32 %v3020_v0, %v3380_v20  ;;  %v3631_v30 = vmul.f32 %v2996_v11, %v3380_v20  ;;  %v283_v0 = vadd.s32 136, %v3371_v15  ;;  %v3771_v11 = vmul.f32 %v3032_v61, %v3380_v20  ;;  %v691_v61 = vld [vmem:[%s4096_s20 + $0xc0] sm:$0xff] }
  0x6c   : > { %vm334_vm8 = vcmp.ge.s32.totalorder %v283_v0, %v3376_v18  ;;  %vm384_vm7 = vcmp.lt.s32.totalorder %v283_v0, %v3378_v19 }
  0x71   : > { %v3387_v25 = vpop.permute.xlu2 %616 }
  0x72   : > { %v3391_v27 = vmul.f32 %v3039_v22, %v3387_v25  ;;  %v630_v41 = vmul.f32 %v3486_v52, %v3387_v25  ;;  %v298_v52 = vadd.s32 256, %v3371_v15 }
  0x74   : > { %1061 = vmatpush.msra.mxu2 %v3391_v27  ;;  %vm349_vm15 = vcmp.ge.s32.totalorder %v298_v52, %v3376_v18  ;;  %vm399_vm6 = vcmp.lt.s32.totalorder %v298_v52, %v3378_v19 }
  0x75   : > { %vm3807_vm3 = vmand %vm349_vm15, %vm399_vm6  ;;  %vm333_vm15 = vcmp.ge.s32.totalorder %v282_v5, %v3376_v18  ;;  %vm383_vm6 = vcmp.lt.s32.totalorder %v282_v5, %v3378_v19 }
  0x79   : > { %v3713_v53 = vpop.permute.xlu2 %606 }
  0x7a   : > { %v3766_v6 = vmul.f32 %v3506_v56, %v3713_v53  ;;  %v628_v10 = vmul.f32 %v3511_v57, %v3713_v53  ;;  %v3035_v57 = vsel %vm3649_vm12, 1.0, %v3299_v21  ;;  %vm3818_vm12 = vmand %vm334_vm8, %vm384_vm7  ;;  %vm405_vm8 = vcmp.lt.s32.totalorder %v3451_v45, %v3378_v19 }
  0x7b   : > { %vm318_vm7 = vcmp.ge.s32.totalorder %v267_v33, %v3376_v18 }
  0x7f   : > { %v3515_v58 = vpop.permute.xlu1 %571  ;;  %v3517_v59 = vpop.permute.xlu0 %561 }
  0x80   : > { %v633_v37 = vmul.f32 %v3456_v46, %v3515_v58  ;;  %v631_v54 = vmul.f32 %v3478_v50, %v3517_v59  ;;  %v288_v50 = vadd.s32 176, %v3371_v15  ;;  %v3928_v0 = vmul.f32 %v3655_v36, %v3515_v58 }
  0x81   : > { %v3881_v44 = vpop.permute.xlu2 %586 }
  0x87   : > { %v3611_v22 = vpop.permute.xlu1 %576  ;;  %v3613_v23 = vpop.permute.xlu0 %566 }
  0x88   : > { %v634_v31 = vmul.f32 %v3007_v1, %v3611_v22  ;;  %v632_v46 = vmul.f32 %v3005_v3, %v3613_v23  ;;  %v2999_v3 = vsel %vm3639_vm14, 1.0, %v3299_v21  ;;  %vm319_vm14 = vcmp.ge.s32.totalorder %v3429_v39, %v3376_v18 }
  0x89   : > { %vm417_vm11 = vmand %vm319_vm14, %vm369_vm0  ;;  %vm355_vm0 = vcmp.ge.s32.totalorder %v3451_v45, %v3376_v18  ;;  %v300_v39 = vadd.s32 272, %v3371_v15  ;;  %v693_v45 = vld [vmem:[%s4096_s20 + $0xd0] sm:$0xff] }
  0x8a   : > { %811 = vmatpush.msra.mxu0 %v634_v31  ;;  %3084 = vmatpush.msra.mxu3 %v634_v31  ;;  %v3036_v31 = vsel %vm3738_vm5, 1.0, %v3299_v21  ;;  %vm406_vm5 = vcmp.lt.s32.totalorder %v3699_v48, %v3378_v19  ;;  %vm3872_vm14 = vmand %vm6366_vm4, %vm391_vm10  ;;  %v2994_v49 = vsel %vm417_vm11, 1.0, %v3299_v21  ;;  %vm368_vm10 = vcmp.lt.s32.totalorder %v267_v33, %v3378_v19 }
  0x8b   : > { %v3016_v52 = vsel %vm3872_vm14, 1.0, %v3299_v21  ;;  %vm3919_vm11 = vmand %vm355_vm0, %vm405_vm8  ;;  %v621_v4 = vmul.f32 %v2994_v49, %v3515_v58  ;;  %v286_v33 = vadd.s32 160, %v3371_v15  ;;  %v679_v49 = vld [vmem:[%s4096_s20 + $0x60] sm:$0xff] }
  0x8c   : > { %812 = vmatpush.msra.mxu0 %v633_v37  ;;  %3085 = vmatpush.msra.mxu3 %v633_v37  ;;  %v289_v37 = vadd.s32 184, %v3371_v15  ;;  %vm3936_vm0 = vmand %vm356_vm1, %vm406_vm5  ;;  %v3949_v48 = vmul.f32 %v3016_v52, %v3517_v59  ;;  %v3030_v13 = vsel %vm3919_vm11, 1.0, %v3299_v21 }
  0x8d   : > { %vm3955_vm1 = vmand %vm318_vm7, %vm368_vm10  ;;  %vm339_vm7 = vcmp.ge.s32.totalorder %v288_v50, %v3376_v18  ;;  %vm389_vm10 = vcmp.lt.s32.totalorder %v288_v50, %v3378_v19 }
  0x8e   : > { %813 = vmatpush.msra.mxu0 %v632_v46  ;;  %3086 = vmatpush.msra.mxu3 %v632_v46  ;;  %vm390_vm4 = vcmp.lt.s32.totalorder %v289_v37, %v3378_v19 }
  0x8f   : > { %v3730_v62 = vpop.permute.xlu1 %596  ;;  %v3732_v63 = vpop.permute.xlu0 %611 }
  0x90   : > { %814 = vmatpush.msra.mxu0 %v631_v54  ;;  %3087 = vmatpush.msra.mxu3 %v631_v54  ;;  %v3747_v1 = vmul.f32 %v3023_v24, %v3730_v62  ;;  %v3750_v2 = vmul.f32 %v3038_v26, %v3732_v63  ;;  %v629_v56 = vmul.f32 %v3002_v43, %v3732_v63  ;;  %v3000_v26 = vsel %vm3705_vm9, 1.0, %v3299_v21  ;;  %vm3837_vm9 = vmand %vm333_vm15, %vm383_vm6 }
  0x91   : > { %v303_v43 = vadd.s32 296, %v3371_v15  ;;  %vm367_vm15 = vcmp.lt.s32.totalorder %v3371_v15, %v3378_v19  ;;  %v626_v51 = vmul.f32 %v2999_v3, %v3730_v62  ;;  %vm340_vm6 = vcmp.ge.s32.totalorder %v289_v37, %v3376_v18 }
  0x92   : > { %815 = vmatpush.msra.mxu0 %v630_v41  ;;  %3088 = vmatpush.msra.mxu3 %v630_v41  ;;  %v3034_v41 = vsel %vm3789_vm13, 1.0, %v3299_v21  ;;  %vm317_vm13 = vcmp.ge.s32.totalorder %v3371_v15, %v3376_v18  ;;  %v3908_v54 = vmul.f32 %v3522_v60, %v3881_v44  ;;  %v3911_v55 = vmul.f32 %v3035_v57, %v3730_v62  ;;  %vm3973_vm5 = vmand %vm340_vm6, %vm390_vm4 }
  0x93   : > { %936 = vmatpush.msra.mxu1 %v3747_v1  ;;  %1062 = vmatpush.msra.mxu2 %v3750_v2  ;;  %vm354_vm14 = vcmp.ge.s32.totalorder %v303_v43, %v3376_v18  ;;  %vm404_vm8 = vcmp.lt.s32.totalorder %v303_v43, %v3378_v19  ;;  %v302_v3 = vadd.s32 288, %v3371_v15  ;;  %v3964_v57 = vmul.f32 %v3603_v17, %v3881_v44  ;;  %v676_v43 = vld [vmem:[%s4096_s20 + $0x48] sm:$0xff] }
  0x94   : > { %816 = vmatpush.msra.mxu0 %v629_v56  ;;  %3089 = vmatpush.msra.mxu3 %v629_v56  ;;  %v624_v56 = vmul.f32 %v3579_v8, %v3881_v44  ;;  %v301_v8 = vadd.s32 280, %v3371_v15  ;;  %v3987_v17 = vmul.f32 %v3582_v9, %v3611_v22  ;;  %vm4001_vm6 = vmand %vm354_vm14, %vm404_vm8  ;;  %v3015_v37 = vsel %vm3973_vm5, 1.0, %v3299_v21 }
  0x95   : > { %1063 = vmatpush.msra.mxu2 %v3766_v6  ;;  %vm353_vm4 = vcmp.ge.s32.totalorder %v302_v3, %v3376_v18  ;;  %vm403_vm11 = vcmp.lt.s32.totalorder %v302_v3, %v3378_v19  ;;  %vm4022_vm14 = vmand %vm317_vm13, %vm367_vm15 }
  0x96   : > { %817 = vmatpush.msra.mxu0 %v628_v10  ;;  %3090 = vmatpush.msra.mxu3 %v628_v10  ;;  %v287_v10 = vadd.s32 168, %v3371_v15  ;;  %vm4036_vm8 = vmand %vm339_vm7, %vm389_vm10  ;;  %vm352_vm15 = vcmp.ge.s32.totalorder %v301_v8, %v3376_v18  ;;  %vm402_vm5 = vcmp.lt.s32.totalorder %v301_v8, %v3378_v19  ;;  %vm337_vm7 = vcmp.ge.s32.totalorder %v286_v33, %v3376_v18 }
  0x97   : > { %v3859_v38 = vpop.permute.xlu1 %601  ;;  %v3861_v40 = vpop.permute.xlu0 %591  ;;  %vm387_vm10 = vcmp.lt.s32.totalorder %v286_v33, %v3378_v19  ;;  %v3014_v52 = vsel %vm4036_vm8, 1.0, %v3299_v21 }
  0x98   : > { %v627_v46 = vmul.f32 %v3000_v26, %v3859_v38  ;;  %v3885_v47 = vmul.f32 %v3022_v29, %v3861_v40  ;;  %v3888_v42 = vmul.f32 %v3036_v31, %v3859_v38  ;;  %v625_v60 = vmul.f32 %v2998_v35, %v3861_v40  ;;  %v748_v26 = vld [vmem:[%s4096_s20 + $0x288] sm:$0xff] }
  0x99   : > { %v3945_v36 = vmul.f32 %v3034_v41, %v3861_v40  ;;  %v3031_v29 = vsel %vm3936_vm0, 1.0, %v3299_v21  ;;  %v2993_v31 = vsel %vm3955_vm1, 1.0, %v3299_v21  ;;  %v4011_v35 = vmul.f32 %v3030_v13, %v3515_v58  ;;  %vm4057_vm1 = vmand %vm353_vm4, %vm403_vm11 }
  0x9a   : > { %818 = vmatpush.msra.mxu0 %v627_v46  ;;  %3091 = vmatpush.msra.mxu3 %v627_v46  ;;  %vm338_vm0 = vcmp.ge.s32.totalorder %v287_v10, %v3376_v18  ;;  %v622_v58 = vmul.f32 %v3801_v16, %v3611_v22  ;;  %vm388_vm13 = vcmp.lt.s32.totalorder %v287_v10, %v3378_v19  ;;  %v285_v46 = vadd.s32 152, %v3371_v15  ;;  %v697_v10 = vld [vmem:[%s4096_s20 + $0xf0] sm:$0xff] }
  0x9b   : > { %937 = vmatpush.msra.mxu1 %v3885_v47  ;;  %1064 = vmatpush.msra.mxu2 %v3888_v42  ;;  %v4051_v16 = vmul.f32 %v3031_v29, %v3611_v22  ;;  %v3029_v22 = vsel %vm4001_vm6, 1.0, %v3299_v21  ;;  %vm4083_vm6 = vmand %vm338_vm0, %vm388_vm13  ;;  %vm351_vm4 = vcmp.ge.s32.totalorder %v300_v39, %v3376_v18  ;;  %vm401_vm11 = vcmp.lt.s32.totalorder %v300_v39, %v3378_v19  ;;  %v667_v29 = vld [vmem:[%s4096_s20] sm:$0xff] }
  0x9c   : > { %819 = vmatpush.msra.mxu0 %v626_v51  ;;  %3092 = vmatpush.msra.mxu3 %v626_v51  ;;  %v299_v51 = vadd.s32 264, %v3371_v15  ;;  %v2992_v15 = vsel %vm4022_vm14, 1.0, %v3299_v21  ;;  %v620_v50 = vmul.f32 %v2993_v31, %v3613_v23  ;;  %vm4102_vm14 = vmand %vm352_vm15, %vm402_vm5  ;;  %vm336_vm0 = vcmp.ge.s32.totalorder %v285_v46, %v3376_v18 }
  0x9d   : > { %938 = vmatpush.msra.mxu1 %v3908_v54  ;;  %1065 = vmatpush.msra.mxu2 %v3911_v55  ;;  %vm386_vm8 = vcmp.lt.s32.totalorder %v285_v46, %v3378_v19  ;;  %v4111_v3 = vmul.f32 %v3029_v22, %v3613_v23  ;;  %vm4117_vm13 = vmand %vm337_vm7, %vm387_vm10  ;;  %v619_v5 = vmul.f32 %v2992_v15, %v3517_v59  ;;  %v3027_v8 = vsel %vm4102_vm14, 1.0, %v3299_v21  ;;  %v760_v46 = vld [vmem:[%s4096_s20 + $0x2e8] sm:$0xff]  ;;  %v681_v22 = vld [vmem:[%s4096_s20 + $0x70] sm:$0xff] }
  0x9e   : > { %820 = vmatpush.msra.mxu0 %v625_v60  ;;  %3093 = vmatpush.msra.mxu3 %v625_v60  ;;  %v3028_v60 = vsel %vm4057_vm1, 1.0, %v3299_v21  ;;  %vm350_vm15 = vcmp.ge.s32.totalorder %v299_v51, %v3376_v18  ;;  %vm400_vm1 = vcmp.lt.s32.totalorder %v299_v51, %v3378_v19  ;;  %vm4131_vm5 = vmand %vm351_vm4, %vm401_vm11  ;;  %v3012_v31 = vsel %vm4117_vm13, 1.0, %v3299_v21  ;;  %v677_v51 = vld [vmem:[%s4096_s20 + $0x50] sm:$0xff]  ;;  %v682_v15 = vld [vmem:[%s4096_s20 + $0x78] sm:$0xff] }
  0x9f   : > { %939 = vmatpush.msra.mxu1 %v3574_v7  ;;  %1066 = vmatpush.msra.mxu2 %v3945_v36  ;;  %v4141_v13 = vmul.f32 %v3028_v60, %v3517_v59  ;;  %vm434_vm7 = vmand %vm336_vm0, %vm386_vm8  ;;  %v3026_v9 = vsel %vm4131_vm5, 1.0, %v3299_v21  ;;  %v4166_v33 = vmul.f32 %v3027_v8, %v3387_v25  ;;  %v639_v18 = vmul.f32 %v3012_v31, %v3859_v38  ;;  %v749_v60 = vld [vmem:[%s4096_s20 + $0x290] sm:$0xff]  ;;  %v700_v8 = vld [vmem:[%s4096_s20 + $0x108] sm:$0xff] }
  0xa0   : > { %821 = vmatpush.msra.mxu0 %v624_v56  ;;  %3094 = vmatpush.msra.mxu3 %v624_v56  ;;  %v4138_v56 = vmul.f32 %v3014_v52, %v3732_v63  ;;  %vm448_vm10 = vmand %vm350_vm15, %vm400_vm1  ;;  %v4174_v41 = vmul.f32 %v3026_v9, %v3732_v63  ;;  %v3024_v39 = vsel %vm3807_vm3, 1.0, %v3299_v21  ;;  %v690_v52 = vld [vmem:[%s4096_s20 + $0xb8] sm:$0xff]  ;;  %v703_v9 = vld [vmem:[%s4096_s20 + $0x120] sm:$0xff]  ;;  %vm1871_vm3 = vcmp.eq.s32.totalorder %v3369_v14, 3 }
  0xa1   : > { %940 = vmatpush.msra.mxu1 %v3987_v17  ;;  %1067 = vmatpush.msra.mxu2 %v3964_v57  ;;  %v3025_v19 = vsel %vm448_vm10, 1.0, %v3299_v21  ;;  %v4196_v24 = vmul.f32 %v3024_v39, %v3859_v38  ;;  %v668_v38 = vld [vmem:[%s4096_s20 + $0x8] sm:$0xff]  ;;  %v758_v31 = vld [vmem:[%s4096_s20 + $0x2d8] sm:$0xff]  ;;  %v709_v39 = vld [vmem:[%s4096_s20 + $0x150] sm:$0xff]  ;;  %vm1910_vm11 = vcmask 31744   ;;  %vm2242_vm14 = vcmp.eq.s32.totalorder %v3369_v14, 1 }
  0xa2   : > { %822 = vmatpush.msra.mxu0 %v3631_v30  ;;  %3095 = vmatpush.msra.mxu3 %v3631_v30  ;;  %v4048_v30 = vmul.f32 %v3834_v32, %v3613_v23  ;;  %v4064_v32 = vmul.f32 %v3015_v37, %v3387_v25  ;;  %v3013_v23 = vsel %vm4083_vm6, 1.0, %v3299_v21  ;;  %v3011_v37 = vsel %vm434_vm7, 1.0, %v3299_v21 }
  0xa3   : > { %941 = vmatpush.msra.mxu1 %v3928_v0  ;;  %1068 = vmatpush.msra.mxu2 %v3771_v11  ;;  %v640_v59 = vmul.f32 %v3013_v23, %v3713_v53  ;;  %v3010_v25 = vsel %vm3777_vm2, 1.0, %v3299_v21  ;;  %v696_v23 = vld [vmem:[%s4096_s20 + $0xe8] sm:$0xff]  ;;  %vm2021_vm2 = vcmp.eq.s32.totalorder %v3369_v14, 2  ;;  %vm2463_vm1 = vcmp.eq.s32.totalorder %v3369_v14, 0 }
  0xa4   : > { %823 = vmatpush.msra.mxu0 %v622_v58  ;;  %3096 = vmatpush.msra.mxu3 %v622_v58  ;;  %v4186_v58 = vmul.f32 %v3025_v19, %v3713_v53  ;;  %v637_v63 = vmul.f32 %v3010_v25, %v3861_v40  ;;  %v3008_v53 = vsel %vm3837_vm9, 1.0, %v3299_v21  ;;  %v670_v40 = vld [vmem:[%s4096_s20 + $0x18] sm:$0xff]  ;;  %v764_v25 = vld [vmem:[%s4096_s20 + $0x308] sm:$0xff] }
  0xa5   : > { %942 = vmatpush.msra.mxu1 %v4048_v30  ;;  %1069 = vmatpush.msra.mxu2 %v4051_v16  ;;  %v706_v19 = vld [vmem:[%s4096_s20 + $0x138] sm:$0xff] }
  0xa6   : > { %824 = vmatpush.msra.mxu0 %v621_v4  ;;  %3097 = vmatpush.msra.mxu3 %v621_v4  ;;  %v692_v4 = vld [vmem:[%s4096_s20 + $0xc8] sm:$0xff] }
  0xa7   : > { %943 = vmatpush.msra.mxu1 %v3949_v48  ;;  %1070 = vmatpush.msra.mxu2 %v4011_v35 }
  0xa8   : > { %825 = vmatpush.msra.mxu0 %v620_v50  ;;  %3098 = vmatpush.msra.mxu3 %v620_v50  ;;  %v689_v50 = vld [vmem:[%s4096_s20 + $0xb0] sm:$0xff] }
  0xa9   : > { %944 = vmatpush.msra.mxu1 %v4064_v32  ;;  %1071 = vmatpush.msra.mxu2 %v4111_v3 }
  0xaa   : > { %826 = vmatpush.msra.mxu0 %v619_v5  ;;  %3099 = vmatpush.msra.mxu3 %v619_v5  ;;  %v752_v5 = vld [vmem:[%s4096_s20 + $0x2a8] sm:$0xff] }
  0xab   : > { %945 = vmatpush.msra.mxu1 %v4138_v56  ;;  %1072 = vmatpush.msra.mxu2 %v4141_v13 }
  0xac   : > { %908 = vmatmul.f32.vlgmr.msra.gmra.mxu3 %v748_v26  ;;  %827 = vmatmul.f32.vlgmr.msra.gmra.mxu0 %v667_v29  ;;  %v699_v26 = vld [vmem:[%s4096_s20 + $0x100] sm:$0xff]  ;;  %v698_v29 = vld [vmem:[%s4096_s20 + $0xf8] sm:$0xff] }
  0xad   : > { %3100 = vmatpush.msrb.mxu3 %v3747_v1  ;;  %946 = vmatpush.msra.mxu1 %v640_v59  ;;  %v638_v1 = vmul.f32 %v3011_v37, %v3730_v62  ;;  %v3009_v62 = vsel %vm3818_vm12, 1.0, %v3299_v21  ;;  %v761_v37 = vld [vmem:[%s4096_s20 + $0x2f0] sm:$0xff] }
  0xae   : > { %1073 = vmatpush.msra.mxu2 %v4166_v33  ;;  %v636_v28 = vmul.f32 %v3009_v62, %v3881_v44  ;;  %v672_v44 = vld [vmem:[%s4096_s20 + $0x28] sm:$0xff]  ;;  %v710_v62 = vld [vmem:[%s4096_s20 + $0x158] sm:$0xff] }
  0xaf   : > { %3101 = vmatpush.msrb.mxu3 %v3885_v47  ;;  %947 = vmatpush.msra.mxu1 %v639_v18  ;;  %v669_v47 = vld [vmem:[%s4096_s20 + $0x10] sm:$0xff] }
  0xb0   : > { %1074 = vmatpush.msra.mxu2 %v4174_v41 }
  0xb1   : > { %3102 = vmatpush.msrb.mxu3 %v3908_v54  ;;  %948 = vmatpush.msra.mxu1 %v638_v1  ;;  %v673_v54 = vld [vmem:[%s4096_s20 + $0x30] sm:$0xff] }
  0xb2   : > { %1075 = vmatpush.msra.mxu2 %v4186_v58 }
  0xb3   : > { %3103 = vmatpush.msrb.mxu3 %v3574_v7  ;;  %949 = vmatpush.msra.mxu1 %v637_v63  ;;  %v635_v7 = vmul.f32 %v3008_v53, %v3380_v20  ;;  %v671_v20 = vld [vmem:[%s4096_s20 + $0x20] sm:$0xff] }
  0xb4   : > { %1076 = vmatpush.msra.mxu2 %v4196_v24  ;;  %911 = vmatmul.f32.gmra.mxu3 %v751_v12  ;;  %v711_v12 = vld [vmem:[%s4096_s20 + $0x160] sm:$0xff] }
  0xb5   : > { %3104 = vmatpush.msrb.mxu3 %v3987_v17  ;;  %1077 = vmatmul.f32.vlgmr.msra.gmra.mxu2 %v669_v47  ;;  %v675_v17 = vld [vmem:[%s4096_s20 + $0x40] sm:$0xff]  ;;  %v770_v47 = vld [vmem:[%s4096_s20 + $0x338] sm:$0xff] }
  0xb6   : > { %950 = vmatpush.msra.mxu1 %v636_v28  ;;  %830 = vmatmul.f32.gmra.mxu0 %v670_v40  ;;  %v775_v40 = vld [vmem:[%s4290_s24] sm:$0xff] }
  0xb7   : > { %3105 = vmatpush.msrb.mxu3 %v3928_v0  ;;  %v757_v0 = vld [vmem:[%s4096_s20 + $0x2d0] sm:$0xff] }
  0xb8   : > { %951 = vmatpush.msra.mxu1 %v635_v7 }
  0xb9   : > { %3106 = vmatpush.msrb.mxu3 %v4048_v30  ;;  %952 = vmatmul.f32.vlgmr.msra.gmra.mxu1 %v668_v38  ;;  %v678_v30 = vld [vmem:[%s4096_s20 + $0x58] sm:$0xff] }
  0xbb   : > { %3107 = vmatpush.msrb.mxu3 %v3949_v48  ;;  %v674_v48 = vld [vmem:[%s4096_s20 + $0x38] sm:$0xff] }
  0xbc   : > { %914 = vmatmul.f32.gmra.mxu3 %v754_v34 }
  0xbd   : > { %3108 = vmatpush.msrb.mxu3 %v4064_v32  ;;  %1080 = vmatmul.f32.gmra.mxu2 %v672_v44  ;;  %v763_v32 = vld [vmem:[%s4096_s20 + $0x300] sm:$0xff]  ;;  %v712_v44 = vld [vmem:[%s4096_s20 + $0x168] sm:$0xff] }
  0xbe   : > { %833 = vmatmul.f32.gmra.mxu0 %v673_v54  ;;  %v713_v54 = vld [vmem:[%s4096_s20 + $0x170] sm:$0xff] }
  0xbf   : > { %3109 = vmatpush.msrb.mxu3 %v4138_v56  ;;  %v695_v56 = vld [vmem:[%s4096_s20 + $0xe0] sm:$0xff] }
  0xc1   : > { %3110 = vmatpush.msrb.mxu3 %v640_v59  ;;  %955 = vmatmul.f32.gmra.mxu1 %v671_v20  ;;  %v702_v59 = vld [vmem:[%s4096_s20 + $0x118] sm:$0xff] }
  0xc3   : > { %3111 = vmatpush.msrb.mxu3 %v639_v18  ;;  %v705_v18 = vld [vmem:[%s4096_s20 + $0x130] sm:$0xff] }
  0xc4   : > { %917 = vmatmul.f32.gmra.mxu3 %v757_v0 }
  0xc5   : > { %3112 = vmatpush.msrb.mxu3 %v638_v1  ;;  %1083 = vmatmul.f32.gmra.mxu2 %v675_v17  ;;  %v708_v1 = vld [vmem:[%s4096_s20 + $0x148] sm:$0xff] }
  0xc6   : > { %836 = vmatmul.f32.gmra.mxu0 %v676_v43 }
  0xc7   : > { %3113 = vmatpush.msrb.mxu3 %v637_v63  ;;  %v767_v63 = vld [vmem:[%s4096_s20 + $0x320] sm:$0xff] }
  0xc9   : > { %3114 = vmatpush.msrb.mxu3 %v636_v28  ;;  %958 = vmatmul.f32.gmra.mxu1 %v674_v48  ;;  %v773_v28 = vld [vmem:[%s4096_s20 + $0x350] sm:$0xff]  ;;  %v776_v48 = vld [vmem:[%s4290_s24 + $0x8] sm:$0xff] }
  0xcb   : > { %3115 = vmatpush.msrb.mxu3 %v635_v7  ;;  %v714_v7 = vld [vmem:[%s4096_s20 + $0x178] sm:$0xff] }
  0xcc   : > { %920 = vmatmul.f32.gmra.mxu3 %v760_v46 }
  0xcd   : > { %3116 = vmatpush.msra.mxu3 %v3391_v27  ;;  %1086 = vmatmul.f32.gmra.mxu2 %v678_v30  ;;  %v680_v27 = vld [vmem:[%s4096_s20 + $0x68] sm:$0xff]  ;;  %v750_v30 = vld [vmem:[%s4096_s20 + $0x298] sm:$0xff] }
  0xce   : > { %839 = vmatmul.f32.gmra.mxu0 %v679_v49  ;;  %v717_v49 = vld [vmem:[%s4096_s20 + $0x190] sm:$0xff] }
  0xcf   : > { %3117 = vmatpush.msra.mxu3 %v3750_v2  ;;  %v766_v2 = vld [vmem:[%s4096_s20 + $0x318] sm:$0xff] }
  0xd1   : > { %3118 = vmatpush.msra.mxu3 %v3766_v6  ;;  %961 = vmatmul.f32.gmra.mxu1 %v677_v51  ;;  %v684_v6 = vld [vmem:[%s4096_s20 + $0x88] sm:$0xff] }
  0xd3   : > { %3119 = vmatpush.msra.mxu3 %v3888_v42  ;;  %v685_v42 = vld [vmem:[%s4096_s20 + $0x90] sm:$0xff] }
  0xd4   : > { %923 = vmatmul.f32.gmra.mxu3 %v763_v32 }
  0xd5   : > { %3120 = vmatpush.msra.mxu3 %v3911_v55  ;;  %1089 = vmatmul.f32.gmra.mxu2 %v681_v22  ;;  %v683_v55 = vld [vmem:[%s4096_s20 + $0x80] sm:$0xff] }
  0xd6   : > { %842 = vmatmul.f32.gmra.mxu0 %v682_v15  ;;  %v715_v15 = vld [vmem:[%s4096_s20 + $0x180] sm:$0xff] }
  0xd7   : > { %3121 = vmatpush.msra.mxu3 %v3945_v36  ;;  %v687_v36 = vld [vmem:[%s4096_s20 + $0xa0] sm:$0xff] }
  0xd9   : > { %3122 = vmatpush.msra.mxu3 %v3964_v57  ;;  %964 = vmatmul.f32.gmra.mxu1 %v680_v27  ;;  %v688_v57 = vld [vmem:[%s4096_s20 + $0xa8] sm:$0xff] }
  0xda   : > { %v716_v27 = vld [vmem:[%s4096_s20 + $0x188] sm:$0xff] }
  0xdb   : > { %3123 = vmatpush.msra.mxu3 %v3771_v11  ;;  %v769_v11 = vld [vmem:[%s4096_s20 + $0x330] sm:$0xff] }
  0xdc   : > { %926 = vmatmul.f32.gmra.mxu3 %v766_v2 }
  0xdd   : > { %3124 = vmatpush.msra.mxu3 %v4051_v16  ;;  %1092 = vmatmul.f32.gmra.mxu2 %v684_v6  ;;  %v772_v16 = vld [vmem:[%s4096_s20 + $0x348] sm:$0xff] }
  0xde   : > { %845 = vmatmul.f32.gmra.mxu0 %v685_v42 }
  0xdf   : > { %3125 = vmatpush.msra.mxu3 %v4011_v35  ;;  %v686_v35 = vld [vmem:[%s4096_s20 + $0x98] sm:$0xff] }
  0xe1   : > { %3126 = vmatpush.msra.mxu3 %v4111_v3  ;;  %967 = vmatmul.f32.gmra.mxu1 %v683_v55  ;;  %v694_v3 = vld [vmem:[%s4096_s20 + $0xd8] sm:$0xff] }
  0xe3   : > { %3127 = vmatpush.msra.mxu3 %v4141_v13  ;;  %v755_v13 = vld [vmem:[%s4096_s20 + $0x2c0] sm:$0xff] }
  0xe4   : > { %929 = vmatmul.f32.gmra.mxu3 %v769_v11  ;;  %v777_v11 = vld [vmem:[%s4290_s24 + $0x10] sm:$0xff] }
  0xe5   : > { %3128 = vmatpush.msra.mxu3 %v4166_v33  ;;  %1095 = vmatmul.f32.gmra.mxu2 %v687_v36  ;;  %v701_v33 = vld [vmem:[%s4096_s20 + $0x110] sm:$0xff] }
  0xe6   : > { %848 = vmatmul.f32.gmra.mxu0 %v688_v57  ;;  %v753_v57 = vld [vmem:[%s4096_s20 + $0x2b0] sm:$0xff] }
  0xe7   : > { %3129 = vmatpush.msra.mxu3 %v4174_v41  ;;  %v704_v41 = vld [vmem:[%s4096_s20 + $0x128] sm:$0xff] }
  0xe9   : > { %3130 = vmatpush.msra.mxu3 %v4186_v58  ;;  %970 = vmatmul.f32.gmra.mxu1 %v686_v35  ;;  %v707_v58 = vld [vmem:[%s4096_s20 + $0x140] sm:$0xff]  ;;  %v720_v35 = vld [vmem:[%s4096_s20 + $0x1a8] sm:$0xff] }
  0xeb   : > { %3131 = vmatpush.msra.mxu3 %v4196_v24 }
  0xec   : > { %932 = vmatmul.f32.gmra.mxu3 %v772_v16 }
  0xed   : > { %1098 = vmatmul.f32.gmra.mxu2 %v690_v52 }
  0xee   : > { %851 = vmatmul.f32.gmra.mxu0 %v691_v61 }
  0xf1   : > { %973 = vmatmul.f32.gmra.mxu1 %v689_v50 }
  0xf4   : > { %1033 = vmatmul.f32.vlgmr.msrb.gmra.mxu3 %v749_v60 }
  0xf5   : > { %1101 = vmatmul.f32.gmra.mxu2 %v693_v45  ;;  %v718_v45 = vld [vmem:[%s4096_s20 + $0x198] sm:$0xff] }
  0xf6   : > { %854 = vmatmul.f32.gmra.mxu0 %v694_v3 }
  0xf9   : > { %976 = vmatmul.f32.gmra.mxu1 %v692_v4  ;;  %v719_v4 = vld [vmem:[%s4096_s20 + $0x1a0] sm:$0xff] }
  0xfc   : > { %1036 = vmatmul.f32.gmra.mxu3 %v752_v5 }
  0xfd   : > { %1104 = vmatmul.f32.gmra.mxu2 %v696_v23 }
  0xfe   : > { %857 = vmatmul.f32.gmra.mxu0 %v697_v10 }
 0x101   : > { %979 = vmatmul.f32.gmra.mxu1 %v695_v56  ;;  %v778_v56 = vld [vmem:[%s4290_s24 + $0x18] sm:$0xff] }
 0x104   : > { %1039 = vmatmul.f32.gmra.mxu3 %v755_v13 }
 0x105   : > { %1107 = vmatmul.f32.gmra.mxu2 %v699_v26  ;;  %v756_v26 = vld [vmem:[%s4096_s20 + $0x2c8] sm:$0xff] }
 0x106   : > { %860 = vmatmul.f32.gmra.mxu0 %v700_v8 }
 0x109   : > { %982 = vmatmul.f32.gmra.mxu1 %v698_v29 }
 0x10c   : > { %1042 = vmatmul.f32.gmra.mxu3 %v758_v31 }
 0x10d   : > { %1110 = vmatmul.f32.gmra.mxu2 %v702_v59 }
 0x10e   : > { %863 = vmatmul.f32.gmra.mxu0 %v703_v9 }
 0x111   : > { %985 = vmatmul.f32.gmra.mxu1 %v701_v33 }
 0x114   : > { %1045 = vmatmul.f32.gmra.mxu3 %v761_v37 }
 0x115   : > { %1113 = vmatmul.f32.gmra.mxu2 %v705_v18 }
 0x116   : > { %866 = vmatmul.f32.gmra.mxu0 %v706_v19 }
 0x119   : > { %988 = vmatmul.f32.gmra.mxu1 %v704_v41 }
 0x11c   : > { %1048 = vmatmul.f32.gmra.mxu3 %v764_v25 }
 0x11d   : > { %1116 = vmatmul.f32.gmra.mxu2 %v708_v1 }
 0x11e   : > { %869 = vmatmul.f32.gmra.mxu0 %v709_v39  ;;  %v779_v39 = vld [vmem:[%s4290_s24 + $0x20] sm:$0xff] }
 0x121   : > { %991 = vmatmul.f32.gmra.mxu1 %v707_v58 }
 0x124   : > { %1051 = vmatmul.f32.gmra.mxu3 %v767_v63 }
 0x125   : > { %1119 = vmatmul.f32.gmra.mxu2 %v711_v12 }
 0x126   : > { %872 = vmatmul.f32.gmra.mxu0 %v712_v44 }
 0x129   : > { %v828_v24 = vpop.f32.mrf.mxu0  ;;  %994 = vmatmul.f32.gmra.mxu1 %v710_v62 }
 0x12a   : > { %v829_v38 = vadd.f32 %v828_v24, %v775_v40  ;;  %v759_v24 = vld [vmem:[%s4096_s20 + $0x2e0] sm:$0xff] }
 0x12c   : > { %1054 = vmatmul.f32.gmra.mxu3 %v770_v47  ;;  %v723_v47 = vld [vmem:[%s4096_s20 + $0x1c0] sm:$0xff] }
 0x12d   : > { %1122 = vmatmul.f32.gmra.mxu2 %v714_v7 }
 0x12e   : > { %875 = vmatmul.f32.gmra.mxu0 %v715_v15 }
 0x12f   : > { %v4292_v53 = vpop.f32.mrf.mxu3 }
 0x131   : > { %997 = vmatmul.f32.gmra.mxu1 %v713_v54 }
 0x133   : > { %v831_v34 = vpop.f32.mrf.mxu0 }
 0x134   : > { %1057 = vmatmul.f32.gmra.mxu3 %v773_v28  ;;  %v832_v32 = vadd.f32 %v831_v34, %v776_v48  ;;  %v721_v48 = vld [vmem:[%s4096_s20 + $0x1b0] sm:$0xff] }
 0x135   : > { %1125 = vmatmul.f32.gmra.mxu2 %v717_v49 }
 0x136   : > { %v953_v20 = vpop.f32.mrf.mxu1  ;;  %878 = vmatmul.f32.gmra.mxu0 %v718_v45  ;;  %v726_v45 = vld [vmem:[%s4096_s20 + $0x1d8] sm:$0xff] }
 0x137   : > { %v954_v0 = vadd.f32 %v953_v20, %v829_v38  ;;  %v4299_v17 = vpop.f32.mrf.mxu3 }
 0x138   : > { %v1078_v43 = vpop.f32.mrf.mxu2 }
 0x139   : > { %v1079_v46 = vadd.f32 %v1078_v43, %v954_v0  ;;  %1000 = vmatmul.f32.gmra.mxu1 %v716_v27  ;;  %v4334_v0 = vsel %vm2021_vm2, 1.0, %v3299_v21  ;;  %v4337_v43 = vsel %vm1871_vm3, 1.0, %v3299_v21 }
 0x13b   : > { %v3040_v51 = vmul.f32 -1.442695, %v1079_v46  ;;  %v834_v22 = vpop.f32.mrf.mxu0 }
 0x13c   : > { %1158 = vmatmul.f32.vlgmr.msra.gmra.mxu3 %v750_v30  ;;  %v835_v61 = vadd.f32 %v834_v22, %v777_v11  ;;  %v780_v11 = vld [vmem:[%s4290_s24 + $0x28] sm:$0xff] }
 0x13d   : > { %3146 = vpow2.f32 %v3040_v51  ;;  %1128 = vmatmul.f32.gmra.mxu2 %v720_v35 }
 0x13e   : > { %v956_v2 = vpop.f32.mrf.mxu1  ;;  %881 = vmatmul.f32.gmra.mxu0 %v721_v48 }
 0x13f   : > { %v957_v6 = vadd.f32 %v956_v2, %v832_v32  ;;  %v4306_v42 = vpop.f32.mrf.mxu3  ;;  %v722_v32 = vld [vmem:[%s4096_s20 + $0x1b8] sm:$0xff] }
 0x140   : > { %v1081_v55 = vpop.f32.mrf.mxu2 }
 0x141   : > { %v1082_v36 = vadd.f32 %v1081_v55, %v957_v6  ;;  %1003 = vmatmul.f32.gmra.mxu1 %v719_v4 }
 0x143   : > { %v3147_v16 = vpop.eup %3146  ;;  %v3041_v52 = vmul.f32 -1.442695, %v1082_v36  ;;  %v837_v50 = vpop.f32.mrf.mxu0 }
 0x144   : > { %v1294_v60 = vadd.f32 1.0, %v3147_v16  ;;  %1161 = vmatmul.f32.gmra.mxu3 %v753_v57  ;;  %v838_v31 = vadd.f32 %v837_v50, %v778_v56 }
 0x145   : > { %3148 = vpow2.f32 %v3041_v52  ;;  %1131 = vmatmul.f32.gmra.mxu2 %v723_v47  ;;  %v762_v52 = vld [vmem:[%s4096_s20 + $0x2f8] sm:$0xff] }
 0x146   : > { %3150 = vrcp.f32 %v1294_v60  ;;  %v959_v3 = vpop.f32.mrf.mxu1  ;;  %v1339_v58 = vand.u32 2147483647, %v1294_v60  ;;  %v1341_v63 = vand.u32 2147483648, %v1294_v60  ;;  %vm1335_vm9 = vweird.f32 %v1294_v60 }
 0x147   : > { %v960_v5 = vadd.f32 %v959_v3, %v835_v61  ;;  %v4313_v23 = vpop.f32.mrf.mxu3 }
 0x148   : > { %v1084_v10 = vpop.f32.mrf.mxu2  ;;  %v1342_v20 = vor.u32 1.1754944e-38, %v1341_v63  ;;  %vm1340_vm4 = vcmp.eq.f32.partialorder %v1339_v58, 8.507059e+37 }
 0x149   : > { %v1085_v13 = vadd.f32 %v1084_v10, %v960_v5  ;;  %1006 = vmatmul.f32.gmra.mxu1 %v722_v32 }
 0x14b   : > { %v3149_v8 = vpop.eup %3148  ;;  %v3042_v29 = vmul.f32 -1.442695, %v1085_v13  ;;  %v840_v59 = vpop.f32.mrf.mxu0 }
 0x14c   : > { %v3151_v9 = vpop.eup %3150  ;;  %v4317_v33 = vadd.f32 1.0, %v3149_v8  ;;  %1164 = vmatmul.f32.gmra.mxu3 %v756_v26  ;;  %v841_v7 = vadd.f32 %v840_v59, %v779_v39  ;;  %v724_v8 = vld [vmem:[%s4096_s20 + $0x1c8] sm:$0xff] }
 0x14d   : > { %v1331_v37 = vmul.f32 %v3151_v9, %v1294_v60  ;;  %3152 = vpow2.f32 %v3042_v29  ;;  %vm1336_vm12 = vweird.f32 %v3151_v9  ;;  %v4364_v60 = vsel %vm2242_vm14, 1.0, %v3299_v21  ;;  %1134 = vmatmul.f32.gmra.mxu2 %v726_v45  ;;  %884 = vmatmul.f32.gmra.mxu0 %v724_v8  ;;  %v782_v45 = vld [vmem:[%s4290_s24 + $0x38] sm:$0xff] }
 0x14e   : > { %3154 = vrcp.f32 %v4317_v33  ;;  %v962_v18 = vpop.f32.mrf.mxu1  ;;  %vm1337_vm6 = vmor %vm1335_vm9, %vm1336_vm12  ;;  %v1356_v16 = vand.u32 2147483648, %v4317_v33  ;;  %v1354_v50 = vand.u32 2147483647, %v4317_v33  ;;  %vm1350_vm8 = vweird.f32 %v4317_v33 }
 0x14f   : > { %v963_v19 = vadd.f32 %v962_v18, %v838_v31  ;;  %v1332_v41 = vsub.f32 1.0, %v1331_v37  ;;  %v4320_v25 = vpop.f32.mrf.mxu3  ;;  %v725_v37 = vld [vmem:[%s4096_s20 + $0x1d0] sm:$0xff] }
 0x150   : > { %v1087_v1 = vpop.f32.mrf.mxu2  ;;  %v1357_v31 = vor.u32 1.1754944e-38, %v1356_v16  ;;  %vm1355_vm15 = vcmp.eq.f32.partialorder %v1354_v50, 8.507059e+37 }
 0x151   : > { %v1088_v12 = vadd.f32 %v1087_v1, %v963_v19  ;;  %v1333_v62 = vmul.f32 %v3151_v9, %v1332_v41  ;;  %1009 = vmatmul.f32.gmra.mxu1 %v725_v37 }
 0x153   : > { %v3153_v40 = vpop.eup %3152  ;;  %v3043_v28 = vmul.f32 -1.442695, %v1088_v12  ;;  %v1334_v38 = vadd.f32 %v3151_v9, %v1333_v62  ;;  %v843_v34 = vpop.f32.mrf.mxu0  ;;  %v781_v12 = vld [vmem:[%s4290_s24 + $0x30] sm:$0xff] }
 0x154   : > { %v4327_v44 = vpop.eup %3154  ;;  %v4329_v54 = vadd.f32 1.0, %v3153_v40  ;;  %1167 = vmatmul.f32.gmra.mxu3 %v759_v24  ;;  %v844_v5 = vadd.f32 %v843_v34, %v780_v11  ;;  %v765_v34 = vld [vmem:[%s4096_s20 + $0x310] sm:$0xff] }
 0x155   : > { %v1346_v46 = vmul.f32 %v4327_v44, %v4317_v33  ;;  %3156 = vpow2.f32 %v3043_v28  ;;  %v1338_v30 = vsel %vm1337_vm6, %v3151_v9, %v1334_v38  ;;  %vm1351_vm0 = vweird.f32 %v4327_v44 }
 0x156   : > { %3158 = vrcp.f32 %v4329_v54  ;;  %v965_v49 = vpop.f32.mrf.mxu1  ;;  %v4343_v51 = vsel %vm1340_vm4, %v1342_v20, %v1338_v30  ;;  %vm1352_vm13 = vmor %vm1350_vm8, %vm1351_vm0  ;;  %v1369_v62 = vand.u32 2147483647, %v4329_v54  ;;  %v1371_v24 = vand.u32 2147483648, %v4329_v54  ;;  %v729_v20 = vld [vmem:[%s4096_s20 + $0x1f0] sm:$0xff] }
 0x157   : > { %v966_v22 = vadd.f32 %v965_v49, %v841_v7  ;;  %v2024_v15 = vmul.f32 %v4334_v0, %v4343_v51  ;;  %v1874_v27 = vmul.f32 %v4337_v43, %v4343_v51  ;;  %v1347_v2 = vsub.f32 1.0, %v1346_v46  ;;  %v4351_v6 = vpop.f32.mrf.mxu3  ;;  %1137 = vmatmul.f32.gmra.mxu2 %v729_v20  ;;  %v783_v20 = vld [vmem:[%s4290_s24 + $0x40] sm:$0xff] }
 0x158   : > { %v1090_v55 = vpop.f32.mrf.mxu2  ;;  %v2245_v59 = vmul.f32 %v4364_v60, %v4343_v51  ;;  %vm1365_vm7 = vweird.f32 %v4329_v54  ;;  %vm1370_vm2 = vcmp.eq.f32.partialorder %v1369_v62, 8.507059e+37 }
 0x159   : > { %v1091_v36 = vadd.f32 %v1090_v55, %v966_v22  ;;  %v2060_v57 = vsel %vm1910_vm11, %v2024_v15, 0.0  ;;  %v1911_v35 = vsel %vm1910_vm11, %v1874_v27, 0.0  ;;  %v1348_v61 = vmul.f32 %v4327_v44, %v1347_v2  ;;  %v727_v27 = vld [vmem:[%s4096_s20 + $0x1e0] sm:$0xff] }
 0x15a   : > { %2061 = vadd.xlane.f32.xlu2 %v2060_v57  ;;  %1912 = vadd.xlane.f32.xlu0 %v1911_v35  ;;  %v2281_v40 = vsel %vm1910_vm11, %v2245_v59, 0.0  ;;  %v728_v35 = vld [vmem:[%s4096_s20 + $0x1e8] sm:$0xff] }
 0x15b   : > { %v3157_v3 = vpop.eup %3156  ;;  %v3044_v4 = vmul.f32 -1.442695, %v1091_v36  ;;  %v846_v10 = vpop.f32.mrf.mxu0  ;;  %v1349_v26 = vadd.f32 %v4327_v44, %v1348_v61  ;;  %887 = vmatmul.f32.gmra.mxu0 %v727_v27  ;;  %1012 = vmatmul.f32.gmra.mxu1 %v728_v35  ;;  %v802_v35 = vld [vmem:[%s4290_s24 + $0xd8] sm:$0xff] }
 0x15c   : > { %v4367_v56 = vpop.eup %3158  ;;  %v4369_v13 = vadd.f32 1.0, %v3157_v3  ;;  %1170 = vmatmul.f32.gmra.mxu3 %v762_v52  ;;  %v847_v30 = vadd.f32 %v846_v10, %v781_v12 }
 0x15d   : > { %v1361_v29 = vmul.f32 %v4367_v56, %v4329_v54  ;;  %3160 = vpow2.f32 %v3044_v4  ;;  %v1353_v33 = vsel %vm1352_vm13, %v4327_v44, %v1349_v26  ;;  %vm1366_vm5 = vweird.f32 %v4367_v56 }
 0x15e   : > { %3162 = vrcp.f32 %v4369_v13  ;;  %v968_v9 = vpop.f32.mrf.mxu1  ;;  %v4383_v19 = vsel %vm1355_vm15, %v1357_v31, %v1353_v33  ;;  %v4404_v44 = vsel %vm2463_vm1, 1.0, %v3299_v21  ;;  %vm1367_vm10 = vmor %vm1365_vm7, %vm1366_vm5  ;;  %v1372_v21 = vor.u32 1.1754944e-38, %v1371_v24 }
 0x15f   : > { %v969_v18 = vadd.f32 %v968_v9, %v844_v5  ;;  %v1362_v41 = vsub.f32 1.0, %v1361_v29  ;;  %v4386_v1 = vpop.f32.mrf.mxu3  ;;  %v1875_v58 = vmul.f32 %v4337_v43, %v4383_v19  ;;  %v2025_v63 = vmul.f32 %v4334_v0, %v4383_v19 }
 0x160   : > { %v1093_v39 = vpop.f32.mrf.mxu2  ;;  %v2466_v55 = vmul.f32 %v4404_v44, %v4343_v51  ;;  %v2246_v57 = vmul.f32 %v4364_v60, %v4383_v19  ;;  %vm1380_vm3 = vweird.f32 %v4369_v13  ;;  %v1386_v9 = vand.u32 2147483648, %v4369_v13 }
 0x161   : > { %v1094_v47 = vadd.f32 %v1093_v39, %v969_v18  ;;  %v1363_v28 = vmul.f32 %v4367_v56, %v1362_v41  ;;  %v1914_v7 = vsel %vm1910_vm11, %v1875_v58, 0.0  ;;  %v2063_v38 = vsel %vm1910_vm11, %v2025_v63, 0.0 }
 0x162   : > { %2282 = vadd.xlane.f32.xlu2 %v2281_v40  ;;  %1915 = vadd.xlane.f32.xlu1 %v1914_v7  ;;  %v2502_v5 = vsel %vm1910_vm11, %v2466_v55, 0.0  ;;  %v2284_v10 = vsel %vm1910_vm11, %v2246_v57, 0.0  ;;  %v1384_v39 = vand.u32 2147483647, %v4369_v13 }
 0x163   : > { %v3161_v48 = vpop.eup %3160  ;;  %v3045_v46 = vmul.f32 -1.442695, %v1094_v47  ;;  %2064 = vadd.xlane.f32.xlu0 %v2063_v38  ;;  %v1364_v49 = vadd.f32 %v4367_v56, %v1363_v28  ;;  %v849_v32 = vpop.f32.mrf.mxu0  ;;  %v1387_v28 = vor.u32 1.1754944e-38, %v1386_v9 }
 0x164   : > { %v4409_v22 = vpop.eup %3162  ;;  %v4411_v15 = vadd.f32 1.0, %v3161_v48  ;;  %1173 = vmatmul.f32.gmra.mxu3 %v765_v34  ;;  %v850_v31 = vadd.f32 %v849_v32, %v782_v45  ;;  %vm1385_vm6 = vcmp.eq.f32.partialorder %v1384_v39, 8.507059e+37 }
 0x165   : > { %v1376_v2 = vmul.f32 %v4409_v22, %v4369_v13  ;;  %3164 = vpow2.f32 %v3045_v46  ;;  %v1368_v54 = vsel %vm1367_vm10, %v4367_v56, %v1364_v49  ;;  %v768_v56 = vld [vmem:[%s4096_s20 + $0x328] sm:$0xff]  ;;  %vm1381_vm12 = vweird.f32 %v4409_v22 }
 0x166   : > { %3166 = vrcp.f32 %v4411_v15  ;;  %v971_v11 = vpop.f32.mrf.mxu1  ;;  %v4422_v36 = vsel %vm1370_vm2, %v1372_v21, %v1368_v54  ;;  %vm4449_vm9 = vmor %vm1380_vm3, %vm1381_vm12  ;;  %v2467_v13 = vmul.f32 %v4404_v44, %v4383_v19  ;;  %v1399_v48 = vand.u32 2147483647, %v4411_v15  ;;  %v771_v21 = vld [vmem:[%s4096_s20 + $0x340] sm:$0xff] }
 0x167   : > { %v1377_v16 = vsub.f32 1.0, %v1376_v2  ;;  %v972_v52 = vadd.f32 %v971_v11, %v847_v30  ;;  %v2026_v61 = vmul.f32 %v4334_v0, %v4422_v36  ;;  %v4429_v50 = vpop.f32.mrf.mxu3  ;;  %v1876_v18 = vmul.f32 %v4337_v43, %v4422_v36 }
 0x168   : > { %v1096_v51 = vpop.f32.mrf.mxu2  ;;  %v2247_v62 = vmul.f32 %v4364_v60, %v4422_v36  ;;  %v1401_v46 = vand.u32 2147483648, %v4411_v15  ;;  %vm1395_vm14 = vweird.f32 %v4411_v15  ;;  %vm1400_vm8 = vcmp.eq.f32.partialorder %v1399_v48, 8.507059e+37 }
 0x169   : > { %v1097_v3 = vadd.f32 %v1096_v51, %v972_v52  ;;  %v2066_v4 = vsel %vm1910_vm11, %v2026_v61, 0.0  ;;  %v1378_v26 = vmul.f32 %v4409_v22, %v1377_v16  ;;  %v1917_v34 = vsel %vm1910_vm11, %v1876_v18, 0.0 }
 0x16a   : > { %2503 = vadd.xlane.f32.xlu2 %v2502_v5  ;;  %2067 = vadd.xlane.f32.xlu1 %v2066_v4  ;;  %v2287_v32 = vsel %vm1910_vm11, %v2247_v62, 0.0  ;;  %v1402_v61 = vor.u32 1.1754944e-38, %v1401_v46  ;;  %v910_v5 = vadd.f32 %v4292_v53, %v802_v35 }
 0x16b   : > { %v3165_v8 = vpop.eup %3164  ;;  %v3046_v29 = vmul.f32 -1.442695, %v1097_v3  ;;  %2285 = vadd.xlane.f32.xlu0 %v2284_v10  ;;  %v852_v59 = vpop.f32.mrf.mxu0  ;;  %v1379_v41 = vadd.f32 %v4409_v22, %v1378_v26  ;;  %v2468_v3 = vmul.f32 %v4404_v44, %v4422_v36 }
 0x16c   : > { %v3167_v33 = vpop.eup %3166  ;;  %v4440_v37 = vadd.f32 1.0, %v3165_v8  ;;  %1176 = vmatmul.f32.gmra.mxu3 %v768_v56  ;;  %v853_v54 = vadd.f32 %v852_v59, %v783_v20  ;;  %v784_v59 = vld [vmem:[%s4290_s24 + $0x48] sm:$0xff] }
 0x16d   : > { %v1391_v58 = vmul.f32 %v3167_v33, %v4411_v15  ;;  %3168 = vpow2.f32 %v3046_v29  ;;  %v1383_v24 = vsel %vm4449_vm9, %v4409_v22, %v1379_v41  ;;  %vm1396_vm4 = vweird.f32 %v3167_v33 }
 0x16e   : > { %3170 = vrcp.f32 %v4440_v37  ;;  %v974_v12 = vpop.f32.mrf.mxu1  ;;  %v4467_v30 = vsel %vm1385_vm6, %v1387_v28, %v1383_v24  ;;  %v2505_v22 = vsel %vm1910_vm11, %v2467_v13, 0.0  ;;  %vm1397_vm0 = vmor %vm1395_vm14, %vm1396_vm4  ;;  %v1414_v9 = vand.u32 2147483647, %v4440_v37 }
 0x16f   : > { %v1392_v47 = vsub.f32 1.0, %v1391_v58  ;;  %v975_v40 = vadd.f32 %v974_v12, %v850_v31  ;;  %v4461_v7 = vpop.f32.mrf.mxu3  ;;  %v1877_v52 = vmul.f32 %v4337_v43, %v4467_v30  ;;  %v1416_v36 = vand.u32 2147483648, %v4440_v37  ;;  %v774_v58 = vld [vmem:[%s4096_s20 + $0x358] sm:$0xff] }
 0x170   : > { %v1099_v38 = vpop.f32.mrf.mxu2  ;;  %v2508_v39 = vsel %vm1910_vm11, %v2468_v3, 0.0  ;;  %vm1410_vm15 = vweird.f32 %v4440_v37  ;;  %vm1415_vm5 = vcmp.eq.f32.partialorder %v1414_v9, 8.507059e+37  ;;  %v2027_v20 = vmul.f32 %v4334_v0, %v4467_v30 }
 0x171   : > { %v1100_v19 = vadd.f32 %v1099_v38, %v975_v40  ;;  %v1393_v49 = vmul.f32 %v3167_v33, %v1392_v47  ;;  %v1920_v31 = vsel %vm1910_vm11, %v1877_v52, 0.0  ;;  %v803_v40 = vld [vmem:[%s4290_s24 + $0xe0] sm:$0xff]  ;;  %v1417_v38 = vor.u32 1.1754944e-38, %v1416_v36  ;;  %v804_v52 = vld [vmem:[%s4290_s24 + $0xe8] sm:$0xff] }
 0x172   : > { %1918 = vadd.xlane.f32.xlu2 %v1917_v34  ;;  %2288 = vadd.xlane.f32.xlu1 %v2287_v32 }
 0x173   : > { %v3169_v27 = vpop.eup %3168  ;;  %v3047_v2 = vmul.f32 -1.442695, %v1100_v19  ;;  %2506 = vadd.xlane.f32.xlu0 %v2505_v22  ;;  %v1394_v55 = vadd.f32 %v3167_v33, %v1393_v49  ;;  %v855_v11 = vpop.f32.mrf.mxu0  ;;  %v913_v19 = vadd.f32 %v4299_v17, %v803_v40 }
 0x174   : > { %v3171_v57 = vpop.eup %3170  ;;  %v4474_v16 = vadd.f32 1.0, %v3169_v27  ;;  %1179 = vmatmul.f32.gmra.mxu3 %v771_v21  ;;  %v856_v62 = vadd.f32 %v855_v11, %v784_v59  ;;  %v2069_v11 = vsel %vm1910_vm11, %v2027_v20, 0.0 }
 0x175   : > { %v1406_v51 = vmul.f32 %v3171_v57, %v4440_v37  ;;  %3172 = vpow2.f32 %v3047_v2  ;;  %v1398_v45 = vsel %vm1397_vm0, %v3167_v33, %v1394_v55  ;;  %vm1411_vm13 = vweird.f32 %v3171_v57  ;;  %v785_v2 = vld [vmem:[%s4290_s24 + $0x50] sm:$0xff] }
 0x176   : > { %3174 = vrcp.f32 %v4474_v16  ;;  %v977_v15 = vpop.f32.mrf.mxu1  ;;  %v4483_v4 = vsel %vm1400_vm8, %v1402_v61, %v1398_v45  ;;  %vm1412_vm1 = vmor %vm1410_vm15, %vm1411_vm13  ;;  %vm1425_vm7 = vweird.f32 %v4474_v16 }
 0x177   : > { %v1407_v10 = vsub.f32 1.0, %v1406_v51  ;;  %v978_v56 = vadd.f32 %v977_v15, %v853_v54  ;;  %v1878_v26 = vmul.f32 %v4337_v43, %v4483_v4  ;;  %v1034_v8 = vpop.f32.mrf.mxu3  ;;  %v2028_v46 = vmul.f32 %v4334_v0, %v4483_v4 }
 0x178   : > { %v1102_v29 = vpop.f32.mrf.mxu2  ;;  %v4492_v33 = vadd.f32 %v1034_v8, %v910_v5 }
 0x179   : > { %v1103_v53 = vadd.f32 %v1102_v29, %v978_v56  ;;  %v1923_v18 = vsel %vm1910_vm11, %v1878_v26, 0.0  ;;  %v1408_v41 = vmul.f32 %v3171_v57, %v1407_v10  ;;  %v2072_v17 = vsel %vm1910_vm11, %v2028_v46, 0.0 }
 0x17a   : > { %1921 = vadd.xlane.f32.xlu2 %v1920_v31  ;;  %2509 = vadd.xlane.f32.xlu1 %v2508_v39  ;;  %v2248_v10 = vmul.f32 %v4364_v60, %v4467_v30  ;;  %v916_v26 = vadd.f32 %v4306_v42, %v804_v52  ;;  %v2249_v31 = vmul.f32 %v4364_v60, %v4483_v4 }
 0x17b   : > { %v3173_v63 = vpop.eup %3172  ;;  %v3048_v12 = vmul.f32 -1.442695, %v1103_v53  ;;  %1924 = vadd.xlane.f32.xlu0 %v1923_v18  ;;  %v1409_v13 = vadd.f32 %v3171_v57, %v1408_v41  ;;  %v858_v24 = vpop.f32.mrf.mxu0  ;;  %v732_v53 = vld [vmem:[%s4096_s20 + $0x208] sm:$0xff]  ;;  %v730_v18 = vld [vmem:[%s4096_s20 + $0x1f8] sm:$0xff] }
 0x17c   : > { %v4498_v47 = vpop.eup %3174  ;;  %v4501_v28 = vadd.f32 1.0, %v3173_v63  ;;  %1182 = vmatmul.f32.gmra.mxu3 %v774_v58  ;;  %v859_v45 = vadd.f32 %v858_v24, %v785_v2  ;;  %v2290_v42 = vsel %vm1910_vm11, %v2248_v10, 0.0  ;;  %v786_v58 = vld [vmem:[%s4290_s24 + $0x58] sm:$0xff]  ;;  %1140 = vmatmul.f32.gmra.mxu2 %v732_v53  ;;  %v2293_v40 = vsel %vm1910_vm11, %v2249_v31, 0.0 }
 0x17d   : > { %3176 = vpow2.f32 %v3048_v12  ;;  %v1413_v34 = vsel %vm1412_vm1, %v3171_v57, %v1409_v13  ;;  %v1421_v49 = vmul.f32 %v4498_v47, %v4474_v16  ;;  %890 = vmatmul.f32.gmra.mxu0 %v730_v18  ;;  %vm1426_vm10 = vweird.f32 %v4498_v47 }
 0x17e   : > { %3178 = vrcp.f32 %v4501_v28  ;;  %v980_v37 = vpop.f32.mrf.mxu1  ;;  %v4507_v48 = vsel %vm1415_vm5, %v1417_v38, %v1413_v34  ;;  %v1429_v38 = vand.u32 2147483647, %v4474_v16  ;;  %v805_v34 = vld [vmem:[%s4290_s24 + $0xf0] sm:$0xff]  ;;  %vm1440_vm2 = vweird.f32 %v4501_v28  ;;  %vm4574_vm3 = vmor %vm1425_vm7, %vm1426_vm10 }
 0x17f   : > { %v981_v32 = vadd.f32 %v980_v37, %v856_v62  ;;  %v1879_v22 = vmul.f32 %v4337_v43, %v4507_v48  ;;  %v1037_v21 = vpop.f32.mrf.mxu3  ;;  %v1422_v61 = vsub.f32 1.0, %v1421_v49  ;;  %v2029_v29 = vmul.f32 %v4334_v0, %v4507_v48 }
 0x180   : > { %v1105_v27 = vpop.f32.mrf.mxu2  ;;  %v4517_v54 = vadd.f32 %v1037_v21, %v913_v19  ;;  %v2469_v62 = vmul.f32 %v4404_v44, %v4467_v30  ;;  %v1431_v49 = vand.u32 2147483648, %v4474_v16  ;;  %v919_v2 = vadd.f32 %v4313_v23, %v805_v34 }
 0x181   : > { %v1926_v55 = vsel %vm1910_vm11, %v1879_v22, 0.0  ;;  %v1106_v57 = vadd.f32 %v1105_v27, %v981_v32  ;;  %v1423_v36 = vmul.f32 %v4498_v47, %v1422_v61  ;;  %v2075_v24 = vsel %vm1910_vm11, %v2029_v29, 0.0 }
 0x182   : > { %2070 = vadd.xlane.f32.xlu2 %v2069_v11  ;;  %1927 = vadd.xlane.f32.xlu1 %v1926_v55  ;;  %v1446_v27 = vand.u32 2147483648, %v4501_v28  ;;  %v2250_v11 = vmul.f32 %v4364_v60, %v4507_v48  ;;  %v2511_v61 = vsel %vm1910_vm11, %v2469_v62, 0.0  ;;  %vm1430_vm6 = vcmp.eq.f32.partialorder %v1429_v38, 8.507059e+37  ;;  %v787_v38 = vld [vmem:[%s4290_s24 + $0x60] sm:$0xff] }
 0x183   : > { %v3177_v35 = vpop.eup %3176  ;;  %2073 = vadd.xlane.f32.xlu0 %v2072_v17  ;;  %v3049_v51 = vmul.f32 -1.442695, %v1106_v57  ;;  %v861_v15 = vpop.f32.mrf.mxu0  ;;  %v1424_v46 = vadd.f32 %v4498_v47, %v1423_v36  ;;  %v2470_v57 = vmul.f32 %v4404_v44, %v4483_v4  ;;  %v731_v4 = vld [vmem:[%s4096_s20 + $0x200] sm:$0xff] }
 0x184   : > { %v4523_v3 = vpop.eup %3178  ;;  %v4525_v5 = vadd.f32 1.0, %v3177_v35  ;;  %v862_v37 = vadd.f32 %v861_v15, %v786_v58  ;;  %v1444_v35 = vand.u32 2147483647, %v4501_v28  ;;  %1015 = vmatmul.f32.gmra.mxu1 %v731_v4  ;;  %v1447_v31 = vor.u32 1.1754944e-38, %v1446_v27  ;;  %v788_v27 = vld [vmem:[%s4290_s24 + $0x68] sm:$0xff] }
 0x185   : > { %v1436_v56 = vmul.f32 %v4523_v3, %v4501_v28  ;;  %vm1441_vm12 = vweird.f32 %v4523_v3  ;;  %v2514_v36 = vsel %vm1910_vm11, %v2470_v57, 0.0 }
 0x186   : > { %3180 = vrcp.f32 %v4525_v5  ;;  %v983_v8 = vpop.f32.mrf.mxu1  ;;  %vm4587_vm9 = vmor %vm1440_vm2, %vm1441_vm12  ;;  %vm1445_vm4 = vcmp.eq.f32.partialorder %v1444_v35, 8.507059e+37  ;;  %vm1455_vm14 = vweird.f32 %v4525_v5  ;;  %v1461_v62 = vand.u32 2147483648, %v4525_v5 }
 0x187   : > { %v1437_v59 = vsub.f32 1.0, %v1436_v56  ;;  %3182 = vpow2.f32 %v3049_v51  ;;  %v984_v9 = vadd.f32 %v983_v8, %v859_v45  ;;  %v1040_v41 = vpop.f32.mrf.mxu3  ;;  %v1428_v51 = vsel %vm4574_vm3, %v4498_v47, %v1424_v46  ;;  %v735_v45 = vld [vmem:[%s4096_s20 + $0x220] sm:$0xff]  ;;  %v733_v8 = vld [vmem:[%s4096_s20 + $0x210] sm:$0xff] }
 0x188   : > { %v1108_v39 = vpop.f32.mrf.mxu2  ;;  %v4542_v63 = vadd.f32 %v1040_v41, %v916_v26  ;;  %v1432_v26 = vor.u32 1.1754944e-38, %v1431_v49  ;;  %1143 = vmatmul.f32.gmra.mxu2 %v735_v45  ;;  %893 = vmatmul.f32.gmra.mxu0 %v733_v8  ;;  %v734_v49 = vld [vmem:[%s4096_s20 + $0x218] sm:$0xff] }
 0x189   : > { %v1109_v12 = vadd.f32 %v1108_v39, %v984_v9  ;;  %v1438_v13 = vmul.f32 %v4523_v3, %v1437_v59  ;;  %v2296_v9 = vsel %vm1910_vm11, %v2250_v11, 0.0  ;;  %v1462_v11 = vor.u32 1.1754944e-38, %v1461_v62 }
 0x18a   : > { %2291 = vadd.xlane.f32.xlu2 %v2290_v42  ;;  %2076 = vadd.xlane.f32.xlu1 %v2075_v24  ;;  %v4604_v53 = vsel %vm1430_vm6, %v1432_v26, %v1428_v51  ;;  %v806_v42 = vld [vmem:[%s4290_s24 + $0xf8] sm:$0xff]  ;;  %v2471_v24 = vmul.f32 %v4404_v44, %v4507_v48 }
 0x18b   : > { %2294 = vadd.xlane.f32.xlu0 %v2293_v40  ;;  %v3050_v20 = vmul.f32 -1.442695, %v1109_v12  ;;  %v4554_v30 = vpop.f32.mrf.mxu0  ;;  %v1439_v32 = vadd.f32 %v4523_v3, %v1438_v13  ;;  %v1880_v12 = vmul.f32 %v4337_v43, %v4604_v53  ;;  %v738_v48 = vld [vmem:[%s4096_s20 + $0x238] sm:$0xff]  ;;  %v2030_v4 = vmul.f32 %v4334_v0, %v4604_v53 }
 0x18c   : > { %v4556_v19 = vpop.eup %3180  ;;  %1018 = vmatmul.f32.gmra.mxu1 %v734_v49  ;;  %v2517_v17 = vsel %vm1910_vm11, %v2471_v24, 0.0 }
 0x18d   : > { %v3183_v22 = vpop.eup %3182  ;;  %v1451_v21 = vmul.f32 %v4556_v19, %v4525_v5  ;;  %3184 = vpow2.f32 %v3050_v20  ;;  %v1443_v47 = vsel %vm4587_vm9, %v4523_v3, %v1439_v32  ;;  %vm1456_vm0 = vweird.f32 %v4556_v19 }
 0x18e   : > { %v986_v55 = vpop.f32.mrf.mxu1  ;;  %v4593_v15 = vadd.f32 1.0, %v3183_v22  ;;  %v4606_v41 = vsel %vm1445_vm4, %v1447_v31, %v1443_v47  ;;  %v1459_v20 = vand.u32 2147483647, %v4525_v5  ;;  %vm4628_vm8 = vmor %vm1455_vm14, %vm1456_vm0  ;;  %v1929_v5 = vsel %vm1910_vm11, %v1880_v12, 0.0  ;;  %v737_v31 = vld [vmem:[%s4096_s20 + $0x230] sm:$0xff] }
 0x18f   : > { %v1452_v52 = vsub.f32 1.0, %v1451_v21  ;;  %v987_v23 = vadd.f32 %v986_v55, %v862_v37  ;;  %v1043_v10 = vpop.f32.mrf.mxu3  ;;  %v1881_v40 = vmul.f32 %v4337_v43, %v4606_v41  ;;  %v922_v37 = vadd.f32 %v4320_v25, %v806_v42  ;;  %v736_v25 = vld [vmem:[%s4096_s20 + $0x228] sm:$0xff] }
 0x190   : > { %v1111_v56 = vpop.f32.mrf.mxu2  ;;  %v4599_v28 = vadd.f32 %v1043_v10, %v919_v2  ;;  %3186 = vrcp.f32 %v4593_v15  ;;  %1146 = vmatmul.f32.gmra.mxu2 %v738_v48  ;;  %v865_v55 = vadd.f32 %v4554_v30, %v787_v38  ;;  %896 = vmatmul.f32.gmra.mxu0 %v736_v25  ;;  %vm1460_vm13 = vcmp.eq.f32.partialorder %v1459_v20, 8.507059e+37 }
 0x191   : > { %v1112_v29 = vadd.f32 %v1111_v56, %v987_v23  ;;  %v1453_v59 = vmul.f32 %v4556_v19, %v1452_v52  ;;  %v2031_v56 = vmul.f32 %v4334_v0, %v4606_v41  ;;  %v2078_v42 = vsel %vm1910_vm11, %v2030_v4, 0.0 }
 0x192   : > { %2512 = vadd.xlane.f32.xlu2 %v2511_v61  ;;  %2297 = vadd.xlane.f32.xlu1 %v2296_v9  ;;  %v807_v61 = vld [vmem:[%s4290_s24 + $0x100] sm:$0xff]  ;;  %v2252_v38 = vmul.f32 %v4364_v60, %v4606_v41  ;;  %vm1470_vm15 = vweird.f32 %v4593_v15 }
 0x193   : > { %v3185_v3 = vpop.eup %3184  ;;  %2515 = vadd.xlane.f32.xlu0 %v2514_v36  ;;  %v3051_v18 = vmul.f32 -1.442695, %v1112_v29  ;;  %v1454_v58 = vadd.f32 %v4556_v19, %v1453_v59  ;;  %v867_v13 = vpop.f32.mrf.mxu0  ;;  %v925_v47 = vadd.f32 %v4351_v6, %v807_v61  ;;  %v2251_v6 = vmul.f32 %v4364_v60, %v4604_v53 }
 0x194   : > { %v4611_v39 = vadd.f32 1.0, %v3185_v3  ;;  %v868_v23 = vadd.f32 %v867_v13, %v788_v27  ;;  %v789_v3 = vld [vmem:[%s4290_s24 + $0x70] sm:$0xff]  ;;  %1021 = vmatmul.f32.gmra.mxu1 %v737_v31  ;;  %v2081_v13 = vsel %vm1910_vm11, %v2031_v56, 0.0  ;;  %v2302_v25 = vsel %vm1910_vm11, %v2252_v38, 0.0 }
 0x195   : > { %3188 = vpow2.f32 %v3051_v18  ;;  %v1458_v22 = vsel %vm4628_vm8, %v4556_v19, %v1454_v58  ;;  %v1932_v19 = vsel %vm1910_vm11, %v1881_v40, 0.0  ;;  %v808_v40 = vld [vmem:[%s4290_s24 + $0x108] sm:$0xff]  ;;  %v809_v56 = vld [vmem:[%s4290_s24 + $0x110] sm:$0xff] }
 0x196   : > { %v989_v34 = vpop.f32.mrf.mxu1  ;;  %3190 = vrcp.f32 %v4611_v39  ;;  %v4643_v57 = vpop.eup %3186  ;;  %v4647_v52 = vsel %vm1460_vm13, %v1462_v11, %v1458_v22  ;;  %v928_v48 = vadd.f32 %v4386_v1, %v808_v40  ;;  %v1474_v1 = vand.u32 2147483647, %v4593_v15 }
 0x197   : > { %v1046_v32 = vpop.f32.mrf.mxu3  ;;  %v990_v16 = vadd.f32 %v989_v34, %v865_v55  ;;  %v1466_v45 = vmul.f32 %v4643_v57, %v4593_v15  ;;  %v1882_v10 = vmul.f32 %v4337_v43, %v4647_v52  ;;  %v2032_v49 = vmul.f32 %v4334_v0, %v4647_v52 }
 0x198   : > { %v1114_v21 = vpop.f32.mrf.mxu2  ;;  %v4639_v2 = vadd.f32 %v1046_v32, %v922_v37  ;;  %v2299_v32 = vsel %vm1910_vm11, %v2251_v6, 0.0  ;;  %v1476_v55 = vand.u32 2147483648, %v4593_v15  ;;  %vm1471_vm1 = vweird.f32 %v4643_v57 }
 0x199   : > { %v1115_v58 = vadd.f32 %v1114_v21, %v990_v16  ;;  %v1467_v12 = vsub.f32 1.0, %v1466_v45  ;;  %v1935_v62 = vsel %vm1910_vm11, %v1882_v10, 0.0  ;;  %v2084_v61 = vsel %vm1910_vm11, %v2032_v49, 0.0  ;;  %vm4701_vm10 = vmor %vm1470_vm15, %vm1471_vm1  ;;  %v790_v49 = vld [vmem:[%s4290_s24 + $0x78] sm:$0xff] }
 0x19a   : > { %1930 = vadd.xlane.f32.xlu2 %v1929_v5  ;;  %2518 = vadd.xlane.f32.xlu1 %v2517_v17  ;;  %vm1485_vm5 = vweird.f32 %v4611_v39  ;;  %v1491_v10 = vand.u32 2147483648, %v4611_v39  ;;  %v2253_v31 = vmul.f32 %v4364_v60, %v4647_v52  ;;  %v2473_v15 = vmul.f32 %v4404_v44, %v4606_v41 }
 0x19b   : > { %v3189_v35 = vpop.eup %3188  ;;  %1933 = vadd.xlane.f32.xlu0 %v1932_v19  ;;  %v870_v29 = vpop.f32.mrf.mxu0  ;;  %v3052_v46 = vmul.f32 -1.442695, %v1115_v58  ;;  %v1468_v27 = vmul.f32 %v4643_v57, %v1467_v12  ;;  %vm1475_vm12 = vcmp.eq.f32.partialorder %v1474_v1, 8.507059e+37 }
 0x19c   : > { %v4650_v51 = vadd.f32 1.0, %v3189_v35  ;;  %v4652_v30 = vpop.eup %3190  ;;  %v871_v34 = vadd.f32 %v870_v29, %v789_v3  ;;  %v1489_v29 = vand.u32 2147483647, %v4611_v39  ;;  %v1492_v58 = vor.u32 1.1754944e-38, %v1491_v10 }
 0x19d   : > { %v1481_v59 = vmul.f32 %v4652_v30, %v4611_v39  ;;  %v1469_v4 = vadd.f32 %v4643_v57, %v1468_v27  ;;  %vm1486_vm7 = vweird.f32 %v4652_v30 }
 0x19e   : > { %v992_v26 = vpop.f32.mrf.mxu1  ;;  %3192 = vrcp.f32 %v4650_v51  ;;  %vm4717_vm2 = vmor %vm1485_vm5, %vm1486_vm7  ;;  %vm1490_vm3 = vcmp.eq.f32.partialorder %v1489_v29, 8.507059e+37  ;;  %vm1500_vm9 = vweird.f32 %v4650_v51 }
 0x19f   : > { %v993_v8 = vadd.f32 %v992_v26, %v868_v23  ;;  %v1049_v9 = vpop.f32.mrf.mxu3  ;;  %v1482_v20 = vsub.f32 1.0, %v1481_v59  ;;  %3194 = vpow2.f32 %v3052_v46  ;;  %v1477_v59 = vor.u32 1.1754944e-38, %v1476_v55  ;;  %v810_v46 = vld [vmem:[%s4290_s24 + $0x118] sm:$0xff] }
 0x1a0   : > { %v1117_v36 = vpop.f32.mrf.mxu2  ;;  %v4668_v18 = vadd.f32 %v1049_v9, %v925_v47  ;;  %v2472_v47 = vmul.f32 %v4404_v44, %v4604_v53  ;;  %v1473_v53 = vsel %vm4701_vm10, %v4643_v57, %v1469_v4  ;;  %v2305_v57 = vsel %vm1910_vm11, %v2253_v31, 0.0 }
 0x1a1   : > { %v1118_v24 = vadd.f32 %v1117_v36, %v993_v8  ;;  %v1483_v35 = vmul.f32 %v4652_v30, %v1482_v20  ;;  %v1506_v20 = vand.u32 2147483648, %v4650_v51  ;;  %vm2827_vm10 = vcmask 556032  }
 0x1a2   : > { %2079 = vadd.xlane.f32.xlu2 %v2078_v42  ;;  %1936 = vadd.xlane.f32.xlu1 %v1935_v62  ;;  %v931_v42 = vadd.f32 %v4429_v50, %v809_v56  ;;  %v2520_v41 = vsel %vm1910_vm11, %v2472_v47, 0.0  ;;  %v2523_v50 = vsel %vm1910_vm11, %v2473_v15, 0.0 }
 0x1a3   : > { %2082 = vadd.xlane.f32.xlu0 %v2081_v13  ;;  %v3053_v22 = vmul.f32 -1.442695, %v1118_v24  ;;  %v1484_v8 = vadd.f32 %v4652_v30, %v1483_v35  ;;  %v4734_v24 = vsel %vm1475_vm12, %v1477_v59, %v1473_v53  ;;  %v873_v38 = vpop.f32.mrf.mxu0 }
 0x1a4   : > { %v4678_v37 = vpop.eup %3192  ;;  %v2033_v31 = vmul.f32 %v4334_v0, %v4734_v24 }
 0x1a5   : > { %v1496_v11 = vmul.f32 %v4678_v37, %v4650_v51  ;;  %3196 = vpow2.f32 %v3053_v22  ;;  %v3195_v3 = vpop.eup %3194  ;;  %v1488_v39 = vsel %vm4717_vm2, %v4652_v30, %v1484_v8  ;;  %vm1501_vm6 = vweird.f32 %v4678_v37 }
 0x1a6   : > { %v995_v21 = vpop.f32.mrf.mxu1  ;;  %v4736_v40 = vadd.f32 1.0, %v3195_v3  ;;  %v1504_v22 = vand.u32 2147483647, %v4650_v51  ;;  %vm4751_vm4 = vmor %vm1500_vm9, %vm1501_vm6  ;;  %v874_v51 = vadd.f32 %v873_v38, %v790_v49 }
 0x1a7   : > { %v996_v5 = vadd.f32 %v995_v21, %v871_v34  ;;  %v1052_v17 = vpop.f32.mrf.mxu3  ;;  %v1497_v26 = vsub.f32 1.0, %v1496_v11  ;;  %v4742_v34 = vsel %vm1490_vm3, %v1492_v58, %v1488_v39  ;;  %v1883_v21 = vmul.f32 %v4337_v43, %v4734_v24  ;;  %v792_v58 = vld [vmem:[%s4290_s24 + $0x88] sm:$0xff] }
 0x1a8   : > { %v1120_v19 = vpop.f32.mrf.mxu2  ;;  %v4693_v23 = vadd.f32 %v1052_v17, %v928_v48  ;;  %v934_v11 = vadd.f32 %v4461_v7, %v810_v46  ;;  %v1507_v17 = vor.u32 1.1754944e-38, %v1506_v20  ;;  %vm1505_vm14 = vcmp.eq.f32.partialorder %v1504_v22, 8.507059e+37 }
 0x1a9   : > { %v1121_v16 = vadd.f32 %v1120_v19, %v996_v5  ;;  %v1498_v62 = vmul.f32 %v4678_v37, %v1497_v26  ;;  %v1884_v5 = vmul.f32 %v4337_v43, %v4742_v34  ;;  %v2034_v59 = vmul.f32 %v4334_v0, %v4742_v34 }
 0x1aa   : > { %2300 = vadd.xlane.f32.xlu2 %v2299_v32  ;;  %2085 = vadd.xlane.f32.xlu1 %v2084_v61  ;;  %v791_v61 = vld [vmem:[%s4290_s24 + $0x80] sm:$0xff]  ;;  %v2254_v46 = vmul.f32 %v4364_v60, %v4734_v24  ;;  %v2255_v49 = vmul.f32 %v4364_v60, %v4742_v34  ;;  %vm1515_vm0 = vweird.f32 %v4736_v40 }
 0x1ab   : > { %2303 = vadd.xlane.f32.xlu0 %v2302_v25  ;;  %v3054_v36 = vmul.f32 -1.442695, %v1121_v16  ;;  %v3197_v6 = vpop.eup %3196  ;;  %v1499_v32 = vadd.f32 %v4678_v37, %v1498_v62  ;;  %v2474_v25 = vmul.f32 %v4404_v44, %v4647_v52  ;;  %v1938_v52 = vsel %vm1910_vm11, %v1883_v21, 0.0  ;;  %v876_v45 = vpop.f32.mrf.mxu0 }
 0x1ac   : > { %v4740_v30 = vadd.f32 1.0, %v3197_v6  ;;  %v1941_v7 = vsel %vm1910_vm11, %v1884_v5, 0.0  ;;  %v2087_v6 = vsel %vm1910_vm11, %v2033_v31, 0.0 }
 0x1ad   : > { %3198 = vpow2.f32 %v3054_v36  ;;  %v1503_v35 = vsel %vm4751_vm4, %v4678_v37, %v1499_v32  ;;  %v2526_v4 = vsel %vm1910_vm11, %v2474_v25, 0.0  ;;  %v877_v37 = vadd.f32 %v876_v45, %v791_v61 }
 0x1ae   : > { %v998_v48 = vpop.f32.mrf.mxu1  ;;  %3200 = vrcp.f32 %v4736_v40  ;;  %v4773_v26 = vsel %vm1505_vm14, %v1507_v17, %v1503_v35  ;;  %v4804_v25 = vadd.s32 128, %v3369_v14  ;;  %v2311_v17 = vsel %vm1910_vm11, %v2255_v49, 0.0 }
 0x1af   : > { %v1055_v12 = vpop.f32.mrf.mxu3  ;;  %3202 = vrcp.f32 %v4740_v30  ;;  %v999_v56 = vadd.f32 %v998_v48, %v874_v51  ;;  %v1885_v15 = vmul.f32 %v4337_v43, %v4773_v26  ;;  %v2035_v22 = vmul.f32 %v4334_v0, %v4773_v26 }
 0x1b0   : > { %v4730_v13 = vadd.f32 %v1055_v12, %v931_v42  ;;  %v1123_v55 = vpop.f32.mrf.mxu2  ;;  %v2308_v51 = vsel %vm1910_vm11, %v2254_v46, 0.0  ;;  %v1521_v35 = vand.u32 2147483648, %v4736_v40  ;;  %vm1530_vm13 = vweird.f32 %v4740_v30 }
 0x1b1   : > { %v1124_v3 = vadd.f32 %v1123_v55, %v999_v56  ;;  %v1944_v12 = vsel %vm1910_vm11, %v1885_v15, 0.0  ;;  %vm2020_vm1 = vcmp.lt.s32.totalorder %v4804_v25, 147  ;;  %v2683_v56 = vld [vmem:[%s4818_s28 + $0x8] sm:$0xff]  ;;  %v1534_v31 = vand.u32 2147483647, %v4740_v30 }
 0x1b2   : > { %2521 = vadd.xlane.f32.xlu2 %v2520_v41  ;;  %2306 = vadd.xlane.f32.xlu1 %v2305_v57  ;;  %v2090_v41 = vsel %vm1910_vm11, %v2034_v59, 0.0  ;;  %vm2240_vm14 = vcmp.lt.s32.totalorder %v3369_v14, 98 }
 0x1b3   : > { %2524 = vadd.xlane.f32.xlu0 %v2523_v50  ;;  %v3199_v19 = vpop.eup %3198  ;;  %v879_v62 = vpop.f32.mrf.mxu0  ;;  %v3055_v50 = vmul.f32 -1.442695, %v1124_v3  ;;  %vm4875_vm12 = vcmp.eq.f32.partialorder %v1534_v31, 8.507059e+37 }
 0x1b4   : > { %v4771_v10 = vadd.f32 1.0, %v3199_v19  ;;  %v4775_v47 = vpop.eup %3200  ;;  %v880_v38 = vadd.f32 %v879_v62, %v792_v58 }
 0x1b5   : > { %v4777_v29 = vpop.eup %3202  ;;  %v1511_v53 = vmul.f32 %v4775_v47, %v4736_v40  ;;  %vm1516_vm8 = vweird.f32 %v4775_v47 }
 0x1b6   : > { %v1001_v8 = vpop.f32.mrf.mxu1  ;;  %3204 = vrcp.f32 %v4771_v10  ;;  %v1526_v42 = vmul.f32 %v4777_v29, %v4740_v30  ;;  %vm1531_vm15 = vweird.f32 %v4777_v29  ;;  %vm4834_vm5 = vmor %vm1515_vm0, %vm1516_vm8  ;;  %vm1545_vm3 = vweird.f32 %v4771_v10 }
 0x1b7   : > { %v1058_v1 = vpop.f32.mrf.mxu3  ;;  %v1002_v9 = vadd.f32 %v1001_v8, %v877_v37  ;;  %v1512_v57 = vsub.f32 1.0, %v1511_v53  ;;  %3206 = vpow2.f32 %v3055_v50  ;;  %v2475_v53 = vmul.f32 %v4404_v44, %v4734_v24  ;;  %vm4852_vm7 = vmor %vm1530_vm13, %vm1531_vm15 }
 0x1b8   : > { %v4766_v16 = vadd.f32 %v1058_v1, %v934_v11  ;;  %v1126_v36 = vpop.f32.mrf.mxu2  ;;  %v1527_v20 = vsub.f32 1.0, %v1526_v42  ;;  %v2093_v1 = vsel %vm1910_vm11, %v2035_v22, 0.0  ;;  %v1522_v42 = vor.u32 1.1754944e-38, %v1521_v35 }
 0x1b9   : > { %v1127_v39 = vadd.f32 %v1126_v36, %v1002_v9  ;;  %v1513_v55 = vmul.f32 %v4775_v47, %v1512_v57  ;;  %v2256_v36 = vmul.f32 %v4364_v60, %v4773_v26  ;;  %v1551_v22 = vand.u32 2147483648, %v4771_v10 }
 0x1ba   : > { %1939 = vadd.xlane.f32.xlu2 %v1938_v52  ;;  %2527 = vadd.xlane.f32.xlu1 %v2526_v4  ;;  %v1528_v19 = vmul.f32 %v4777_v29, %v1527_v20  ;;  %v1519_v4 = vand.u32 2147483647, %v4736_v40  ;;  %v2476_v40 = vmul.f32 %v4404_v44, %v4742_v34  ;;  %vm2461_vm0 = vcmp.lt.s32.totalorder %v3369_v14, 49 }
 0x1bb   : > { %1942 = vadd.xlane.f32.xlu0 %v1941_v7  ;;  %v3056_v21 = vmul.f32 -1.442695, %v1127_v39  ;;  %v1514_v52 = vadd.f32 %v4775_v47, %v1513_v55  ;;  %v1536_v7 = vand.u32 2147483648, %v4740_v30  ;;  %v1549_v55 = vand.u32 2147483647, %v4771_v10 }
 0x1bc   : > { %v4798_v32 = vpop.eup %3204  ;;  %v1529_v8 = vadd.f32 %v4777_v29, %v1528_v19  ;;  %vm1520_vm2 = vcmp.eq.f32.partialorder %v1519_v4, 8.507059e+37  ;;  %v2532_v20 = vsel %vm1910_vm11, %v2476_v40, 0.0 }
 0x1bd   : > { %v1541_v11 = vmul.f32 %v4798_v32, %v4771_v10  ;;  %3208 = vpow2.f32 %v3056_v21  ;;  %v3207_v15 = vpop.eup %3206  ;;  %v1518_v30 = vsel %vm4834_vm5, %v4775_v47, %v1514_v52  ;;  %v2314_v47 = vsel %vm1910_vm11, %v2256_v36, 0.0  ;;  %v744_v36 = vld [vmem:[%s4096_s20 + $0x268] sm:$0xff] }
 0x1be   : > { %v1004_v48 = vpop.f32.mrf.mxu1  ;;  %v4870_v39 = vadd.f32 1.0, %v3207_v15  ;;  %v1533_v62 = vsel %vm4852_vm7, %v4777_v29, %v1529_v8  ;;  %v4885_v46 = vsel %vm1520_vm2, %v1522_v42, %v1518_v30  ;;  %v882_v29 = vpop.f32.mrf.mxu0  ;;  %vm1546_vm9 = vweird.f32 %v4798_v32 }
 0x1bf   : > { %v1005_v27 = vadd.f32 %v1004_v48, %v880_v38  ;;  %v1542_v45 = vsub.f32 1.0, %v1541_v11  ;;  %v2529_v38 = vsel %vm1910_vm11, %v2475_v53, 0.0  ;;  %v1159_v11 = vpop.f32.mrf.mxu3  ;;  %v1886_v19 = vmul.f32 %v4337_v43, %v4885_v46  ;;  %vm4907_vm6 = vmor %vm1545_vm3, %vm1546_vm9 }
 0x1c0   : > { %v1129_v5 = vpop.f32.mrf.mxu2  ;;  %v2477_v52 = vmul.f32 %v4404_v44, %v4773_v26  ;;  %vm4926_vm4 = vcmp.eq.f32.partialorder %v1549_v55, 8.507059e+37  ;;  %vm1560_vm8 = vweird.f32 %v4870_v39 }
 0x1c1   : > { %v1130_v61 = vadd.f32 %v1129_v5, %v1005_v27  ;;  %v1543_v50 = vmul.f32 %v4798_v32, %v1542_v45  ;;  %v739_v27 = vld [vmem:[%s4096_s20 + $0x240] sm:$0xff]  ;;  %v740_v45 = vld [vmem:[%s4096_s20 + $0x248] sm:$0xff]  ;;  %v1947_v53 = vsel %vm1910_vm11, %v1886_v19, 0.0 }
 0x1c2   : > { %2088 = vadd.xlane.f32.xlu2 %v2087_v6  ;;  %1945 = vadd.xlane.f32.xlu1 %v1944_v12  ;;  %v1537_v6 = vor.u32 1.1754944e-38, %v1536_v7  ;;  %v741_v12 = vld [vmem:[%s4096_s20 + $0x250] sm:$0xff] }
 0x1c3   : > { %2091 = vadd.xlane.f32.xlu0 %v2090_v41  ;;  %v3057_v34 = vmul.f32 -1.442695, %v1130_v61  ;;  %v3209_v41 = vpop.eup %3208  ;;  %1149 = vmatmul.f32.gmra.mxu2 %v741_v12  ;;  %v1544_v5 = vadd.f32 %v4798_v32, %v1543_v50  ;;  %v793_v7 = vld [vmem:[%s4290_s24 + $0x90] sm:$0xff]  ;;  %v2036_v12 = vmul.f32 %v4334_v0, %v4885_v46 }
 0x1c4   : > { %v4889_v49 = vadd.f32 1.0, %v3209_v41  ;;  %v4893_v48 = vsel %vm4875_vm12, %v1537_v6, %v1533_v62  ;;  %899 = vmatmul.f32.gmra.mxu0 %v739_v27  ;;  %1024 = vmatmul.f32.gmra.mxu1 %v740_v45  ;;  %v883_v40 = vadd.f32 %v882_v29, %v793_v7  ;;  %v2682_v6 = vld [vmem:[%s4818_s28] sm:$0xff]  ;;  %v742_v62 = vld [vmem:[%s4096_s20 + $0x258] sm:$0xff]  ;;  %v2257_v7 = vmul.f32 %v4364_v60, %v4885_v46 }
 0x1c5   : > { %3210 = vpow2.f32 %v3057_v34  ;;  %v1887_v4 = vmul.f32 %v4337_v43, %v4893_v48  ;;  %v1548_v26 = vsel %vm4907_vm6, %v4798_v32, %v1544_v5  ;;  %v2535_v32 = vsel %vm1910_vm11, %v2477_v52, 0.0  ;;  %v795_v45 = vld [vmem:[%s4290_s24 + $0xa0] sm:$0xff] }
 0x1c6   : > { %3212 = vrcp.f32 %v4870_v39  ;;  %v1007_v21 = vpop.f32.mrf.mxu1  ;;  %v2037_v55 = vmul.f32 %v4334_v0, %v4893_v48  ;;  %vm1575_vm15 = vweird.f32 %v4889_v49 }
 0x1c7   : > { %3214 = vrcp.f32 %v4889_v49 }
 0x1c8   : > { %v1132_v37 = vpop.f32.mrf.mxu2 }
 0x1ca   : > { %2309 = vadd.xlane.f32.xlu2 %v2308_v51  ;;  %2094 = vadd.xlane.f32.xlu1 %v2093_v1  ;;  %v885_v34 = vpop.f32.mrf.mxu0  ;;  %v747_v1 = vld [vmem:[%s4096_s20 + $0x280] sm:$0xff] }
 0x1cb   : > { %2312 = vadd.xlane.f32.xlu0 %v2311_v17  ;;  %v2685_v17 = vld [vmem:[%s4818_s28 + $0x18] sm:$0xff]  ;;  %v3211_v8 = vpop.eup %3210  ;;  %1152 = vmatmul.f32.gmra.mxu2 %v744_v36 }
 0x1cc   : > { %v4933_v3 = vpop.eup %3212  ;;  %v4940_v42 = vadd.f32 1.0, %v3211_v8  ;;  %902 = vmatmul.f32.gmra.mxu0 %v742_v62 }
 0x1cd   : > { %v4840_v59 = vpop.xlane.xlu2 %2061  ;;  %v1913_v9 = vpop.xlane.xlu0 %1912  ;;  %v1556_v50 = vmul.f32 %v4933_v3, %v4870_v39  ;;  %vm1561_vm13 = vweird.f32 %v4933_v3 }
 0x1ce   : > { %v2169_v24 = vsel %vm2020_vm1, %v4840_v59, %v1913_v9  ;;  %v794_v9 = vld [vmem:[%s4290_s24 + $0x98] sm:$0xff]  ;;  %v1010_v41 = vpop.f32.mrf.mxu1  ;;  %v4951_v57 = vpop.eup %3214  ;;  %3216 = vrcp.f32 %v4940_v42  ;;  %vm5021_vm7 = vmor %vm1560_vm8, %vm1561_vm13  ;;  %vm1590_vm9 = vweird.f32 %v4940_v42 }
 0x1cf   : > { %v2755_v58 = vmul.f32 %v2683_v56, %v2169_v24  ;;  %v1552_v56 = vor.u32 1.1754944e-38, %v1551_v22  ;;  %v1950_v24 = vsel %vm1910_vm11, %v1887_v4, 0.0  ;;  %v886_v30 = vadd.f32 %v885_v34, %v794_v9  ;;  %v745_v34 = vld [vmem:[%s4096_s20 + $0x270] sm:$0xff] }
 0x1d0   : > { %v1135_v19 = vpop.f32.mrf.mxu2  ;;  %v1571_v52 = vmul.f32 %v4951_v57, %v4889_v49  ;;  %v2096_v4 = vsel %vm1910_vm11, %v2036_v12, 0.0  ;;  %vm1576_vm5 = vweird.f32 %v4951_v57 }
 0x1d1   : > { %2828 = vst.msk [vmem:[%s4861_s5 + $0x8] sm:$0xff] %vm2827_vm10, %v2755_v58  ;;  %v4945_v58 = vsel %vm4926_vm4, %v1552_v56, %v1548_v26  ;;  %v2099_v26 = vsel %vm1910_vm11, %v2037_v55, 0.0  ;;  %vm5038_vm2 = vmor %vm1575_vm15, %vm1576_vm5 }
 0x1d2   : > { %2530 = vadd.xlane.f32.xlu2 %v2529_v38  ;;  %2315 = vadd.xlane.f32.xlu1 %v2314_v47  ;;  %v1888_v5 = vmul.f32 %v4337_v43, %v4945_v58  ;;  %v2038_v8 = vmul.f32 %v4334_v0, %v4945_v58 }
 0x1d3   : > { %2533 = vadd.xlane.f32.xlu0 %v2532_v20  ;;  %v1008_v20 = vadd.f32 %v1007_v21, %v883_v40  ;;  %1155 = vmatmul.f32.gmra.mxu2 %v747_v1  ;;  %v2687_v40 = vld [vmem:[%s4818_s28 + $0x28] sm:$0xff] }
 0x1d4   : > { %v2102_v12 = vsel %vm1910_vm11, %v2038_v8, 0.0  ;;  %905 = vmatmul.f32.gmra.mxu0 %v745_v34  ;;  %v1581_v8 = vand.u32 2147483648, %v4889_v49 }
 0x1d5   : > { %v2283_v51 = vpop.xlane.xlu2 %2282  ;;  %v1916_v35 = vpop.xlane.xlu1 %1915  ;;  %v1133_v56 = vadd.f32 %v1132_v37, %v1008_v20  ;;  %v2684_v20 = vld [vmem:[%s4818_s28 + $0x10] sm:$0xff] }
 0x1d6   : > { %v4911_v61 = vpop.xlane.xlu0 %2064  ;;  %v2389_v47 = vsel %vm2240_vm14, %v2283_v51, %v4840_v59  ;;  %v743_v59 = vld [vmem:[%s4096_s20 + $0x260] sm:$0xff]  ;;  %v1162_v51 = vpop.f32.mrf.mxu3 }
 0x1d7   : > { %v2171_v10 = vsel %vm2020_vm1, %v4911_v61, %v1916_v35  ;;  %1027 = vmatmul.f32.gmra.mxu1 %v743_v59  ;;  %v1160_v35 = vadd.f32 %v1159_v11, %v4492_v33  ;;  %v1163_v33 = vadd.f32 %v1162_v51, %v4517_v54  ;;  %v1953_v11 = vsel %vm1910_vm11, %v1888_v5, 0.0  ;;  %v4987_v54 = vpop.eup %3216 }
 0x1d8   : > { %v2757_v31 = vmul.f32 %v2685_v17, %v2171_v10  ;;  %v1011_v17 = vadd.f32 %v1010_v41, %v886_v30  ;;  %v1557_v10 = vsub.f32 1.0, %v1556_v50  ;;  %v888_v9 = vpop.f32.mrf.mxu0  ;;  %v3058_v30 = vmul.f32 -1.442695, %v1133_v56 }
 0x1d9   : > { %v889_v37 = vadd.f32 %v888_v9, %v795_v45  ;;  %v3067_v36 = vmul.f32 -1.442695, %v1160_v35  ;;  %v3068_v50 = vmul.f32 -1.442695, %v1163_v33  ;;  %v1586_v1 = vmul.f32 %v4987_v54, %v4940_v42 }
 0x1da   : > { %2830 = vst.msk [vmem:[%s4861_s5 + $0x18] sm:$0xff] %vm2827_vm10, %v2757_v31  ;;  %1948 = vadd.xlane.f32.xlu2 %v1947_v53  ;;  %2536 = vadd.xlane.f32.xlu1 %v2535_v32  ;;  %v2258_v31 = vmul.f32 %v4364_v60, %v4893_v48  ;;  %v1136_v15 = vadd.f32 %v1135_v19, %v1011_v17  ;;  %v1572_v53 = vsub.f32 1.0, %v1571_v52  ;;  %v2317_v32 = vsel %vm1910_vm11, %v2257_v7, 0.0  ;;  %v746_v17 = vld [vmem:[%s4096_s20 + $0x278] sm:$0xff] }
 0x1db   : > { %1951 = vadd.xlane.f32.xlu0 %v1950_v24  ;;  %v1013_v24 = vpop.f32.mrf.mxu1  ;;  %v1558_v62 = vmul.f32 %v4933_v3, %v1557_v10  ;;  %v1566_v19 = vand.u32 2147483648, %v4870_v39  ;;  %3218 = vpow2.f32 %v3058_v30  ;;  %v2478_v10 = vmul.f32 %v4404_v44, %v4885_v46 }
 0x1dc   : > { %v2320_v41 = vsel %vm1910_vm11, %v2258_v31, 0.0  ;;  %v3059_v5 = vmul.f32 -1.442695, %v1136_v15  ;;  %v1014_v55 = vadd.f32 %v1013_v24, %v889_v37  ;;  %v1573_v52 = vmul.f32 %v4951_v57, %v1572_v53  ;;  %v2686_v15 = vld [vmem:[%s4818_s28 + $0x20] sm:$0xff] }
 0x1dd   : > { %v2504_v38 = vpop.xlane.xlu2 %2503  ;;  %v4958_v29 = vpop.xlane.xlu1 %2067  ;;  %v1587_v31 = vsub.f32 1.0, %v1586_v1  ;;  %v2479_v33 = vmul.f32 %v4404_v44, %v4893_v48  ;;  %v1567_v37 = vor.u32 1.1754944e-38, %v1566_v19  ;;  %v2538_v34 = vsel %vm1910_vm11, %v2478_v10, 0.0 }
 0x1de   : > { %v2610_v22 = vsel %vm2461_vm0, %v2504_v38, %v2389_v47  ;;  %v2286_v27 = vpop.xlane.xlu0 %2285  ;;  %v1165_v7 = vpop.f32.mrf.mxu3  ;;  %3220 = vpow2.f32 %v3059_v5  ;;  %v1582_v30 = vor.u32 1.1754944e-38, %v1581_v8  ;;  %vm1591_vm6 = vweird.f32 %v4987_v54 }
 0x1df   : > { %v2754_v21 = vmul.f32 %v2682_v6, %v2610_v22  ;;  %v2391_v59 = vsel %vm2240_vm14, %v2286_v27, %v4911_v61  ;;  %1030 = vmatmul.f32.gmra.mxu1 %v746_v17  ;;  %v1559_v27 = vadd.f32 %v4933_v3, %v1558_v62  ;;  %3222 = vpow2.f32 %v3067_v36  ;;  %vm5091_vm4 = vmor %vm1590_vm9, %vm1591_vm6 }
 0x1e0   : > { %3224 = vpow2.f32 %v3068_v50  ;;  %v1166_v46 = vadd.f32 %v1165_v7, %v4542_v63  ;;  %v1596_v17 = vand.u32 2147483648, %v4940_v42 }
 0x1e1   : > { %2826 = vst [vmem:[%s4861_s5] sm:$0xff] %v2754_v21  ;;  %v1138_v21 = vpop.f32.mrf.mxu2  ;;  %v3219_v24 = vpop.eup %3218 }
 0x1e2   : > { %2097 = vadd.xlane.f32.xlu2 %v2096_v4  ;;  %1954 = vadd.xlane.f32.xlu1 %v1953_v11  ;;  %v1564_v4 = vand.u32 2147483647, %v4870_v39  ;;  %v1139_v45 = vadd.f32 %v1138_v21, %v1014_v55  ;;  %v1574_v11 = vadd.f32 %v4951_v57, %v1573_v52  ;;  %v2259_v39 = vmul.f32 %v4364_v60, %v4945_v58 }
 0x1e3   : > { %2100 = vadd.xlane.f32.xlu0 %v2099_v26  ;;  %v1579_v26 = vand.u32 2147483647, %v4889_v49  ;;  %v3069_v50 = vmul.f32 -1.442695, %v1166_v46  ;;  %v1594_v21 = vand.u32 2147483647, %v4940_v42  ;;  %v2480_v52 = vmul.f32 %v4404_v44, %v4945_v58 }
 0x1e4   : > { %vm1565_vm12 = vcmp.eq.f32.partialorder %v1564_v4, 8.507059e+37  ;;  %v1597_v8 = vor.u32 1.1754944e-38, %v1596_v17 }
 0x1e5   : > { %v1919_v6 = vpop.xlane.xlu2 %1918  ;;  %v2289_v47 = vpop.xlane.xlu1 %2288  ;;  %vm5054_vm3 = vcmp.eq.f32.partialorder %v1579_v26, 8.507059e+37  ;;  %vm1595_vm8 = vcmp.eq.f32.partialorder %v1594_v21, 8.507059e+37  ;;  %v2544_v46 = vsel %vm1910_vm11, %v2480_v52, 0.0 }
 0x1e6   : > { %v2173_v38 = vsel %vm2020_vm1, %v4958_v29, %v1919_v6  ;;  %v2507_v22 = vpop.xlane.xlu0 %2506  ;;  %v2393_v48 = vsel %vm2240_vm14, %v2289_v47, %v4958_v29  ;;  %v3221_v6 = vpop.eup %3220  ;;  %v1578_v29 = vsel %vm5038_vm2, %v4951_v57, %v1574_v11  ;;  %v2323_v47 = vsel %vm1910_vm11, %v2259_v39, 0.0 }
 0x1e7   : > { %v2759_v51 = vmul.f32 %v2687_v40, %v2173_v38  ;;  %v2612_v35 = vsel %vm2461_vm0, %v2507_v22, %v2391_v59  ;;  %v3060_v40 = vmul.f32 -1.442695, %v1139_v45  ;;  %v3223_v62 = vpop.eup %3222  ;;  %v2541_v38 = vsel %vm1910_vm11, %v2479_v33, 0.0  ;;  %v2689_v59 = vld [vmem:[%s4818_s28 + $0x38] sm:$0xff] }
 0x1e8   : > { %v2756_v61 = vmul.f32 %v2684_v20, %v2612_v35  ;;  %v5063_v22 = vadd.f32 1.0, %v3219_v24  ;;  %v3225_v57 = vpop.eup %3224  ;;  %v5068_v5 = vadd.f32 1.0, %v3221_v6  ;;  %v5072_v55 = vsel %vm5054_vm3, %v1582_v30, %v1578_v29  ;;  %v2691_v35 = vld [vmem:[%s4818_s28 + $0x48] sm:$0xff] }
 0x1e9   : > { %2832 = vst.msk [vmem:[%s4861_s5 + $0x28] sm:$0xff] %vm2827_vm10, %v2759_v51  ;;  %3226 = vpow2.f32 %v3060_v40  ;;  %v5078_v19 = vadd.f32 1.0, %v3223_v62  ;;  %v5095_v4 = vadd.f32 1.0, %v3225_v57  ;;  %v1890_v10 = vmul.f32 %v4337_v43, %v5072_v55 }
 0x1ea   : > { %2318 = vadd.xlane.f32.xlu2 %v2317_v32  ;;  %2829 = vst [vmem:[%s4861_s5 + $0x10] sm:$0xff] %v2756_v61  ;;  %2103 = vadd.xlane.f32.xlu1 %v2102_v12  ;;  %v1563_v32 = vsel %vm5021_vm7, %v4933_v3, %v1559_v27  ;;  %v1588_v3 = vmul.f32 %v4987_v54, %v1587_v31  ;;  %3228 = vpow2.f32 %v3069_v50  ;;  %v2690_v27 = vld [vmem:[%s4818_s28 + $0x40] sm:$0xff]  ;;  %vm1605_vm13 = vweird.f32 %v5063_v22 }
 0x1eb   : > { %2321 = vadd.xlane.f32.xlu0 %v2320_v41  ;;  %v5061_v20 = vsel %vm1565_vm12, %v1567_v37, %v1563_v32  ;;  %3230 = vrcp.f32 %v5063_v22  ;;  %vm1620_vm5 = vweird.f32 %v5068_v5  ;;  %vm1740_vm2 = vweird.f32 %v5078_v19 }
 0x1ec   : > { %v1589_v51 = vadd.f32 %v4987_v54, %v1588_v3  ;;  %v1889_v61 = vmul.f32 %v4337_v43, %v5061_v20  ;;  %3232 = vrcp.f32 %v5068_v5 }
 0x1ed   : > { %v1922_v9 = vpop.xlane.xlu2 %1921  ;;  %v2510_v53 = vpop.xlane.xlu1 %2509  ;;  %3234 = vrcp.f32 %v5078_v19 }
 0x1ee   : > { %v1925_v63 = vpop.xlane.xlu0 %1924  ;;  %v2614_v49 = vsel %vm2461_vm0, %v2510_v53, %v2393_v48  ;;  %v1593_v11 = vsel %vm5091_vm4, %v4987_v54, %v1589_v51  ;;  %v1956_v26 = vsel %vm1910_vm11, %v1889_v61, 0.0  ;;  %3236 = vrcp.f32 %v5095_v4  ;;  %v2693_v48 = vld [vmem:[%s4818_s28 + $0x58] sm:$0xff]  ;;  %v2688_v51 = vld [vmem:[%s4818_s28 + $0x30] sm:$0xff] }
 0x1ef   : > { %v2758_v12 = vmul.f32 %v2686_v15, %v2614_v49  ;;  %v3227_v31 = vpop.eup %3226  ;;  %v1959_v15 = vsel %vm1910_vm11, %v1890_v10, 0.0  ;;  %v5120_v54 = vsel %vm1595_vm8, %v1597_v8, %v1593_v11  ;;  %v2040_v49 = vmul.f32 %v4334_v0, %v5072_v55 }
 0x1f0   : > { %v5118_v39 = vadd.f32 1.0, %v3227_v31  ;;  %v1891_v24 = vmul.f32 %v4337_v43, %v5120_v54  ;;  %v2041_v21 = vmul.f32 %v4334_v0, %v5120_v54 }
 0x1f1   : > { %2831 = vst [vmem:[%s4861_s5 + $0x20] sm:$0xff] %v2758_v12 }
 0x1f2   : > { %2539 = vadd.xlane.f32.xlu2 %v2538_v34  ;;  %2324 = vadd.xlane.f32.xlu1 %v2323_v47  ;;  %3238 = vrcp.f32 %v5118_v39  ;;  %v1962_v47 = vsel %vm1910_vm11, %v1891_v24, 0.0 }
 0x1f3   : > { %2542 = vadd.xlane.f32.xlu0 %v2541_v38  ;;  %v2108_v38 = vsel %vm1910_vm11, %v2040_v49, 0.0  ;;  %v1611_v49 = vand.u32 2147483648, %v5063_v22 }
 0x1f5   : > { %v5080_v1 = vpop.xlane.xlu2 %2070  ;;  %v1928_v7 = vpop.xlane.xlu1 %1927 }
 0x1f6   : > { %v2175_v58 = vsel %vm2020_vm1, %v5080_v1, %v1922_v9  ;;  %v2074_v45 = vpop.xlane.xlu0 %2073  ;;  %v3229_v9 = vpop.eup %3228 }
 0x1f7   : > { %v2761_v42 = vmul.f32 %v2689_v59, %v2175_v58  ;;  %v2177_v56 = vsel %vm2020_vm1, %v2074_v45, %v1925_v63  ;;  %v5122_v37 = vpop.eup %3230  ;;  %v2039_v63 = vmul.f32 %v4334_v0, %v5061_v20  ;;  %v5145_v29 = vadd.f32 1.0, %v3229_v9 }
 0x1f8   : > { %v2763_v33 = vmul.f32 %v2691_v35, %v2177_v56  ;;  %v5124_v36 = vpop.eup %3232  ;;  %v1601_v30 = vmul.f32 %v5122_v37, %v5063_v22  ;;  %v1744_v58 = vand.u32 2147483647, %v5078_v19  ;;  %v2111_v9 = vsel %vm1910_vm11, %v2041_v21, 0.0 }
 0x1f9   : > { %2834 = vst.msk [vmem:[%s4861_s5 + $0x38] sm:$0xff] %vm2827_vm10, %v2761_v42  ;;  %v5135_v34 = vpop.eup %3234  ;;  %v1616_v41 = vmul.f32 %v5124_v36, %v5068_v5  ;;  %v2105_v62 = vsel %vm1910_vm11, %v2039_v63, 0.0  ;;  %3240 = vrcp.f32 %v5145_v29  ;;  %v2262_v63 = vmul.f32 %v4364_v60, %v5120_v54 }
 0x1fa   : > { %2836 = vst.msk [vmem:[%s4861_s5 + $0x48] sm:$0xff] %vm2827_vm10, %v2763_v33  ;;  %1957 = vadd.xlane.f32.xlu2 %v1956_v26  ;;  %2545 = vadd.xlane.f32.xlu1 %v2544_v46  ;;  %v5143_v12 = vpop.eup %3236  ;;  %v5152_v50 = vmul.f32 %v5135_v34, %v5078_v19  ;;  %v1602_v17 = vsub.f32 1.0, %v1601_v30  ;;  %vm1606_vm15 = vweird.f32 %v5122_v37  ;;  %vm1621_vm7 = vweird.f32 %v5124_v36 }
 0x1fb   : > { %1960 = vadd.xlane.f32.xlu0 %v1959_v15  ;;  %v5160_v57 = vmul.f32 %v5143_v12, %v5095_v4  ;;  %v1617_v59 = vsub.f32 1.0, %v1616_v41  ;;  %v5166_v35 = vpop.eup %3238  ;;  %v1626_v41 = vand.u32 2147483648, %v5068_v5  ;;  %vm5214_vm12 = vmor %vm1605_vm13, %vm1606_vm15  ;;  %vm1741_vm3 = vweird.f32 %v5135_v34 }
 0x1fc   : > { %v1737_v10 = vsub.f32 1.0, %v5152_v50  ;;  %v1603_v46 = vmul.f32 %v5122_v37, %v1602_v17  ;;  %vm5236_vm9 = vmor %vm1620_vm5, %vm1621_vm7  ;;  %vm1756_vm8 = vweird.f32 %v5143_v12  ;;  %vm1635_vm13 = vweird.f32 %v5118_v39 }
 0x1fd   : > { %v2292_v53 = vpop.xlane.xlu2 %2291  ;;  %v5129_v40 = vpop.xlane.xlu1 %2076  ;;  %v1752_v33 = vsub.f32 1.0, %v5160_v57  ;;  %v1624_v57 = vand.u32 2147483647, %v5068_v5  ;;  %vm1636_vm15 = vweird.f32 %v5166_v35  ;;  %vm5275_vm5 = vmor %vm1740_vm2, %vm1741_vm3  ;;  %vm1755_vm7 = vweird.f32 %v5095_v4 }
 0x1fe   : > { %v2295_v32 = vpop.xlane.xlu0 %2294  ;;  %v2179_v6 = vsel %vm2020_vm1, %v5129_v40, %v1928_v7  ;;  %v2395_v52 = vsel %vm2240_vm14, %v2292_v53, %v5080_v1  ;;  %v2260_v7 = vmul.f32 %v4364_v60, %v5061_v20  ;;  %v2261_v1 = vmul.f32 %v4364_v60, %v5072_v55  ;;  %vm5293_vm2 = vmor %vm1755_vm7, %vm1756_vm8 }
 0x1ff   : > { %v2765_v3 = vmul.f32 %v2693_v48, %v2179_v6  ;;  %v2397_v42 = vsel %vm2240_vm14, %v2295_v32, %v2074_v45  ;;  %v1631_v45 = vmul.f32 %v5166_v35, %v5118_v39  ;;  %v1618_v48 = vmul.f32 %v5124_v36, %v1617_v59  ;;  %v5196_v32 = vpop.eup %3240  ;;  %v5225_v59 = vpop.f32.mrf.mxu3  ;;  %vm5309_vm3 = vmor %vm1635_vm13, %vm1636_vm15 }
 0x200   : > { %v2326_v53 = vsel %vm1910_vm11, %v2260_v7, 0.0  ;;  %v2329_v24 = vsel %vm1910_vm11, %v2261_v1, 0.0  ;;  %v1604_v30 = vadd.f32 %v5122_v37, %v1603_v46  ;;  %v1609_v6 = vand.u32 2147483647, %v5063_v22 }
 0x201   : > { %2838 = vst.msk [vmem:[%s4861_s5 + $0x58] sm:$0xff] %vm2827_vm10, %v2765_v3  ;;  %v5207_v3 = vpop.f32.mrf.mxu0  ;;  %v1632_v50 = vsub.f32 1.0, %v1631_v45  ;;  %v5223_v17 = vmul.f32 %v5196_v32, %v5145_v29  ;;  %v2481_v22 = vmul.f32 %v4404_v44, %v5061_v20  ;;  %v2332_v20 = vsel %vm1910_vm11, %v2262_v63, 0.0  ;;  %v5280_v63 = vpop.f32.mrf.mxu2 }
 0x202   : > { %2106 = vadd.xlane.f32.xlu2 %v2105_v62  ;;  %1963 = vadd.xlane.f32.xlu1 %v1962_v47  ;;  %v1746_v62 = vand.u32 2147483648, %v5078_v19  ;;  %v1608_v1 = vsel %vm5214_vm12, %v5122_v37, %v1604_v30  ;;  %vm1610_vm6 = vcmp.eq.f32.partialorder %v1609_v6, 8.507059e+37  ;;  %vm1625_vm4 = vcmp.eq.f32.partialorder %v1624_v57, 8.507059e+37 }
 0x203   : > { %2109 = vadd.xlane.f32.xlu0 %v2108_v38  ;;  %v1619_v38 = vadd.f32 %v5124_v36, %v1618_v48  ;;  %v1641_v48 = vand.u32 2147483648, %v5118_v39  ;;  %v1639_v30 = vand.u32 2147483647, %v5118_v39  ;;  %vm5287_vm12 = vcmp.eq.f32.partialorder %v1744_v58, 8.507059e+37  ;;  %v798_v58 = vld [vmem:[%s4290_s24 + $0xb8] sm:$0xff] }
 0x204   : > { %v2483_v57 = vmul.f32 %v4404_v44, %v5120_v54  ;;  %vm1770_vm8 = vweird.f32 %v5145_v29 }
 0x205   : > { %v2513_v61 = vpop.xlane.xlu2 %2512  ;;  %v2298_v56 = vpop.xlane.xlu1 %2297 }
 0x206   : > { %v2616_v8 = vsel %vm2461_vm0, %v2513_v61, %v2395_v52  ;;  %v2516_v31 = vpop.xlane.xlu0 %2515  ;;  %v2482_v52 = vmul.f32 %v4404_v44, %v5072_v55  ;;  %v2399_v7 = vsel %vm2240_vm14, %v2298_v56, %v5129_v40  ;;  %v1612_v55 = vor.u32 1.1754944e-38, %v1611_v49 }
 0x207   : > { %v2760_v11 = vmul.f32 %v2688_v51, %v2616_v8  ;;  %v2618_v26 = vsel %vm2461_vm0, %v2516_v31, %v2397_v42  ;;  %v2692_v51 = vld [vmem:[%s4818_s28 + $0x50] sm:$0xff]  ;;  %v1753_v31 = vmul.f32 %v5143_v12, %v1752_v33  ;;  %v1623_v56 = vsel %vm5236_vm9, %v5124_v36, %v1619_v38  ;;  %v2697_v38 = vld [vmem:[%s4818_s28 + $0x78] sm:$0xff] }
 0x208   : > { %v2762_v15 = vmul.f32 %v2690_v27, %v2618_v26  ;;  %v1738_v27 = vmul.f32 %v5135_v34, %v1737_v10  ;;  %v1627_v10 = vor.u32 1.1754944e-38, %v1626_v41  ;;  %v1633_v26 = vmul.f32 %v5166_v35, %v1632_v50 }
 0x209   : > { %2833 = vst [vmem:[%s4861_s5 + $0x30] sm:$0xff] %v2760_v11  ;;  %v5251_v11 = vpop.f32.mrf.mxu1  ;;  %v2547_v33 = vsel %vm1910_vm11, %v2481_v22, 0.0  ;;  %v2550_v46 = vsel %vm1910_vm11, %v2482_v52, 0.0  ;;  %v5262_v37 = vsel %vm1610_vm6, %v1612_v55, %v1608_v1  ;;  %v1754_v36 = vadd.f32 %v5143_v12, %v1753_v31  ;;  %v894_v22 = vpop.f32.mrf.mxu0  ;;  %v797_v55 = vld [vmem:[%s4290_s24 + $0xb0] sm:$0xff] }
 0x20a   : > { %2835 = vst [vmem:[%s4861_s5 + $0x40] sm:$0xff] %v2762_v15  ;;  %2327 = vadd.xlane.f32.xlu2 %v2326_v53  ;;  %2112 = vadd.xlane.f32.xlu1 %v2111_v9  ;;  %v1739_v45 = vadd.f32 %v5135_v34, %v1738_v27  ;;  %v1767_v15 = vsub.f32 1.0, %v5223_v17  ;;  %v5268_v9 = vsel %vm1625_vm4, %v1627_v10, %v1623_v56  ;;  %v1761_v50 = vand.u32 2147483648, %v5095_v4  ;;  %v796_v27 = vld [vmem:[%s4290_s24 + $0xa8] sm:$0xff] }
 0x20b   : > { %2330 = vadd.xlane.f32.xlu0 %v2329_v24  ;;  %v2695_v24 = vld [vmem:[%s4818_s28 + $0x68] sm:$0xff]  ;;  %v1634_v49 = vadd.f32 %v5166_v35, %v1633_v26  ;;  %v1892_v19 = vmul.f32 %v4337_v43, %v5262_v37  ;;  %v1747_v17 = vor.u32 1.1754944e-38, %v1746_v62  ;;  %v1893_v39 = vmul.f32 %v4337_v43, %v5268_v9  ;;  %v1171_v62 = vpop.f32.mrf.mxu3  ;;  %v1144_v6 = vpop.f32.mrf.mxu2 }
 0x20c   : > { %v1768_v31 = vmul.f32 %v5196_v32, %v1767_v15  ;;  %vm5336_vm9 = vcmp.eq.f32.partialorder %v1639_v30, 8.507059e+37  ;;  %vm1771_vm4 = vweird.f32 %v5196_v32  ;;  %v1776_v15 = vand.u32 2147483648, %v5145_v29 }
 0x20d   : > { %v1931_v21 = vpop.xlane.xlu2 %1930  ;;  %v2519_v42 = vpop.xlane.xlu1 %2518  ;;  %v1965_v10 = vsel %vm1910_vm11, %v1892_v19, 0.0  ;;  %v1968_v26 = vsel %vm1910_vm11, %v1893_v39, 0.0  ;;  %v1774_v30 = vand.u32 2147483647, %v5145_v29  ;;  %vm5373_vm13 = vmor %vm1770_vm8, %vm1771_vm4 }
 0x20e   : > { %v1934_v8 = vpop.xlane.xlu0 %1933  ;;  %v2620_v5 = vsel %vm2461_vm0, %v2519_v42, %v2399_v7  ;;  %v1743_v7 = vsel %vm5275_vm5, %v5135_v34, %v1739_v45  ;;  %v1638_v34 = vsel %vm5309_vm3, %v5166_v35, %v1634_v49  ;;  %v2553_v35 = vsel %vm1910_vm11, %v2483_v57, 0.0 }
 0x20f   : > { %v2764_v40 = vmul.f32 %v2692_v51, %v2620_v5  ;;  %v1759_v51 = vand.u32 2147483647, %v5095_v4  ;;  %v1758_v4 = vsel %vm5293_vm2, %v5143_v12, %v1754_v36  ;;  %v1762_v12 = vor.u32 1.1754944e-38, %v1761_v50 }
 0x210   : > { %v1769_v45 = vadd.f32 %v5196_v32, %v1768_v31  ;;  %vm1775_vm15 = vcmp.eq.f32.partialorder %v1774_v30, 8.507059e+37  ;;  %v2042_v31 = vmul.f32 %v4334_v0, %v5262_v37  ;;  %v2698_v30 = vld [vmem:[%s4818_s28 + $0x80] sm:$0xff] }
 0x211   : > { %2837 = vst [vmem:[%s4861_s5 + $0x50] sm:$0xff] %v2764_v40  ;;  %v5346_v40 = vsel %vm5287_vm12, %v1747_v17, %v1743_v7  ;;  %vm1760_vm6 = vcmp.eq.f32.partialorder %v1759_v51, 8.507059e+37  ;;  %v1019_v56 = vpop.f32.mrf.mxu1  ;;  %v897_v17 = vpop.f32.mrf.mxu0  ;;  %v1169_v51 = vadd.f32 %v5225_v59, %v4599_v28 }
 0x212   : > { %2548 = vadd.xlane.f32.xlu2 %v2547_v33  ;;  %2333 = vadd.xlane.f32.xlu1 %v2332_v20  ;;  %v1642_v20 = vor.u32 1.1754944e-38, %v1641_v48  ;;  %v5352_v33 = vsel %vm1760_vm6, %v1762_v12, %v1758_v4  ;;  %v1901_v36 = vmul.f32 %v4337_v43, %v5346_v40  ;;  %v2699_v48 = vld [vmem:[%s4818_s28 + $0x88] sm:$0xff]  ;;  %v1773_v29 = vsel %vm5373_vm13, %v5196_v32, %v1769_v45  ;;  %v2696_v12 = vld [vmem:[%s4818_s28 + $0x70] sm:$0xff] }
 0x213   : > { %2551 = vadd.xlane.f32.xlu0 %v2550_v46  ;;  %v895_v46 = vadd.f32 %v894_v22, %v797_v55  ;;  %v1902_v49 = vmul.f32 %v4337_v43, %v5352_v33  ;;  %v1174_v39 = vpop.f32.mrf.mxu3  ;;  %v898_v59 = vadd.f32 %v897_v17, %v798_v58  ;;  %v2052_v58 = vmul.f32 %v4334_v0, %v5352_v33 }
 0x214   : > { %v1175_v55 = vadd.f32 %v1174_v39, %v4668_v18 }
 0x215   : > { %v5298_v47 = vpop.xlane.xlu2 %2079  ;;  %v1937_v52 = vpop.xlane.xlu1 %1936  ;;  %v1020_v57 = vadd.f32 %v1019_v56, %v895_v46  ;;  %v1995_v7 = vsel %vm1910_vm11, %v1902_v49, 0.0 }
 0x216   : > { %v2181_v54 = vsel %vm2020_vm1, %v5298_v47, %v1931_v21  ;;  %v5317_v61 = vpop.xlane.xlu0 %2082 }
 0x217   : > { %v2767_v42 = vmul.f32 %v2695_v24, %v2181_v54  ;;  %v2183_v21 = vsel %vm2020_vm1, %v5317_v61, %v1934_v8  ;;  %v892_v8 = vadd.f32 %v5207_v3, %v796_v27  ;;  %v5356_v3 = vsel %vm5336_vm9, %v1642_v20, %v1638_v34 }
 0x218   : > { %v2769_v5 = vmul.f32 %v2697_v38, %v2183_v21  ;;  %v1894_v38 = vmul.f32 %v4337_v43, %v5356_v3  ;;  %v1777_v54 = vor.u32 1.1754944e-38, %v1776_v15  ;;  %v1992_v27 = vsel %vm1910_vm11, %v1901_v36, 0.0  ;;  %v1147_v36 = vpop.f32.mrf.mxu2 }
 0x219   : > { %2840 = vst.msk [vmem:[%s4861_s5 + $0x68] sm:$0xff] %vm2827_vm10, %v2767_v42  ;;  %v1017_v24 = vadd.f32 %v5251_v11, %v892_v8  ;;  %v1145_v28 = vadd.f32 %v1144_v6, %v1020_v57  ;;  %v1172_v42 = vadd.f32 %v1171_v62, %v4639_v2  ;;  %v1022_v21 = vpop.f32.mrf.mxu1  ;;  %v3070_v20 = vmul.f32 -1.442695, %v1169_v51 }
 0x21a   : > { %2842 = vst.msk [vmem:[%s4861_s5 + $0x78] sm:$0xff] %vm2827_vm10, %v2769_v5  ;;  %1966 = vadd.xlane.f32.xlu2 %v1965_v10  ;;  %2554 = vadd.xlane.f32.xlu1 %v2553_v35  ;;  %v1971_v32 = vsel %vm1910_vm11, %v1894_v38, 0.0  ;;  %v2043_v62 = vmul.f32 %v4334_v0, %v5268_v9  ;;  %v1023_v35 = vadd.f32 %v1022_v21, %v898_v59  ;;  %v3072_v15 = vmul.f32 -1.442695, %v1175_v55  ;;  %v2701_v21 = vld [vmem:[%s4818_s28 + $0x98] sm:$0xff] }
 0x21b   : > { %1969 = vadd.xlane.f32.xlu0 %v1968_v26  ;;  %v1142_v4 = vadd.f32 %v5280_v63, %v1017_v24  ;;  %v2694_v63 = vld [vmem:[%s4818_s28 + $0x60] sm:$0xff]  ;;  %v3062_v56 = vmul.f32 -1.442695, %v1145_v28  ;;  %v3071_v26 = vmul.f32 -1.442695, %v1172_v42  ;;  %3242 = vpow2.f32 %v3070_v20 }
 0x21c   : > { %v2117_v24 = vsel %vm1910_vm11, %v2043_v62, 0.0  ;;  %v1148_v49 = vadd.f32 %v1147_v36, %v1023_v35  ;;  %v2144_v28 = vsel %vm1910_vm11, %v2052_v58, 0.0  ;;  %v2264_v62 = vmul.f32 %v4364_v60, %v5268_v9 }
 0x21d   : > { %v2301_v53 = vpop.xlane.xlu2 %2300  ;;  %v5369_v41 = vpop.xlane.xlu1 %2085  ;;  %v3061_v34 = vmul.f32 -1.442695, %v1142_v4 }
 0x21e   : > { %v2304_v50 = vpop.xlane.xlu0 %2303  ;;  %v2185_v11 = vsel %vm2020_vm1, %v5369_v41, %v1937_v52  ;;  %v5392_v52 = vsel %vm1775_vm15, %v1777_v54, %v1773_v29  ;;  %v2401_v5 = vsel %vm2240_vm14, %v2301_v53, %v5298_v47  ;;  %v2044_v29 = vmul.f32 %v4334_v0, %v5356_v3 }
 0x21f   : > { %v2771_v22 = vmul.f32 %v2699_v48, %v2185_v11  ;;  %v1903_v2 = vmul.f32 %v4337_v43, %v5392_v52  ;;  %v2403_v18 = vsel %vm2240_vm14, %v2304_v50, %v5317_v61  ;;  %3244 = vpow2.f32 %v3061_v34 }
 0x220   : > { %v2114_v61 = vsel %vm1910_vm11, %v2042_v31, 0.0  ;;  %3246 = vpow2.f32 %v3062_v56  ;;  %v2051_v50 = vmul.f32 %v4334_v0, %v5346_v40  ;;  %v3063_v17 = vmul.f32 -1.442695, %v1148_v49  ;;  %v2703_v31 = vld [vmem:[%s4818_s28 + $0xa8] sm:$0xff] }
 0x221   : > { %2844 = vst.msk [vmem:[%s4861_s5 + $0x88] sm:$0xff] %vm2827_vm10, %v2771_v22  ;;  %v1998_v53 = vsel %vm1910_vm11, %v1903_v2, 0.0  ;;  %3248 = vpow2.f32 %v3071_v26  ;;  %v3243_v38 = vpop.eup %3242  ;;  %v2053_v2 = vmul.f32 %v4334_v0, %v5392_v52  ;;  %v2338_v26 = vsel %vm1910_vm11, %v2264_v62, 0.0 }
 0x222   : > { %1993 = vadd.xlane.f32.xlu2 %v1992_v27  ;;  %1972 = vadd.xlane.f32.xlu1 %v1971_v32  ;;  %3250 = vpow2.f32 %v3072_v15  ;;  %v2120_v32 = vsel %vm1910_vm11, %v2044_v29, 0.0  ;;  %v5439_v42 = vadd.f32 1.0, %v3243_v38  ;;  %v2705_v15 = vld [vmem:[%s4818_s28 + $0xb8] sm:$0xff] }
 0x223   : > { %1996 = vadd.xlane.f32.xlu0 %v1995_v7  ;;  %v2141_v7 = vsel %vm1910_vm11, %v2051_v50, 0.0  ;;  %3252 = vpow2.f32 %v3063_v17  ;;  %v2147_v35 = vsel %vm1910_vm11, %v2053_v2, 0.0 }
 0x224   : > { %vm1785_vm9 = vweird.f32 %v5439_v42 }
 0x225   : > { %v2522_v1 = vpop.xlane.xlu2 %2521  ;;  %v2307_v10 = vpop.xlane.xlu1 %2306 }
 0x226   : > { %v2622_v8 = vsel %vm2461_vm0, %v2522_v1, %v2401_v5  ;;  %v2525_v47 = vpop.xlane.xlu0 %2524  ;;  %v2405_v57 = vsel %vm2240_vm14, %v2307_v10, %v5369_v41  ;;  %v3245_v51 = vpop.eup %3244  ;;  %v2263_v5 = vmul.f32 %v4364_v60, %v5262_v37 }
 0x227   : > { %v2766_v46 = vmul.f32 %v2694_v63, %v2622_v8  ;;  %v2624_v45 = vsel %vm2461_vm0, %v2525_v47, %v2403_v18  ;;  %v3247_v54 = vpop.eup %3246  ;;  %v5432_v4 = vadd.f32 1.0, %v3245_v51 }
 0x228   : > { %v2768_v48 = vmul.f32 %v2696_v12, %v2624_v45  ;;  %v3249_v27 = vpop.eup %3248  ;;  %v5437_v59 = vadd.f32 1.0, %v3247_v54  ;;  %v2335_v56 = vsel %vm1910_vm11, %v2263_v5, 0.0 }
 0x229   : > { %2839 = vst [vmem:[%s4861_s5 + $0x60] sm:$0xff] %v2766_v46  ;;  %v3251_v41 = vpop.eup %3250  ;;  %v5442_v20 = vadd.f32 1.0, %v3249_v27  ;;  %3254 = vrcp.f32 %v5432_v4  ;;  %vm1650_vm5 = vweird.f32 %v5432_v4 }
 0x22a   : > { %2841 = vst [vmem:[%s4861_s5 + $0x70] sm:$0xff] %v2768_v48  ;;  %2115 = vadd.xlane.f32.xlu2 %v2114_v61  ;;  %1999 = vadd.xlane.f32.xlu1 %v1998_v53  ;;  %v5444_v55 = vadd.f32 1.0, %v3251_v41  ;;  %3256 = vrcp.f32 %v5437_v59  ;;  %v3253_v8 = vpop.eup %3252  ;;  %v2272_v61 = vmul.f32 %v4364_v60, %v5346_v40  ;;  %v2700_v41 = vld [vmem:[%s4818_s28 + $0x90] sm:$0xff]  ;;  %vm1665_vm12 = vweird.f32 %v5437_v59 }
 0x22b   : > { %2118 = vadd.xlane.f32.xlu0 %v2117_v24  ;;  %3258 = vrcp.f32 %v5439_v42  ;;  %v5469_v46 = vadd.f32 1.0, %v3253_v8 }
 0x22c   : > { %3260 = vrcp.f32 %v5442_v20  ;;  %v2362_v17 = vsel %vm1910_vm11, %v2272_v61, 0.0 }
 0x22d   : > { %v1940_v6 = vpop.xlane.xlu2 %1939  ;;  %v2528_v19 = vpop.xlane.xlu1 %2527  ;;  %3262 = vrcp.f32 %v5444_v55  ;;  %vm1680_vm15 = vweird.f32 %v5469_v46 }
 0x22e   : > { %v1943_v11 = vpop.xlane.xlu0 %1942  ;;  %v2626_v22 = vsel %vm2461_vm0, %v2528_v19, %v2405_v57  ;;  %3264 = vrcp.f32 %v5469_v46 }
 0x22f   : > { %v2770_v39 = vmul.f32 %v2698_v30, %v2626_v22  ;;  %v5471_v45 = vpop.eup %3254  ;;  %v2265_v30 = vmul.f32 %v4364_v60, %v5356_v3 }
 0x230   : > { %v5473_v36 = vpop.eup %3256  ;;  %v1646_v38 = vmul.f32 %v5471_v45, %v5432_v4  ;;  %vm1651_vm7 = vweird.f32 %v5471_v45 }
 0x231   : > { %2843 = vst [vmem:[%s4861_s5 + $0x80] sm:$0xff] %v2770_v39  ;;  %v5478_v53 = vpop.eup %3258  ;;  %v2341_v22 = vsel %vm1910_vm11, %v2265_v30, 0.0  ;;  %v1656_v30 = vand.u32 2147483648, %v5432_v4  ;;  %vm1666_vm2 = vweird.f32 %v5473_v36  ;;  %vm5557_vm3 = vmor %vm1650_vm5, %vm1651_vm7 }
 0x232   : > { %2142 = vadd.xlane.f32.xlu2 %v2141_v7  ;;  %2121 = vadd.xlane.f32.xlu1 %v2120_v32  ;;  %v5486_v50 = vpop.eup %3260  ;;  %v1781_v58 = vmul.f32 %v5478_v53, %v5439_v42  ;;  %v1647_v27 = vsub.f32 1.0, %v1646_v38  ;;  %v2274_v32 = vmul.f32 %v4364_v60, %v5392_v52  ;;  %vm5573_vm6 = vmor %vm1665_vm12, %vm1666_vm2  ;;  %vm1786_vm4 = vweird.f32 %v5478_v53 }
 0x233   : > { %2145 = vadd.xlane.f32.xlu0 %v2144_v28  ;;  %v5494_v19 = vpop.eup %3262  ;;  %v5503_v51 = vmul.f32 %v5486_v50, %v5442_v20  ;;  %vm5614_vm7 = vmor %vm1785_vm9, %vm1786_vm4  ;;  %vm1801_vm12 = vweird.f32 %v5486_v50  ;;  %vm1800_vm9 = vweird.f32 %v5442_v20 }
 0x234   : > { %v5511_v39 = vmul.f32 %v5494_v19, %v5444_v55  ;;  %v5516_v28 = vpop.eup %3264 }
 0x235   : > { %v2089_v63 = vpop.xlane.xlu2 %2088  ;;  %v1946_v34 = vpop.xlane.xlu1 %1945  ;;  %v1797_v2 = vsub.f32 1.0, %v5503_v51  ;;  %v1669_v51 = vand.u32 2147483647, %v5437_v59  ;;  %vm1681_vm5 = vweird.f32 %v5516_v28 }
 0x236   : > { %v2187_v1 = vsel %vm2020_vm1, %v2089_v63, %v1940_v6  ;;  %v2092_v12 = vpop.xlane.xlu0 %2091  ;;  %v2273_v6 = vmul.f32 %v4364_v60, %v5352_v33  ;;  %vm5646_vm2 = vmor %vm1680_vm15, %vm1681_vm5  ;;  %vm1815_vm15 = vweird.f32 %v5444_v55 }
 0x237   : > { %v2773_v18 = vmul.f32 %v2701_v21, %v2187_v1  ;;  %v2189_v10 = vsel %vm2020_vm1, %v2092_v12, %v1943_v11  ;;  %v1661_v11 = vmul.f32 %v5473_v36, %v5437_v59  ;;  %v1782_v21 = vsub.f32 1.0, %v1781_v58 }
 0x238   : > { %v2775_v47 = vmul.f32 %v2703_v31, %v2189_v10  ;;  %v2365_v54 = vsel %vm1910_vm11, %v2273_v6, 0.0  ;;  %v2484_v1 = vmul.f32 %v4404_v44, %v5262_v37  ;;  %v2493_v6 = vmul.f32 %v4404_v44, %v5346_v40  ;;  %v2704_v40 = vld [vmem:[%s4818_s28 + $0xb0] sm:$0xff] }
 0x239   : > { %2846 = vst.msk [vmem:[%s4861_s5 + $0x98] sm:$0xff] %vm2827_vm10, %v2773_v18  ;;  %v1662_v7 = vsub.f32 1.0, %v1661_v11  ;;  %v1671_v11 = vand.u32 2147483648, %v5437_v59  ;;  %v1657_v59 = vor.u32 1.1754944e-38, %v1656_v30  ;;  %vm5595_vm13 = vcmp.eq.f32.partialorder %v1669_v51, 8.507059e+37 }
 0x23a   : > { %2848 = vst.msk [vmem:[%s4861_s5 + $0xa8] sm:$0xff] %vm2827_vm10, %v2775_v47  ;;  %2336 = vadd.xlane.f32.xlu2 %v2335_v56  ;;  %2148 = vadd.xlane.f32.xlu1 %v2147_v35  ;;  %v1812_v47 = vsub.f32 1.0, %v5511_v39  ;;  %v1648_v35 = vmul.f32 %v5471_v45, %v1647_v27  ;;  %v2556_v61 = vsel %vm1910_vm11, %v2484_v1, 0.0  ;;  %v2495_v27 = vmul.f32 %v4404_v44, %v5392_v52 }
 0x23b   : > { %2339 = vadd.xlane.f32.xlu0 %v2338_v26  ;;  %v2486_v52 = vmul.f32 %v4404_v44, %v5356_v3 }
 0x23c   : > { %v1649_v38 = vadd.f32 %v5471_v45, %v1648_v35  ;;  %v1686_v35 = vand.u32 2147483648, %v5469_v46 }
 0x23d   : > { %v2310_v48 = vpop.xlane.xlu2 %2309  ;;  %v5480_v24 = vpop.xlane.xlu1 %2094 }
 0x23e   : > { %v2313_v49 = vpop.xlane.xlu0 %2312  ;;  %v2191_v57 = vsel %vm2020_vm1, %v5480_v24, %v1946_v34  ;;  %v2407_v31 = vsel %vm2240_vm14, %v2310_v48, %v2089_v63  ;;  %v2702_v34 = vld [vmem:[%s4818_s28 + $0xa0] sm:$0xff]  ;;  %v2485_v63 = vmul.f32 %v4404_v44, %v5268_v9  ;;  %v1663_v48 = vmul.f32 %v5473_v36, %v1662_v7 }
 0x23f   : > { %v2777_v29 = vmul.f32 %v2705_v15, %v2191_v57  ;;  %v2409_v62 = vsel %vm2240_vm14, %v2313_v49, %v2092_v12  ;;  %v1676_v12 = vmul.f32 %v5516_v28, %v5469_v46  ;;  %v2368_v15 = vsel %vm1910_vm11, %v2274_v32, 0.0 }
 0x240   : > { %v1783_v9 = vmul.f32 %v5478_v53, %v1782_v21  ;;  %v2559_v49 = vsel %vm1910_vm11, %v2485_v63, 0.0  ;;  %v1654_v57 = vand.u32 2147483647, %v5432_v4  ;;  %v1798_v21 = vmul.f32 %v5486_v50, %v1797_v2 }
 0x241   : > { %2850 = vst.msk [vmem:[%s4861_s5 + $0xb8] sm:$0xff] %vm2827_vm10, %v2777_v29  ;;  %v1677_v29 = vsub.f32 1.0, %v1676_v12  ;;  %v2583_v2 = vsel %vm1910_vm11, %v2493_v6, 0.0  ;;  %v900_v63 = vpop.f32.mrf.mxu0  ;;  %v5635_v6 = vpop.f32.mrf.mxu3 }
 0x242   : > { %2363 = vadd.xlane.f32.xlu2 %v2362_v17  ;;  %2342 = vadd.xlane.f32.xlu1 %v2341_v22  ;;  %v1664_v17 = vadd.f32 %v5473_v36, %v1663_v48  ;;  %v5578_v7 = vadd.f32 %v5478_v53, %v1783_v9  ;;  %vm1655_vm8 = vcmp.eq.f32.partialorder %v1654_v57, 8.507059e+37  ;;  %v2707_v48 = vld [vmem:[%s4818_s28 + $0xc8] sm:$0xff]  ;;  %v1799_v30 = vadd.f32 %v5486_v50, %v1798_v21  ;;  %v801_v57 = vld [vmem:[%s4290_s24 + $0xd0] sm:$0xff] }
 0x243   : > { %2366 = vadd.xlane.f32.xlu0 %v2365_v54  ;;  %v2494_v54 = vmul.f32 %v4404_v44, %v5352_v33  ;;  %v1678_v3 = vmul.f32 %v5516_v28, %v1677_v29  ;;  %v1806_v29 = vand.u32 2147483648, %v5442_v20 }
 0x244   : > { %v1788_v12 = vsel %vm5614_vm7, %v5478_v53, %v5578_v7  ;;  %v2709_v53 = vld [vmem:[%s4818_s28 + $0xd8] sm:$0xff] }
 0x245   : > { %v2531_v5 = vpop.xlane.xlu2 %2530  ;;  %v2316_v18 = vpop.xlane.xlu1 %2315  ;;  %v1679_v9 = vadd.f32 %v5516_v28, %v1678_v3  ;;  %v1821_v3 = vand.u32 2147483648, %v5444_v55 }
 0x246   : > { %v2628_v10 = vsel %vm2461_vm0, %v2531_v5, %v2407_v31  ;;  %v2534_v8 = vpop.xlane.xlu0 %2533  ;;  %v2411_v33 = vsel %vm2240_vm14, %v2316_v18, %v5480_v24  ;;  %v1653_v5 = vsel %vm5557_vm3, %v5471_v45, %v1649_v38  ;;  %v1668_v24 = vsel %vm5573_vm6, %v5473_v36, %v1664_v17  ;;  %vm5673_vm6 = vmor %vm1800_vm9, %vm1801_vm12 }
 0x247   : > { %v2772_v56 = vmul.f32 %v2700_v41, %v2628_v10  ;;  %v2630_v37 = vsel %vm2461_vm0, %v2534_v8, %v2409_v62  ;;  %v2586_v18 = vsel %vm1910_vm11, %v2494_v54, 0.0  ;;  %v2589_v10 = vsel %vm1910_vm11, %v2495_v27, 0.0 }
 0x248   : > { %v2774_v26 = vmul.f32 %v2702_v34, %v2630_v37  ;;  %v1672_v34 = vor.u32 1.1754944e-38, %v1671_v11  ;;  %v1789_v45 = vand.u32 2147483647, %v5439_v42  ;;  %v2562_v8 = vsel %vm1910_vm11, %v2486_v52, 0.0 }
 0x249   : > { %2845 = vst [vmem:[%s4861_s5 + $0x90] sm:$0xff] %v2772_v56  ;;  %v5606_v36 = vsel %vm1655_vm8, %v1657_v59, %v1653_v5  ;;  %v1804_v54 = vand.u32 2147483647, %v5442_v20  ;;  %v1813_v27 = vmul.f32 %v5494_v19, %v1812_v47  ;;  %v1683_v20 = vsel %vm5646_vm2, %v5516_v28, %v1679_v9 }
 0x24a   : > { %2847 = vst [vmem:[%s4861_s5 + $0xa0] sm:$0xff] %v2774_v26  ;;  %2557 = vadd.xlane.f32.xlu2 %v2556_v61  ;;  %2369 = vadd.xlane.f32.xlu1 %v2368_v15  ;;  %v5620_v37 = vsel %vm5595_vm13, %v1672_v34, %v1668_v24  ;;  %v1791_v26 = vand.u32 2147483648, %v5439_v42  ;;  %v5628_v15 = vpop.f32.mrf.mxu2  ;;  %v1025_v61 = vpop.f32.mrf.mxu1  ;;  %v1895_v42 = vmul.f32 %v4337_v43, %v5606_v36  ;;  %vm5650_vm3 = vcmp.eq.f32.partialorder %v1789_v45, 8.507059e+37  ;;  %v2711_v45 = vld [vmem:[%s4818_s28 + $0xe8] sm:$0xff] }
 0x24b   : > { %2560 = vadd.xlane.f32.xlu0 %v2559_v49  ;;  %v1684_v49 = vand.u32 2147483647, %v5469_v46  ;;  %v1896_v51 = vmul.f32 %v4337_v43, %v5620_v37  ;;  %v1803_v47 = vsel %vm5673_vm6, %v5486_v50, %v1799_v30  ;;  %v1807_v5 = vor.u32 1.1754944e-38, %v1806_v29  ;;  %v903_v34 = vpop.f32.mrf.mxu0 }
 0x24c   : > { %v1974_v59 = vsel %vm1910_vm11, %v1895_v42, 0.0  ;;  %vm1805_vm8 = vcmp.eq.f32.partialorder %v1804_v54, 8.507059e+37  ;;  %v1814_v50 = vadd.f32 %v5494_v19, %v1813_v27  ;;  %vm1816_vm13 = vweird.f32 %v5494_v19 }
 0x24d   : > { %v1949_v22 = vpop.xlane.xlu2 %1948  ;;  %v2537_v41 = vpop.xlane.xlu1 %2536  ;;  %vm5680_vm4 = vcmp.eq.f32.partialorder %v1684_v49, 8.507059e+37  ;;  %v1977_v28 = vsel %vm1910_vm11, %v1896_v51, 0.0  ;;  %v5704_v24 = vsel %vm1805_vm8, %v1807_v5, %v1803_v47  ;;  %vm5712_vm5 = vmor %vm1815_vm15, %vm1816_vm13  ;;  %v1822_v30 = vor.u32 1.1754944e-38, %v1821_v3 }
 0x24e   : > { %v1952_v32 = vpop.xlane.xlu0 %1951  ;;  %v2632_v31 = vsel %vm2461_vm0, %v2537_v41, %v2411_v33  ;;  %v1792_v33 = vor.u32 1.1754944e-38, %v1791_v26  ;;  %v1178_v27 = vadd.f32 %v5635_v6, %v4693_v23  ;;  %v2045_v39 = vmul.f32 %v4334_v0, %v5606_v36 }
 0x24f   : > { %v2776_v1 = vmul.f32 %v2704_v40, %v2632_v31  ;;  %v799_v40 = vld [vmem:[%s4290_s24 + $0xc0] sm:$0xff]  ;;  %v2046_v23 = vmul.f32 %v4334_v0, %v5620_v37 }
 0x250   : > { %v901_v21 = vadd.f32 %v900_v63, %v799_v40  ;;  %v5693_v31 = vsel %vm5650_vm3, %v1792_v33, %v1788_v12 }
 0x251   : > { %2849 = vst [vmem:[%s4861_s5 + $0xb0] sm:$0xff] %v2776_v1  ;;  %v2054_v56 = vmul.f32 %v4334_v0, %v5693_v31 }
 0x252   : > { %2584 = vadd.xlane.f32.xlu2 %v2583_v2  ;;  %2563 = vadd.xlane.f32.xlu1 %v2562_v8  ;;  %v1026_v63 = vadd.f32 %v1025_v61, %v901_v21  ;;  %v1818_v61 = vsel %vm5712_vm5, %v5494_v19, %v1814_v50 }
 0x253   : > { %2587 = vadd.xlane.f32.xlu0 %v2586_v18  ;;  %v1819_v18 = vand.u32 2147483647, %v5444_v55  ;;  %v1905_v55 = vmul.f32 %v4337_v43, %v5704_v24  ;;  %v906_v40 = vpop.f32.mrf.mxu0 }
 0x254   : > { %v1028_v2 = vpop.f32.mrf.mxu1  ;;  %v1151_v29 = vadd.f32 %v5628_v15, %v1026_v63  ;;  %v907_v54 = vadd.f32 %v906_v40, %v801_v57  ;;  %v2710_v63 = vld [vmem:[%s4818_s28 + $0xe0] sm:$0xff]  ;;  %v2150_v57 = vsel %vm1910_vm11, %v2054_v56, 0.0  ;;  %v2713_v40 = vld [vmem:[%s4818_s28 + $0xf8] sm:$0xff] }
 0x255   : > { %v5637_v38 = vpop.xlane.xlu2 %2097  ;;  %v1955_v58 = vpop.xlane.xlu1 %1954  ;;  %vm1820_vm7 = vcmp.eq.f32.partialorder %v1819_v18, 8.507059e+37  ;;  %v2126_v18 = vsel %vm1910_vm11, %v2046_v23, 0.0 }
 0x256   : > { %v2193_v17 = vsel %vm2020_vm1, %v5637_v38, %v1949_v22  ;;  %v5659_v46 = vpop.xlane.xlu0 %2100  ;;  %v1687_v22 = vor.u32 1.1754944e-38, %v1686_v35  ;;  %v1153_v35 = vpop.f32.mrf.mxu2  ;;  %v3064_v41 = vmul.f32 -1.442695, %v1151_v29 }
 0x257   : > { %v2779_v4 = vmul.f32 %v2707_v48, %v2193_v17  ;;  %v2195_v7 = vsel %vm2020_vm1, %v5659_v46, %v1952_v32  ;;  %v800_v32 = vld [vmem:[%s4290_s24 + $0xc8] sm:$0xff]  ;;  %v5731_v17 = vsel %vm1820_vm7, %v1822_v30, %v1818_v61 }
 0x258   : > { %v2781_v52 = vmul.f32 %v2709_v53, %v2195_v7  ;;  %v5702_v1 = vsel %vm5680_vm4, %v1687_v22, %v1683_v20  ;;  %v904_v62 = vadd.f32 %v903_v34, %v800_v32  ;;  %v1180_v53 = vpop.f32.mrf.mxu3  ;;  %v1906_v7 = vmul.f32 %v4337_v43, %v5731_v17  ;;  %v2708_v20 = vld [vmem:[%s4818_s28 + $0xd0] sm:$0xff] }
 0x259   : > { %2852 = vst.msk [vmem:[%s4861_s5 + $0xc8] sm:$0xff] %vm2827_vm10, %v2779_v4  ;;  %v1897_v48 = vmul.f32 %v4337_v43, %v5702_v1  ;;  %v1181_v15 = vadd.f32 %v1180_v53, %v4730_v13  ;;  %v2706_v4 = vld [vmem:[%s4818_s28 + $0xc0] sm:$0xff]  ;;  %v3073_v34 = vmul.f32 -1.442695, %v1178_v27  ;;  %3266 = vpow2.f32 %v3064_v41 }
 0x25a   : > { %2854 = vst.msk [vmem:[%s4861_s5 + $0xd8] sm:$0xff] %vm2827_vm10, %v2781_v52  ;;  %1975 = vadd.xlane.f32.xlu2 %v1974_v59  ;;  %2590 = vadd.xlane.f32.xlu1 %v2589_v10  ;;  %v1904_v10 = vmul.f32 %v4337_v43, %v5693_v31  ;;  %v1029_v9 = vadd.f32 %v1028_v2, %v904_v62  ;;  %v2007_v2 = vsel %vm1910_vm11, %v1906_v7, 0.0 }
 0x25b   : > { %1978 = vadd.xlane.f32.xlu0 %v1977_v28  ;;  %v1980_v19 = vsel %vm1910_vm11, %v1897_v48, 0.0  ;;  %v3074_v62 = vmul.f32 -1.442695, %v1181_v15  ;;  %v2715_v15 = vld [vmem:[%s4818_s28 + $0x108] sm:$0xff]  ;;  %v2056_v41 = vmul.f32 %v4334_v0, %v5731_v17 }
 0x25c   : > { %v2001_v11 = vsel %vm1910_vm11, %v1904_v10, 0.0  ;;  %v1154_v51 = vadd.f32 %v1153_v35, %v1029_v9  ;;  %v1031_v22 = vpop.f32.mrf.mxu1  ;;  %v2055_v9 = vmul.f32 %v4334_v0, %v5704_v24 }
 0x25d   : > { %v2319_v8 = vpop.xlane.xlu2 %2318  ;;  %v5716_v12 = vpop.xlane.xlu1 %2103  ;;  %v1032_v59 = vadd.f32 %v1031_v22, %v907_v54 }
 0x25e   : > { %v2322_v26 = vpop.xlane.xlu0 %2321  ;;  %v2197_v49 = vsel %vm2020_vm1, %v5716_v12, %v1955_v58  ;;  %v2004_v58 = vsel %vm1910_vm11, %v1905_v55, 0.0  ;;  %v2413_v33 = vsel %vm2240_vm14, %v2319_v8, %v5637_v38  ;;  %v3065_v32 = vmul.f32 -1.442695, %v1154_v51  ;;  %v1156_v28 = vpop.f32.mrf.mxu2 }
 0x25f   : > { %v2783_v42 = vmul.f32 %v2711_v45, %v2197_v49  ;;  %v2415_v13 = vsel %vm2240_vm14, %v2322_v26, %v5659_v46  ;;  %v2123_v46 = vsel %vm1910_vm11, %v2045_v39, 0.0  ;;  %v1157_v45 = vadd.f32 %v1156_v28, %v1032_v59 }
 0x260   : > { %v1183_v3 = vpop.f32.mrf.mxu3  ;;  %3268 = vpow2.f32 %v3065_v32  ;;  %v2047_v55 = vmul.f32 %v4334_v0, %v5702_v1 }
 0x261   : > { %2856 = vst.msk [vmem:[%s4861_s5 + $0xe8] sm:$0xff] %vm2827_vm10, %v2783_v42  ;;  %3270 = vpow2.f32 %v3073_v34  ;;  %v1184_v8 = vadd.f32 %v1183_v3, %v4766_v16  ;;  %v3066_v61 = vmul.f32 -1.442695, %v1157_v45  ;;  %v3267_v16 = vpop.eup %3266  ;;  %v2717_v34 = vld [vmem:[%s4818_s28 + $0x118] sm:$0xff] }
 0x262   : > { %2002 = vadd.xlane.f32.xlu2 %v2001_v11  ;;  %1981 = vadd.xlane.f32.xlu1 %v1980_v19  ;;  %3272 = vpow2.f32 %v3074_v62  ;;  %v5777_v11 = vadd.f32 1.0, %v3267_v16  ;;  %v2129_v29 = vsel %vm1910_vm11, %v2047_v55, 0.0  ;;  %v2153_v19 = vsel %vm1910_vm11, %v2055_v9, 0.0 }
 0x263   : > { %2005 = vadd.xlane.f32.xlu0 %v2004_v58  ;;  %v3075_v42 = vmul.f32 -1.442695, %v1184_v8  ;;  %3274 = vpow2.f32 %v3066_v61  ;;  %v2275_v62 = vmul.f32 %v4364_v60, %v5693_v31 }
 0x264   : > { %vm1695_vm12 = vweird.f32 %v5777_v11 }
 0x265   : > { %v2540_v52 = vpop.xlane.xlu2 %2539  ;;  %v2325_v6 = vpop.xlane.xlu1 %2324  ;;  %3276 = vpow2.f32 %v3075_v42 }
 0x266   : > { %v2634_v47 = vsel %vm2461_vm0, %v2540_v52, %v2413_v33  ;;  %v2543_v38 = vpop.xlane.xlu0 %2542  ;;  %v2417_v35 = vsel %vm2240_vm14, %v2325_v6, %v5716_v12  ;;  %v3269_v30 = vpop.eup %3268  ;;  %3278 = vrcp.f32 %v5777_v11  ;;  %v2267_v52 = vmul.f32 %v4364_v60, %v5620_v37 }
 0x267   : > { %v2778_v21 = vmul.f32 %v2706_v4, %v2634_v47  ;;  %v2636_v5 = vsel %vm2461_vm0, %v2543_v38, %v2415_v13  ;;  %v3271_v12 = vpop.eup %3270  ;;  %v5782_v51 = vadd.f32 1.0, %v3269_v30  ;;  %v2266_v4 = vmul.f32 %v4364_v60, %v5606_v36 }
 0x268   : > { %v2780_v50 = vmul.f32 %v2708_v20, %v2636_v5  ;;  %v3273_v58 = vpop.eup %3272  ;;  %v5785_v54 = vadd.f32 1.0, %v3271_v12  ;;  %v2156_v38 = vsel %vm1910_vm11, %v2056_v41, 0.0  ;;  %v2347_v32 = vsel %vm1910_vm11, %v2267_v52, 0.0 }
 0x269   : > { %2851 = vst [vmem:[%s4861_s5 + $0xc0] sm:$0xff] %v2778_v21  ;;  %v5797_v20 = vadd.f32 1.0, %v3273_v58  ;;  %3280 = vrcp.f32 %v5782_v51  ;;  %v3275_v13 = vpop.eup %3274  ;;  %v2344_v47 = vsel %vm1910_vm11, %v2266_v4, 0.0  ;;  %v2487_v58 = vmul.f32 %v4404_v44, %v5606_v36 }
 0x26a   : > { %2853 = vst [vmem:[%s4861_s5 + $0xd0] sm:$0xff] %v2780_v50  ;;  %2124 = vadd.xlane.f32.xlu2 %v2123_v46  ;;  %2008 = vadd.xlane.f32.xlu1 %v2007_v2  ;;  %3282 = vrcp.f32 %v5785_v54  ;;  %v5811_v21 = vadd.f32 1.0, %v3275_v13  ;;  %v2268_v2 = vmul.f32 %v4364_v60, %v5702_v1  ;;  %vm1710_vm3 = vweird.f32 %v5782_v51 }
 0x26b   : > { %2127 = vadd.xlane.f32.xlu0 %v2126_v18  ;;  %v3277_v59 = vpop.eup %3276  ;;  %3284 = vrcp.f32 %v5797_v20  ;;  %v2276_v18 = vmul.f32 %v4364_v60, %v5704_v24 }
 0x26c   : > { %v5813_v5 = vpop.eup %3278  ;;  %3286 = vrcp.f32 %v5811_v21  ;;  %v2350_v55 = vsel %vm1910_vm11, %v2268_v2, 0.0  ;;  %vm1725_vm5 = vweird.f32 %v5811_v21 }
 0x26d   : > { %v1958_v10 = vpop.xlane.xlu2 %1957  ;;  %v2546_v26 = vpop.xlane.xlu1 %2545  ;;  %v1691_v45 = vmul.f32 %v5813_v5, %v5777_v11  ;;  %v2374_v9 = vsel %vm1910_vm11, %v2276_v18, 0.0  ;;  %vm1696_vm2 = vweird.f32 %v5813_v5  ;;  %v1714_v18 = vand.u32 2147483647, %v5782_v51 }
 0x26e   : > { %v1961_v48 = vpop.xlane.xlu0 %1960  ;;  %v2638_v49 = vsel %vm2461_vm0, %v2546_v26, %v2417_v35  ;;  %vm5889_vm6 = vmor %vm1695_vm12, %vm1696_vm2 }
 0x26f   : > { %v2782_v53 = vmul.f32 %v2710_v63, %v2638_v49  ;;  %v5815_v28 = vpop.eup %3280  ;;  %v1692_v16 = vsub.f32 1.0, %v1691_v45  ;;  %vm1715_vm13 = vcmp.eq.f32.partialorder %v1714_v18, 8.507059e+37 }
 0x270   : > { %v5832_v63 = vpop.eup %3282  ;;  %v1706_v56 = vmul.f32 %v5815_v28, %v5782_v51  ;;  %vm1711_vm9 = vweird.f32 %v5815_v28 }
 0x271   : > { %2855 = vst [vmem:[%s4861_s5 + $0xe0] sm:$0xff] %v2782_v53  ;;  %v5838_v26 = vpop.eup %3284  ;;  %v1826_v61 = vmul.f32 %v5832_v63, %v5785_v54  ;;  %v2712_v53 = vld [vmem:[%s4818_s28 + $0xf0] sm:$0xff]  ;;  %vm5908_vm4 = vmor %vm1710_vm3, %vm1711_vm9  ;;  %vm1831_vm15 = vweird.f32 %v5832_v63  ;;  %vm1830_vm3 = vweird.f32 %v5785_v54 }
 0x272   : > { %2151 = vadd.xlane.f32.xlu2 %v2150_v57  ;;  %2130 = vadd.xlane.f32.xlu1 %v2129_v29  ;;  %v1841_v49 = vmul.f32 %v5838_v26, %v5797_v20  ;;  %v1707_v30 = vsub.f32 1.0, %v1706_v56  ;;  %v5851_v42 = vpop.eup %3286  ;;  %v2714_v29 = vld [vmem:[%s4818_s28 + $0x100] sm:$0xff]  ;;  %vm1846_vm12 = vweird.f32 %v5838_v26  ;;  %vm5969_vm9 = vmor %vm1830_vm3, %vm1831_vm15 }
 0x273   : > { %2154 = vadd.xlane.f32.xlu0 %v2153_v19  ;;  %v2277_v19 = vmul.f32 %v4364_v60, %v5731_v17  ;;  %vm1726_vm7 = vweird.f32 %v5851_v42 }
 0x274   : > { %v1842_v36 = vsub.f32 1.0, %v1841_v49  ;;  %v1708_v13 = vmul.f32 %v5815_v28, %v1707_v30  ;;  %vm5952_vm2 = vmor %vm1725_vm5, %vm1726_vm7 }
 0x275   : > { %v2107_v27 = vpop.xlane.xlu2 %2106  ;;  %v1964_v7 = vpop.xlane.xlu1 %1963 }
 0x276   : > { %v2199_v22 = vsel %vm2020_vm1, %v2107_v27, %v1958_v10  ;;  %v2110_v33 = vpop.xlane.xlu0 %2109  ;;  %v5834_v10 = vadd.f32 1.0, %v3277_v59  ;;  %v1709_v2 = vadd.f32 %v5815_v28, %v1708_v13  ;;  %v2498_v13 = vmul.f32 %v4404_v44, %v5731_v17 }
 0x277   : > { %v2785_v39 = vmul.f32 %v2713_v40, %v2199_v22  ;;  %v2201_v23 = vsel %vm2020_vm1, %v2110_v33, %v1961_v48  ;;  %v2371_v48 = vsel %vm1910_vm11, %v2275_v62, 0.0  ;;  %v1827_v22 = vsub.f32 1.0, %v1826_v61 }
 0x278   : > { %v2787_v6 = vmul.f32 %v2715_v15, %v2201_v23  ;;  %3288 = vrcp.f32 %v5834_v10  ;;  %vm1860_vm7 = vweird.f32 %v5834_v10 }
 0x279   : > { %2858 = vst.msk [vmem:[%s4861_s5 + $0xf8] sm:$0xff] %vm2827_vm10, %v2785_v39  ;;  %v1693_v39 = vmul.f32 %v5813_v5, %v1692_v16 }
 0x27a   : > { %2860 = vst.msk [vmem:[%s4861_s5 + $0x108] sm:$0xff] %vm2827_vm10, %v2787_v6  ;;  %2345 = vadd.xlane.f32.xlu2 %v2344_v47  ;;  %2157 = vadd.xlane.f32.xlu1 %v2156_v38  ;;  %v2377_v6 = vsel %vm1910_vm11, %v2277_v19, 0.0  ;;  %v2565_v47 = vsel %vm1910_vm11, %v2487_v58, 0.0 }
 0x27b   : > { %2348 = vadd.xlane.f32.xlu0 %v2347_v32  ;;  %v1701_v32 = vand.u32 2147483648, %v5777_v11  ;;  %v1694_v59 = vadd.f32 %v5813_v5, %v1693_v39 }
 0x27d   : > { %v2328_v50 = vpop.xlane.xlu2 %2327  ;;  %v5820_v46 = vpop.xlane.xlu1 %2112  ;;  %v1698_v30 = vsel %vm5889_vm6, %v5813_v5, %v1694_v59  ;;  %vm1845_vm6 = vweird.f32 %v5797_v20 }
 0x27e   : > { %v2331_v3 = vpop.xlane.xlu0 %2330  ;;  %v2203_v8 = vsel %vm2020_vm1, %v5820_v46, %v1964_v7  ;;  %v2419_v57 = vsel %vm2240_vm14, %v2328_v50, %v2107_v27  ;;  %v2488_v27 = vmul.f32 %v4404_v44, %v5620_v37  ;;  %v5877_v37 = vpop.eup %3288  ;;  %v1716_v50 = vand.u32 2147483648, %v5782_v51 }
 0x27f   : > { %v2789_v35 = vmul.f32 %v2717_v34, %v2203_v8  ;;  %v2421_v40 = vsel %vm2240_vm14, %v2331_v3, %v2110_v33  ;;  %v1721_v33 = vmul.f32 %v5851_v42, %v5811_v21  ;;  %v1699_v34 = vand.u32 2147483647, %v5777_v11  ;;  %v2716_v8 = vld [vmem:[%s4818_s28 + $0x110] sm:$0xff] }
 0x280   : > { %v2568_v38 = vsel %vm1910_vm11, %v2488_v27, 0.0  ;;  %v1856_v45 = vmul.f32 %v5877_v37, %v5834_v10  ;;  %v2497_v11 = vmul.f32 %v4404_v44, %v5704_v24  ;;  %v1702_v24 = vor.u32 1.1754944e-38, %v1701_v32 }
 0x281   : > { %2862 = vst.msk [vmem:[%s4861_s5 + $0x118] sm:$0xff] %vm2827_vm10, %v2789_v35  ;;  %v1722_v62 = vsub.f32 1.0, %v1721_v33  ;;  %v2496_v35 = vmul.f32 %v4404_v44, %v5693_v31  ;;  %v2489_v31 = vmul.f32 %v4404_v44, %v5702_v1  ;;  %v1843_v51 = vmul.f32 %v5838_v26, %v1842_v36 }
 0x282   : > { %2372 = vadd.xlane.f32.xlu2 %v2371_v48  ;;  %2351 = vadd.xlane.f32.xlu1 %v2350_v55  ;;  %v1828_v55 = vmul.f32 %v5832_v63, %v1827_v22  ;;  %vm1700_vm8 = vcmp.eq.f32.partialorder %v1699_v34, 8.507059e+37  ;;  %v2595_v19 = vsel %vm1910_vm11, %v2497_v11, 0.0  ;;  %v1729_v27 = vand.u32 2147483647, %v5811_v21  ;;  %v2721_v11 = vld [vmem:[%s4818_s28 + $0x138] sm:$0xff] }
 0x283   : > { %2375 = vadd.xlane.f32.xlu0 %v2374_v9  ;;  %v1723_v1 = vmul.f32 %v5851_v42, %v1722_v62  ;;  %v2571_v5 = vsel %vm1910_vm11, %v2489_v31, 0.0  ;;  %v5935_v58 = vsel %vm1700_vm8, %v1702_v24, %v1698_v30  ;;  %v1844_v22 = vadd.f32 %v5838_v26, %v1843_v51 }
 0x284   : > { %v1834_v36 = vand.u32 2147483647, %v5785_v54  ;;  %v1851_v33 = vand.u32 2147483648, %v5797_v20  ;;  %vm1730_vm8 = vcmp.eq.f32.partialorder %v1729_v27, 8.507059e+37  ;;  %v2598_v3 = vsel %vm1910_vm11, %v2498_v13, 0.0 }
 0x285   : > { %v2549_v12 = vpop.xlane.xlu2 %2548  ;;  %v2334_v15 = vpop.xlane.xlu1 %2333  ;;  %vm1861_vm5 = vweird.f32 %v5877_v37 }
 0x286   : > { %v2640_v4 = vsel %vm2461_vm0, %v2549_v12, %v2419_v57  ;;  %v2552_v7 = vpop.xlane.xlu0 %2551  ;;  %v2423_v9 = vsel %vm2240_vm14, %v2334_v15, %v5820_v46  ;;  %v1713_v57 = vsel %vm5908_vm4, %v5815_v28, %v1709_v2  ;;  %v1857_v12 = vsub.f32 1.0, %v1856_v45  ;;  %vm5980_vm4 = vmor %vm1845_vm6, %vm1846_vm12  ;;  %v2719_v45 = vld [vmem:[%s4818_s28 + $0x128] sm:$0xff] }
 0x287   : > { %v2784_v41 = vmul.f32 %v2712_v53, %v2640_v4  ;;  %v2642_v52 = vsel %vm2461_vm0, %v2552_v7, %v2421_v40  ;;  %v1717_v53 = vor.u32 1.1754944e-38, %v1716_v50  ;;  %v1731_v40 = vand.u32 2147483648, %v5811_v21  ;;  %vm1862_vm12 = vmor %vm1860_vm7, %vm1861_vm5 }
 0x288   : > { %v2786_v23 = vmul.f32 %v2714_v29, %v2642_v52  ;;  %v2592_v29 = vsel %vm1910_vm11, %v2496_v35, 0.0  ;;  %v1829_v15 = vadd.f32 %v5832_v63, %v1828_v55  ;;  %v1836_v4 = vand.u32 2147483648, %v5785_v54 }
 0x289   : > { %2857 = vst [vmem:[%s4861_s5 + $0xf0] sm:$0xff] %v2784_v41  ;;  %v5939_v28 = vsel %vm1715_vm13, %v1717_v53, %v1713_v57  ;;  %v1724_v7 = vadd.f32 %v5851_v42, %v1723_v1  ;;  %v1898_v52 = vmul.f32 %v4337_v43, %v5935_v58  ;;  %v1849_v54 = vand.u32 2147483647, %v5797_v20 }
 0x28a   : > { %2859 = vst [vmem:[%s4861_s5 + $0x100] sm:$0xff] %v2786_v23  ;;  %2566 = vadd.xlane.f32.xlu2 %v2565_v47  ;;  %2378 = vadd.xlane.f32.xlu1 %v2377_v6  ;;  %v1899_v6 = vmul.f32 %v4337_v43, %v5939_v28  ;;  %v1833_v32 = vsel %vm5969_vm9, %v5832_v63, %v1829_v15  ;;  %v1837_v59 = vor.u32 1.1754944e-38, %v1836_v4  ;;  %vm1835_vm13 = vcmp.eq.f32.partialorder %v1834_v36, 8.507059e+37 }
 0x28b   : > { %2569 = vadd.xlane.f32.xlu0 %v2568_v38  ;;  %v1732_v38 = vor.u32 1.1754944e-38, %v1731_v40  ;;  %v1728_v34 = vsel %vm5952_vm2, %v5851_v42, %v1724_v7  ;;  %v1848_v20 = vsel %vm5980_vm4, %v5838_v26, %v1844_v22  ;;  %v1858_v50 = vmul.f32 %v5877_v37, %v1857_v12 }
 0x28c   : > { %v1983_v63 = vsel %vm1910_vm11, %v1898_v52, 0.0  ;;  %v1852_v62 = vor.u32 1.1754944e-38, %v1851_v33  ;;  %v1986_v2 = vsel %vm1910_vm11, %v1899_v6, 0.0  ;;  %v5994_v18 = vsel %vm1835_vm13, %v1837_v59, %v1833_v32  ;;  %v2741_v6 = vld [vmem:[%s4818_s28 + $0x1d8] sm:$0xff] }
 0x28d   : > { %v5898_v56 = vpop.xlane.xlu2 %1966  ;;  %v2555_v61 = vpop.xlane.xlu1 %2554  ;;  %vm1850_vm15 = vcmp.eq.f32.partialorder %v1849_v54, 8.507059e+37  ;;  %v5996_v42 = vsel %vm1730_vm8, %v1732_v38, %v1728_v34  ;;  %v1907_v48 = vmul.f32 %v4337_v43, %v5994_v18  ;;  %v1866_v55 = vand.u32 2147483648, %v5834_v10 }
 0x28e   : > { %v5916_v16 = vpop.xlane.xlu0 %1969  ;;  %v2644_v49 = vsel %vm2461_vm0, %v2555_v61, %v2423_v9  ;;  %v5998_v26 = vsel %vm1850_vm15, %v1852_v62, %v1848_v20  ;;  %v1900_v24 = vmul.f32 %v4337_v43, %v5996_v42  ;;  %v2048_v40 = vmul.f32 %v4334_v0, %v5935_v58 }
 0x28f   : > { %v2788_v46 = vmul.f32 %v2716_v8, %v2644_v49  ;;  %v1859_v8 = vadd.f32 %v5877_v37, %v1858_v50  ;;  %v1908_v51 = vmul.f32 %v4337_v43, %v5998_v26  ;;  %v1864_v49 = vand.u32 2147483647, %v5834_v10 }
 0x290   : > { %v2010_v57 = vsel %vm1910_vm11, %v1907_v48, 0.0  ;;  %v1867_v1 = vor.u32 1.1754944e-38, %v1866_v55  ;;  %v1989_v10 = vsel %vm1910_vm11, %v1900_v24, 0.0  ;;  %v2049_v22 = vmul.f32 %v4334_v0, %v5939_v28 }
 0x291   : > { %2861 = vst [vmem:[%s4861_s5 + $0x110] sm:$0xff] %v2788_v46  ;;  %v1863_v46 = vsel %vm1862_vm12, %v5877_v37, %v1859_v8  ;;  %v2013_v12 = vsel %vm1910_vm11, %v1908_v51, 0.0  ;;  %vm1865_vm2 = vcmp.eq.f32.partialorder %v1864_v49, 8.507059e+37  ;;  %v2723_v37 = vld [vmem:[%s4818_s28 + $0x148] sm:$0xff]  ;;  %v2057_v47 = vmul.f32 %v4334_v0, %v5994_v18  ;;  %v2720_v51 = vld [vmem:[%s4818_s28 + $0x130] sm:$0xff] }
 0x292   : > { %2593 = vadd.xlane.f32.xlu2 %v2592_v29  ;;  %2572 = vadd.xlane.f32.xlu1 %v2571_v5  ;;  %v2737_v29 = vld [vmem:[%s4818_s28 + $0x1b8] sm:$0xff]  ;;  %v2739_v5 = vld [vmem:[%s4818_s28 + $0x1c8] sm:$0xff]  ;;  %v2050_v32 = vmul.f32 %v4334_v0, %v5996_v42  ;;  %v2058_v59 = vmul.f32 %v4334_v0, %v5998_v26  ;;  %v2278_v49 = vmul.f32 %v4364_v60, %v5994_v18 }
 0x293   : > { %2596 = vadd.xlane.f32.xlu0 %v2595_v19  ;;  %v2159_v20 = vsel %vm1910_vm11, %v2057_v47, 0.0 }
 0x294   : > { %v2138_v50 = vsel %vm1910_vm11, %v2050_v32, 0.0  ;;  %v2499_v32 = vmul.f32 %v4404_v44, %v5994_v18 }
 0x295   : > { %v5948_v41 = vpop.xlane.xlu2 %1993  ;;  %v5959_v21 = vpop.xlane.xlu1 %1972 }
 0x296   : > { %v5961_v23 = vpop.xlane.xlu0 %1996  ;;  %v2601_v18 = vsel %vm1910_vm11, %v2499_v32, 0.0 }
 0x29a   : > { %1984 = vadd.xlane.f32.xlu2 %v1983_v63  ;;  %2599 = vadd.xlane.f32.xlu1 %v2598_v3  ;;  %v2162_v63 = vsel %vm1910_vm11, %v2058_v59, 0.0  ;;  %v2269_v3 = vmul.f32 %v4364_v60, %v5935_v58 }
 0x29b   : > { %1987 = vadd.xlane.f32.xlu0 %v1986_v2 }
 0x29c   : > { %v2353_v48 = vsel %vm1910_vm11, %v2269_v3, 0.0 }
 0x29d   : > { %v6003_v35 = vpop.xlane.xlu2 %2115  ;;  %v2000_v9 = vpop.xlane.xlu1 %1999 }
 0x29e   : > { %v2205_v61 = vsel %vm2020_vm1, %v6003_v35, %v5898_v56  ;;  %v6014_v31 = vpop.xlane.xlu0 %2118 }
 0x29f   : > { %v2791_v30 = vmul.f32 %v2719_v45, %v2205_v61  ;;  %v2207_v53 = vsel %vm2020_vm1, %v6014_v31, %v5916_v16  ;;  %v6033_v16 = vsel %vm1865_vm2, %v1867_v1, %v1863_v46  ;;  %v2718_v61 = vld [vmem:[%s4818_s28 + $0x120] sm:$0xff] }
 0x2a0   : > { %v2793_v56 = vmul.f32 %v2721_v11, %v2207_v53  ;;  %v1909_v27 = vmul.f32 %v4337_v43, %v6033_v16  ;;  %v2132_v43 = vsel %vm1910_vm11, %v2048_v40, 0.0  ;;  %v2059_v8 = vmul.f32 %v4334_v0, %v6033_v16 }
 0x2a1   : > { %2864 = vst.msk [vmem:[%s4861_s5 + $0x128] sm:$0xff] %vm2827_vm10, %v2791_v30  ;;  %v2270_v11 = vmul.f32 %v4364_v60, %v5939_v28 }
 0x2a2   : > { %2866 = vst.msk [vmem:[%s4861_s5 + $0x138] sm:$0xff] %vm2827_vm10, %v2793_v56  ;;  %2011 = vadd.xlane.f32.xlu2 %v2010_v57  ;;  %1990 = vadd.xlane.f32.xlu1 %v1989_v10  ;;  %v2016_v13 = vsel %vm1910_vm11, %v1909_v27, 0.0  ;;  %v2165_v55 = vsel %vm1910_vm11, %v2059_v8, 0.0  ;;  %v2271_v57 = vmul.f32 %v4364_v60, %v5996_v42 }
 0x2a3   : > { %2014 = vadd.xlane.f32.xlu0 %v2013_v12 }
 0x2a5   : > { %v6037_v19 = vpop.xlane.xlu2 %2142  ;;  %v6042_v15 = vpop.xlane.xlu1 %2121 }
 0x2a6   : > { %v2223_v4 = vsel %vm2020_vm1, %v6037_v19, %v5948_v41  ;;  %v6048_v7 = vpop.xlane.xlu0 %2145  ;;  %v2209_v52 = vsel %vm2020_vm1, %v6042_v15, %v5959_v21  ;;  %v2135_v21 = vsel %vm1910_vm11, %v2049_v22, 0.0  ;;  %v2738_v22 = vld [vmem:[%s4818_s28 + $0x1c0] sm:$0xff] }
 0x2a7   : > { %v2809_v39 = vmul.f32 %v2737_v29, %v2223_v4  ;;  %v2225_v41 = vsel %vm2020_vm1, %v6048_v7, %v5961_v23  ;;  %v2795_v36 = vmul.f32 %v2723_v37, %v2209_v52  ;;  %v2359_v29 = vsel %vm1910_vm11, %v2271_v57, 0.0  ;;  %v2722_v4 = vld [vmem:[%s4818_s28 + $0x140] sm:$0xff] }
 0x2a8   : > { %v2811_v33 = vmul.f32 %v2739_v5, %v2225_v41  ;;  %v2736_v5 = vld [vmem:[%s4818_s28 + $0x1b0] sm:$0xff]  ;;  %v2280_v52 = vmul.f32 %v4364_v60, %v6033_v16 }
 0x2a9   : > { %2882 = vst.msk [vmem:[%s4861_s5 + $0x1b8] sm:$0xff] %vm2827_vm10, %v2809_v39  ;;  %v2490_v39 = vmul.f32 %v4404_v44, %v5935_v58 }
 0x2aa   : > { %2868 = vst.msk [vmem:[%s4861_s5 + $0x148] sm:$0xff] %vm2827_vm10, %v2795_v36  ;;  %2133 = vadd.xlane.f32.xlu2 %v2132_v43  ;;  %2017 = vadd.xlane.f32.xlu1 %v2016_v13 }
 0x2ab   : > { %2884 = vst.msk [vmem:[%s4861_s5 + $0x1c8] sm:$0xff] %vm2827_vm10, %v2811_v33  ;;  %2136 = vadd.xlane.f32.xlu0 %v2135_v21 }
 0x2ad   : > { %v2337_v23 = vpop.xlane.xlu2 %2336  ;;  %v6074_v54 = vpop.xlane.xlu1 %2148 }
 0x2ae   : > { %v2340_v38 = vpop.xlane.xlu0 %2339  ;;  %v2227_v17 = vsel %vm2020_vm1, %v6074_v54, %v2000_v9  ;;  %v2356_v9 = vsel %vm1910_vm11, %v2270_v11, 0.0  ;;  %v2425_v24 = vsel %vm2240_vm14, %v2337_v23, %v6003_v35  ;;  %v2279_v35 = vmul.f32 %v4364_v60, %v5998_v26  ;;  %v2725_v11 = vld [vmem:[%s4818_s28 + $0x158] sm:$0xff] }
 0x2af   : > { %v2813_v34 = vmul.f32 %v2741_v6, %v2227_v17  ;;  %v2427_v30 = vsel %vm2240_vm14, %v2340_v38, %v6014_v31  ;;  %v2380_v31 = vsel %vm1910_vm11, %v2278_v49, 0.0  ;;  %v2491_v60 = vmul.f32 %v4404_v44, %v5939_v28  ;;  %v2740_v28 = vld [vmem:[%s4818_s28 + $0x1d0] sm:$0xff] }
 0x2b0   : > { %v2383_v37 = vsel %vm1910_vm11, %v2279_v35, 0.0  ;;  %v2386_v23 = vsel %vm1910_vm11, %v2280_v52, 0.0 }
 0x2b1   : > { %2886 = vst.msk [vmem:[%s4861_s5 + $0x1d8] sm:$0xff] %vm2827_vm10, %v2813_v34  ;;  %v2577_v47 = vsel %vm1910_vm11, %v2491_v60, 0.0 }
 0x2b2   : > { %2160 = vadd.xlane.f32.xlu2 %v2159_v20  ;;  %2139 = vadd.xlane.f32.xlu1 %v2138_v50  ;;  %v2492_v20 = vmul.f32 %v4404_v44, %v5996_v42  ;;  %v2500_v50 = vmul.f32 %v4404_v44, %v5998_v26 }
 0x2b3   : > { %2163 = vadd.xlane.f32.xlu0 %v2162_v63 }
 0x2b4   : > { %v2580_v3 = vsel %vm1910_vm11, %v2492_v20, 0.0 }
 0x2b5   : > { %v2364_v62 = vpop.xlane.xlu2 %2363  ;;  %v2343_v2 = vpop.xlane.xlu1 %2342 }
 0x2b6   : > { %v2367_v45 = vpop.xlane.xlu0 %2366  ;;  %v2443_v40 = vsel %vm2240_vm14, %v2364_v62, %v6037_v19  ;;  %v2429_v41 = vsel %vm2240_vm14, %v2343_v2, %v6042_v15 }
 0x2b7   : > { %v2445_v36 = vsel %vm2240_vm14, %v2367_v45, %v6048_v7  ;;  %v2574_v7 = vsel %vm1910_vm11, %v2490_v39, 0.0  ;;  %v2501_v45 = vmul.f32 %v4404_v44, %v6033_v16  ;;  %v2743_v44 = vld [vmem:[%s4818_s28 + $0x1e8] sm:$0xff]  ;;  %v2729_v16 = vld [vmem:[%s4818_s28 + $0x178] sm:$0xff] }
 0x2b9   : > { %v2607_v8 = vsel %vm1910_vm11, %v2501_v45, 0.0 }
 0x2ba   : > { %2354 = vadd.xlane.f32.xlu2 %v2353_v48  ;;  %2166 = vadd.xlane.f32.xlu1 %v2165_v55  ;;  %v2727_v55 = vld [vmem:[%s4818_s28 + $0x168] sm:$0xff] }
 0x2bb   : > { %2357 = vadd.xlane.f32.xlu0 %v2356_v9 }
 0x2bd   : > { %v2558_v0 = vpop.xlane.xlu2 %2557  ;;  %v2370_v53 = vpop.xlane.xlu1 %2369 }
 0x2be   : > { %v2646_v56 = vsel %vm2461_vm0, %v2558_v0, %v2425_v24  ;;  %v2561_v46 = vpop.xlane.xlu0 %2560  ;;  %v2447_v59 = vsel %vm2240_vm14, %v2370_v53, %v6074_v54  ;;  %v2604_v54 = vsel %vm1910_vm11, %v2500_v50, 0.0  ;;  %v2745_v53 = vld [vmem:[%s4818_s28 + $0x1f8] sm:$0xff] }
 0x2bf   : > { %v2790_v1 = vmul.f32 %v2718_v61, %v2646_v56  ;;  %v2648_v10 = vsel %vm2461_vm0, %v2561_v46, %v2427_v30 }
 0x2c0   : > { %v2792_v12 = vmul.f32 %v2720_v51, %v2648_v10 }
 0x2c1   : > { %2863 = vst [vmem:[%s4861_s5 + $0x120] sm:$0xff] %v2790_v1 }
 0x2c2   : > { %2865 = vst [vmem:[%s4861_s5 + $0x130] sm:$0xff] %v2792_v12  ;;  %2381 = vadd.xlane.f32.xlu2 %v2380_v31  ;;  %2360 = vadd.xlane.f32.xlu1 %v2359_v29  ;;  %v2747_v29 = vld [vmem:[%s4818_s28 + $0x208] sm:$0xff] }
 0x2c3   : > { %2384 = vadd.xlane.f32.xlu0 %v2383_v37 }
 0x2c5   : > { %v2585_v27 = vpop.xlane.xlu2 %2584  ;;  %v2564_v19 = vpop.xlane.xlu1 %2563 }
 0x2c6   : > { %v2664_v33 = vsel %vm2461_vm0, %v2585_v27, %v2443_v40  ;;  %v2588_v43 = vpop.xlane.xlu0 %2587  ;;  %v2650_v58 = vsel %vm2461_vm0, %v2564_v19, %v2429_v41  ;;  %v2724_v41 = vld [vmem:[%s4818_s28 + $0x150] sm:$0xff] }
 0x2c7   : > { %v2808_v13 = vmul.f32 %v2736_v5, %v2664_v33  ;;  %v2666_v15 = vsel %vm2461_vm0, %v2588_v43, %v2445_v36  ;;  %v2794_v21 = vmul.f32 %v2722_v4, %v2650_v58  ;;  %v2726_v33 = vld [vmem:[%s4818_s28 + $0x160] sm:$0xff] }
 0x2c8   : > { %v2810_v6 = vmul.f32 %v2738_v22, %v2666_v15 }
 0x2c9   : > { %2881 = vst [vmem:[%s4861_s5 + $0x1b0] sm:$0xff] %v2808_v13 }
 0x2ca   : > { %2867 = vst [vmem:[%s4861_s5 + $0x140] sm:$0xff] %v2794_v21  ;;  %2575 = vadd.xlane.f32.xlu2 %v2574_v7  ;;  %2387 = vadd.xlane.f32.xlu1 %v2386_v23  ;;  %v2742_v7 = vld [vmem:[%s4818_s28 + $0x1e0] sm:$0xff] }
 0x2cb   : > { %2883 = vst [vmem:[%s4861_s5 + $0x1c0] sm:$0xff] %v2810_v6  ;;  %2578 = vadd.xlane.f32.xlu0 %v2577_v47  ;;  %v2728_v47 = vld [vmem:[%s4818_s28 + $0x170] sm:$0xff] }
 0x2cd   : > { %v1976_v38 = vpop.xlane.xlu2 %1975  ;;  %v2591_v17 = vpop.xlane.xlu1 %2590 }
 0x2ce   : > { %v1979_v34 = vpop.xlane.xlu0 %1978  ;;  %v2668_v63 = vsel %vm2461_vm0, %v2591_v17, %v2447_v59 }
 0x2cf   : > { %v2812_v62 = vmul.f32 %v2740_v28, %v2668_v63 }
 0x2d1   : > { %2885 = vst [vmem:[%s4861_s5 + $0x1d0] sm:$0xff] %v2812_v62 }
 0x2d2   : > { %2602 = vadd.xlane.f32.xlu2 %v2601_v18  ;;  %2581 = vadd.xlane.f32.xlu1 %v2580_v3 }
 0x2d3   : > { %2605 = vadd.xlane.f32.xlu0 %v2604_v54  ;;  %v2746_v54 = vld [vmem:[%s4818_s28 + $0x200] sm:$0xff] }
 0x2d5   : > { %v2003_v42 = vpop.xlane.xlu2 %2002  ;;  %v1982_v26 = vpop.xlane.xlu1 %1981 }
 0x2d6   : > { %v2006_v2 = vpop.xlane.xlu0 %2005 }
 0x2da   : > { %2608 = vadd.xlane.f32.xlu1 %v2607_v8 }
 0x2dd   : > { %v2125_v48 = vpop.xlane.xlu2 %2124  ;;  %v2009_v9 = vpop.xlane.xlu1 %2008 }
 0x2de   : > { %v2211_v61 = vsel %vm2020_vm1, %v2125_v48, %v1976_v38  ;;  %v2128_v24 = vpop.xlane.xlu0 %2127  ;;  %v2744_v38 = vld [vmem:[%s4818_s28 + $0x1f0] sm:$0xff] }
 0x2df   : > { %v2797_v0 = vmul.f32 %v2725_v11, %v2211_v61  ;;  %v2213_v51 = vsel %vm2020_vm1, %v2128_v24, %v1979_v34  ;;  %v2731_v61 = vld [vmem:[%s4818_s28 + $0x188] sm:$0xff] }
 0x2e0   : > { %v2799_v49 = vmul.f32 %v2727_v55, %v2213_v51 }
 0x2e1   : > { %2870 = vst.msk [vmem:[%s4861_s5 + $0x158] sm:$0xff] %vm2827_vm10, %v2797_v0  ;;  %v2733_v0 = vld [vmem:[%s4818_s28 + $0x198] sm:$0xff] }
 0x2e2   : > { %2872 = vst.msk [vmem:[%s4861_s5 + $0x168] sm:$0xff] %vm2827_vm10, %v2799_v49 }
 0x2e5   : > { %v2152_v30 = vpop.xlane.xlu2 %2151  ;;  %v2131_v56 = vpop.xlane.xlu1 %2130 }
 0x2e6   : > { %v2229_v46 = vsel %vm2020_vm1, %v2152_v30, %v2003_v42  ;;  %v2155_v57 = vpop.xlane.xlu0 %2154  ;;  %v2215_v35 = vsel %vm2020_vm1, %v2131_v56, %v1982_v26 }
 0x2e7   : > { %v2815_v1 = vmul.f32 %v2743_v44, %v2229_v46  ;;  %v2231_v10 = vsel %vm2020_vm1, %v2155_v57, %v2006_v2  ;;  %v2801_v12 = vmul.f32 %v2729_v16, %v2215_v35  ;;  %v2735_v46 = vld [vmem:[%s4818_s28 + $0x1a8] sm:$0xff] }
 0x2e8   : > { %v2817_v31 = vmul.f32 %v2745_v53, %v2231_v10  ;;  %v2751_v35 = vld [vmem:[%s4818_s28 + $0x228] sm:$0xff] }
 0x2e9   : > { %2888 = vst.msk [vmem:[%s4861_s5 + $0x1e8] sm:$0xff] %vm2827_vm10, %v2815_v1 }
 0x2ea   : > { %2874 = vst.msk [vmem:[%s4861_s5 + $0x178] sm:$0xff] %vm2827_vm10, %v2801_v12 }
 0x2eb   : > { %2890 = vst.msk [vmem:[%s4861_s5 + $0x1f8] sm:$0xff] %vm2827_vm10, %v2817_v31 }
 0x2ed   : > { %v2346_v37 = vpop.xlane.xlu2 %2345  ;;  %v2158_v5 = vpop.xlane.xlu1 %2157 }
 0x2ee   : > { %v2349_v40 = vpop.xlane.xlu0 %2348  ;;  %v2233_v4 = vsel %vm2020_vm1, %v2158_v5, %v2009_v9  ;;  %v2431_v36 = vsel %vm2240_vm14, %v2346_v37, %v2125_v48 }
 0x2ef   : > { %v2819_v27 = vmul.f32 %v2747_v29, %v2233_v4  ;;  %v2433_v43 = vsel %vm2240_vm14, %v2349_v40, %v2128_v24  ;;  %v2753_v4 = vld [vmem:[%s4818_s28 + $0x238] sm:$0xff] }
 0x2f1   : > { %2892 = vst.msk [vmem:[%s4861_s5 + $0x208] sm:$0xff] %vm2827_vm10, %v2819_v27 }
 0x2f5   : > { %v2373_v22 = vpop.xlane.xlu2 %2372  ;;  %v2352_v52 = vpop.xlane.xlu1 %2351 }
 0x2f6   : > { %v2376_v39 = vpop.xlane.xlu0 %2375  ;;  %v2449_v23 = vsel %vm2240_vm14, %v2373_v22, %v2152_v30  ;;  %v2435_v32 = vsel %vm2240_vm14, %v2352_v52, %v2131_v56  ;;  %v2749_v56 = vld [vmem:[%s4818_s28 + $0x218] sm:$0xff] }
 0x2f7   : > { %v2451_v59 = vsel %vm2240_vm14, %v2376_v39, %v2155_v57 }
 0x2fd   : > { %v2567_v19 = vpop.xlane.xlu2 %2566  ;;  %v2379_v60 = vpop.xlane.xlu1 %2378 }
 0x2fe   : > { %v2652_v58 = vsel %vm2461_vm0, %v2567_v19, %v2431_v36  ;;  %v2570_v13 = vpop.xlane.xlu0 %2569  ;;  %v2453_v26 = vsel %vm2240_vm14, %v2379_v60, %v2158_v5 }
 0x2ff   : > { %v2796_v15 = vmul.f32 %v2724_v41, %v2652_v58  ;;  %v2654_v21 = vsel %vm2461_vm0, %v2570_v13, %v2433_v43  ;;  %v2730_v43 = vld [vmem:[%s4818_s28 + $0x180] sm:$0xff]  ;;  %v2732_v13 = vld [vmem:[%s4818_s28 + $0x190] sm:$0xff] }
 0x300   : > { %v2798_v6 = vmul.f32 %v2726_v33, %v2654_v21 }
 0x301   : > { %2869 = vst [vmem:[%s4861_s5 + $0x150] sm:$0xff] %v2796_v15 }
 0x302   : > { %2871 = vst [vmem:[%s4861_s5 + $0x160] sm:$0xff] %v2798_v6 }
 0x305   : > { %v2594_v28 = vpop.xlane.xlu2 %2593  ;;  %v2573_v17 = vpop.xlane.xlu1 %2572 }
 0x306   : > { %v2670_v34 = vsel %vm2461_vm0, %v2594_v28, %v2449_v23  ;;  %v2597_v20 = vpop.xlane.xlu0 %2596  ;;  %v2656_v50 = vsel %vm2461_vm0, %v2573_v17, %v2435_v32  ;;  %v2748_v28 = vld [vmem:[%s4818_s28 + $0x210] sm:$0xff]  ;;  %v2734_v32 = vld [vmem:[%s4818_s28 + $0x1a0] sm:$0xff] }
 0x307   : > { %v2814_v63 = vmul.f32 %v2742_v7, %v2670_v34  ;;  %v2672_v62 = vsel %vm2461_vm0, %v2597_v20, %v2451_v59  ;;  %v2800_v18 = vmul.f32 %v2728_v47, %v2656_v50  ;;  %v2750_v17 = vld [vmem:[%s4818_s28 + $0x220] sm:$0xff] }
 0x308   : > { %v2816_v3 = vmul.f32 %v2744_v38, %v2672_v62 }
 0x309   : > { %2887 = vst [vmem:[%s4861_s5 + $0x1e0] sm:$0xff] %v2814_v63 }
 0x30a   : > { %2873 = vst [vmem:[%s4861_s5 + $0x170] sm:$0xff] %v2800_v18 }
 0x30b   : > { %2889 = vst [vmem:[%s4861_s5 + $0x1f0] sm:$0xff] %v2816_v3 }
 0x30d   : > { %v1985_v42 = vpop.xlane.xlu2 %1984  ;;  %v2600_v2 = vpop.xlane.xlu1 %2599 }
 0x30e   : > { %v1988_v45 = vpop.xlane.xlu0 %1987  ;;  %v2674_v8 = vsel %vm2461_vm0, %v2600_v2, %v2453_v26  ;;  %v2752_v2 = vld [vmem:[%s4818_s28 + $0x230] sm:$0xff] }
 0x30f   : > { %v2818_v11 = vmul.f32 %v2746_v54, %v2674_v8 }
 0x311   : > { %2891 = vst [vmem:[%s4861_s5 + $0x200] sm:$0xff] %v2818_v11 }
 0x315   : > { %v2012_v48 = vpop.xlane.xlu2 %2011  ;;  %v1991_v55 = vpop.xlane.xlu1 %1990 }
 0x316   : > { %v2015_v9 = vpop.xlane.xlu0 %2014 }
 0x31d   : > { %v2134_v24 = vpop.xlane.xlu2 %2133  ;;  %v2018_v51 = vpop.xlane.xlu1 %2017 }
 0x31e   : > { %v2217_v49 = vsel %vm2020_vm1, %v2134_v24, %v1985_v42  ;;  %v2137_v44 = vpop.xlane.xlu0 %2136 }
 0x31f   : > { %v2803_v16 = vmul.f32 %v2731_v61, %v2217_v49  ;;  %v2219_v30 = vsel %vm2020_vm1, %v2137_v44, %v1988_v45 }
 0x320   : > { %v2805_v53 = vmul.f32 %v2733_v0, %v2219_v30 }
 0x321   : > { %2876 = vst.msk [vmem:[%s4861_s5 + $0x188] sm:$0xff] %vm2827_vm10, %v2803_v16 }
 0x322   : > { %2878 = vst.msk [vmem:[%s4861_s5 + $0x198] sm:$0xff] %vm2827_vm10, %v2805_v53 }
 0x325   : > { %v2161_v57 = vpop.xlane.xlu2 %2160  ;;  %v2140_v1 = vpop.xlane.xlu1 %2139 }
 0x326   : > { %v2235_v10 = vsel %vm2020_vm1, %v2161_v57, %v2012_v48  ;;  %v2164_v12 = vpop.xlane.xlu0 %2163  ;;  %v2221_v31 = vsel %vm2020_vm1, %v2140_v1, %v1991_v55 }
 0x327   : > { %v2821_v29 = vmul.f32 %v2749_v56, %v2235_v10  ;;  %v2237_v37 = vsel %vm2020_vm1, %v2164_v12, %v2015_v9  ;;  %v2807_v5 = vmul.f32 %v2735_v46, %v2221_v31 }
 0x328   : > { %v2823_v40 = vmul.f32 %v2751_v35, %v2237_v37 }
 0x329   : > { %2894 = vst.msk [vmem:[%s4861_s5 + $0x218] sm:$0xff] %vm2827_vm10, %v2821_v29 }
 0x32a   : > { %2880 = vst.msk [vmem:[%s4861_s5 + $0x1a8] sm:$0xff] %vm2827_vm10, %v2807_v5 }
 0x32b   : > { %2896 = vst.msk [vmem:[%s4861_s5 + $0x228] sm:$0xff] %vm2827_vm10, %v2823_v40 }
 0x32d   : > { %v2355_v27 = vpop.xlane.xlu2 %2354  ;;  %v2167_v22 = vpop.xlane.xlu1 %2166 }
 0x32e   : > { %v2358_v52 = vpop.xlane.xlu0 %2357  ;;  %v2239_v39 = vsel %vm2020_vm1, %v2167_v22, %v2018_v51  ;;  %v2437_v60 = vsel %vm2240_vm14, %v2355_v27, %v2134_v24 }
 0x32f   : > { %v2825_v41 = vmul.f32 %v2753_v4, %v2239_v39  ;;  %v2439_v25 = vsel %vm2240_vm14, %v2358_v52, %v2137_v44 }
 0x331   : > { %2898 = vst.msk [vmem:[%s4861_s5 + $0x238] sm:$0xff] %vm2827_vm10, %v2825_v41 }
 0x335   : > { %v2382_v36 = vpop.xlane.xlu2 %2381  ;;  %v2361_v19 = vpop.xlane.xlu1 %2360 }
 0x336   : > { %v2385_v33 = vpop.xlane.xlu0 %2384  ;;  %v2455_v38 = vsel %vm2240_vm14, %v2382_v36, %v2161_v57  ;;  %v2441_v34 = vsel %vm2240_vm14, %v2361_v19, %v2140_v1 }
 0x337   : > { %v2457_v20 = vsel %vm2240_vm14, %v2385_v33, %v2164_v12 }
 0x33d   : > { %v2576_v58 = vpop.xlane.xlu2 %2575  ;;  %v2388_v15 = vpop.xlane.xlu1 %2387 }
 0x33e   : > { %v2658_v21 = vsel %vm2461_vm0, %v2576_v58, %v2437_v60  ;;  %v2579_v6 = vpop.xlane.xlu0 %2578  ;;  %v2459_v45 = vsel %vm2240_vm14, %v2388_v15, %v2167_v22 }
 0x33f   : > { %v2802_v7 = vmul.f32 %v2730_v43, %v2658_v21  ;;  %v2660_v23 = vsel %vm2461_vm0, %v2579_v6, %v2439_v25 }
 0x340   : > { %v2804_v47 = vmul.f32 %v2732_v13, %v2660_v23 }
 0x341   : > { %2875 = vst [vmem:[%s4861_s5 + $0x180] sm:$0xff] %v2802_v7 }
 0x342   : > { %2877 = vst [vmem:[%s4861_s5 + $0x190] sm:$0xff] %v2804_v47 }
 0x345   : > { %v2603_v59 = vpop.xlane.xlu2 %2602  ;;  %v2582_v50 = vpop.xlane.xlu1 %2581 }
 0x346   : > { %v2676_v63 = vsel %vm2461_vm0, %v2603_v59, %v2455_v38  ;;  %v2606_v62 = vpop.xlane.xlu0 %2605  ;;  %v2662_v18 = vsel %vm2461_vm0, %v2582_v50, %v2441_v34 }
 0x347   : > { %v2820_v3 = vmul.f32 %v2748_v28, %v2676_v63  ;;  %v2678_v54 = vsel %vm2461_vm0, %v2606_v62, %v2457_v20  ;;  %v2806_v42 = vmul.f32 %v2734_v32, %v2662_v18 }
 0x348   : > { %v2822_v26 = vmul.f32 %v2750_v17, %v2678_v54 }
 0x349   : > { %2893 = vst [vmem:[%s4861_s5 + $0x210] sm:$0xff] %v2820_v3 }
 0x34a   : > { %2879 = vst [vmem:[%s4861_s5 + $0x1a0] sm:$0xff] %v2806_v42 }
 0x34b   : > { %2895 = vst [vmem:[%s4861_s5 + $0x220] sm:$0xff] %v2822_v26 }
 0x34d   : > { %v2609_v8 = vpop.xlane.xlu1 %2608 }
 0x34e   : > { %v2680_v11 = vsel %vm2461_vm0, %v2609_v8, %v2459_v45 }
 0x34f   : > { %v2824_v48 = vmul.f32 %v2752_v2, %v2680_v11 }
 0x351   : > { %2897 = vst [vmem:[%s4861_s5 + $0x230] sm:$0xff] %v2824_v48 }
 0x352 PF: > { %s14_s15 = sadd.s32 1, %s3296_s15  }
 0x353   : > { %p11_p4 = scmp.ge.s32.totalorder %s14_s15, 4  }
 0x355   :  { %13 = sbr.rel (!%p11_p4) target bundleno = 1 (0x1), region = 72 }

</bundles_post_ra>
